<compile_context>
chip_gen: v7x
topology: tpu7x:2x2x1
jax: 0.10.0
libtpu: 0.0.40
codegen_flags: <defaults>
</compile_context>

<pallas_src>
import functools
import numpy as np
import jax
import jax.numpy as jnp
from jax.experimental import pallas as pl
from jax.experimental.pallas import tpu as pltpu

N_CLASSES = 1
_BN_EPS = 1e-5
_LANE = 128
_VMEM_LIMIT = 32 * 1024 * 1024   # explicit scoped-VMEM cap, safe on v7x (64 MiB total)
_TM_TARGET = 256                 # row tile: keeps >=2 parallel steps for v7x's 2 TCs
_TK_TARGET = 512                 # K-reduction tile target (prefer 256-multiples: v6e MXU)


def _round_up(v, m):
    return ((v + m - 1) // m) * m


def _cparams(semantics, allow_input_fusion=None):
    return pltpu.CompilerParams(dimension_semantics=semantics,
                                vmem_limit_bytes=_VMEM_LIMIT,
                                allow_input_fusion=allow_input_fusion)


def _row_tile(m, target=_TM_TARGET):
    """Row tile (multiple of 8) and the padded row count it divides.
    Never falls back to a giant full-m block (guards v7x's 64 MiB VMEM)."""
    tm = min(target, _round_up(m, 8))
    return tm, _round_up(m, tm)


def _k_tile(k, target=_TK_TARGET):
    """K tile dividing k: prefer 256-multiples (v6e/v7x MXU), then 128-multiples."""
    if k <= target:
        return k
    for t in (512, 256):
        if t <= target and k % t == 0:
            return t
    for t in range(target - target % 128, 127, -128):
        if k % t == 0:
            return t
    return k   # TODO(synk): pad K instead of one big block for awkward huge K


def _divisor_tile(m, target=_TM_TARGET):
    if m <= target:
        return m
    for t in range(target - target % 8, 7, -8):
        if m % t == 0:
            return t
    return m


# ---------------------------------------------------------------------------
# Pallas kernels
# ---------------------------------------------------------------------------

def _matmul_fused_kernel(*refs, pre_relu, post_relu, has_pre, has_post):
    """(tm,tk)@(tk,n_pad) on the MXU. Optional fused BN/ReLU prologue (per-K cols)
    and epilogue (per-N cols); identity transforms are compiled out entirely.
    K is the reduction grid axis (last); f32 VMEM accumulator."""
    idx = 0
    x_ref = refs[idx]; idx += 1
    w_ref = refs[idx]; idx += 1
    if has_pre:
        ps_ref, pb_ref = refs[idx], refs[idx + 1]; idx += 2
    if has_post:
        qs_ref, qb_ref = refs[idx], refs[idx + 1]; idx += 2
    o_ref, acc_ref = refs[idx], refs[idx + 1]

    kstep = pl.program_id(1)

    @pl.when(kstep == 0)
    def _():
        acc_ref[...] = jnp.zeros_like(acc_ref)

    if has_pre:
        xv = x_ref[...].astype(jnp.float32) * ps_ref[...] + pb_ref[...]
        if pre_relu:
            xv = jnp.maximum(xv, 0.0)
        xv = xv.astype(jnp.bfloat16)
    else:
        xv = x_ref[...]                                 # bf16 straight to the MXU
    acc_ref[...] += jnp.dot(xv, w_ref[...], preferred_element_type=jnp.float32)

    @pl.when(kstep == pl.num_programs(1) - 1)
    def _():
        y = acc_ref[...]
        if has_post:
            y = y * qs_ref[...] + qb_ref[...]
        if post_relu:
            y = jnp.maximum(y, 0.0)
        o_ref[...] = y.astype(o_ref.dtype)


def _conv3x3_kernel(x_ref, w_ref, o_ref, acc_ref, *, wp, mo, kh, kw):
    """3x3/s1 conv, whole image per grid step, no im2col in HBM.
    x_ref: flattened padded image (rows = (h+3)*wp, Cin_pad); each tap (dy,dx) is a
    statically-offset pl.ds row window matmul'd with its (Cin_pad, Cout_pad) weight
    slice; all kh*kw taps accumulate into the f32 VMEM scratch."""
    for t in range(kh * kw):
        dy, dx = divmod(t, kw)
        off = dy * wp + dx
        contrib = jnp.dot(x_ref[pl.ds(off, mo), :], w_ref[t],
                          preferred_element_type=jnp.float32)
        if t == 0:
            acc_ref[...] = contrib
        else:
            acc_ref[...] += contrib
    o_ref[...] = acc_ref[...].astype(o_ref.dtype)


def _max_pool_kernel(*refs):
    out_ref = refs[-1]
    acc = refs[0][...]
    for r in refs[1:-1]:
        acc = jnp.maximum(acc, r[...])
    out_ref[...] = acc


def _avg_pool_kernel(a_ref, b_ref, c_ref, d_ref, o_ref):
    s = (a_ref[...].astype(jnp.float32) + b_ref[...].astype(jnp.float32)
         + c_ref[...].astype(jnp.float32) + d_ref[...].astype(jnp.float32)) * 0.25
    o_ref[...] = s.astype(o_ref.dtype)


def _gap_classifier_kernel(x_ref, s_ref, b_ref, wc_ref, bc_ref, o_ref, acc_ref,
                           *, inv_hw):
    """norm5 + outer ReLU + global average pool + Linear classifier, fused.
    Spatial chunks are the (reduction) grid axis."""
    c = pl.program_id(0)

    @pl.when(c == 0)
    def _():
        acc_ref[...] = jnp.zeros_like(acc_ref)

    xt = x_ref[...].astype(jnp.float32)
    xt = jnp.maximum(xt * s_ref[...] + b_ref[...], 0.0)
    acc_ref[...] += jnp.sum(xt, axis=1)                     # (N, C)

    @pl.when(c == pl.num_programs(0) - 1)
    def _():
        pooled = acc_ref[...] * inv_hw
        o_ref[...] = (jnp.dot(pooled, wc_ref[...],
                              preferred_element_type=jnp.float32) + bc_ref[...])


# ---------------------------------------------------------------------------
# Wrappers (JAX glue around the kernels)
# ---------------------------------------------------------------------------

def matmul_fused(x2d, wmat, *, pre=None, post=None, pre_relu=False,
                 post_relu=False, out_dtype=jnp.bfloat16):
    """Returns the row/lane-padded (m_pad, n_pad) product; callers slice as needed.
    pre = (scale, shift) over K (BN fused before the conv), post = over N (after)."""
    m, k = x2d.shape
    _, n = wmat.shape
    n_pad = _round_up(n, _LANE)
    if n_pad != n:                                   # lane-dense output stores
        wmat = jnp.pad(wmat, ((0, 0), (0, n_pad - n)))
        if post is not None:
            post = (jnp.pad(post[0], (0, n_pad - n), constant_values=1.0),
                    jnp.pad(post[1], (0, n_pad - n)))
    tm, m_pad = _row_tile(m)
    if m_pad != m:
        x2d = jnp.pad(x2d, ((0, m_pad - m), (0, 0)))
    tk = _k_tile(k)
    grid = (m_pad // tm, k // tk)

    in_specs = [pl.BlockSpec((tm, tk), lambda i, kk: (i, kk)),
                pl.BlockSpec((tk, n_pad), lambda i, kk: (kk, 0))]
    args = [x2d.astype(jnp.bfloat16), wmat.astype(jnp.bfloat16)]
    if pre is not None:
        in_specs += [pl.BlockSpec((1, tk), lambda i, kk: (0, kk)),
                     pl.BlockSpec((1, tk), lambda i, kk: (0, kk))]
        args += [pre[0].reshape(1, k).astype(jnp.float32),
                 pre[1].reshape(1, k).astype(jnp.float32)]
    if post is not None:
        in_specs += [pl.BlockSpec((1, n_pad), lambda i, kk: (0, 0)),
                     pl.BlockSpec((1, n_pad), lambda i, kk: (0, 0))]
        args += [post[0].reshape(1, n_pad).astype(jnp.float32),
                 post[1].reshape(1, n_pad).astype(jnp.float32)]

    kern = functools.partial(_matmul_fused_kernel, pre_relu=pre_relu,
                             post_relu=post_relu, has_pre=pre is not None,
                             has_post=post is not None)
    return pl.pallas_call(
        kern,
        out_shape=jax.ShapeDtypeStruct((m_pad, n_pad), out_dtype),
        grid=grid,
        in_specs=in_specs,
        out_specs=pl.BlockSpec((tm, n_pad), lambda i, kk: (i, 0)),
        scratch_shapes=[pltpu.VMEM((tm, n_pad), jnp.float32)],
        compiler_params=_cparams(("parallel", "arbitrary")),
    )(*args)


def conv0_7x7_s2_p3(x, w_torch, post_scale, post_shift):
    """Stem conv (7x7/s2/p3) with norm0+relu0 fused as matmul epilogue.
    im2col kept only here (3-channel input -> the patch matrix is tiny); the
    identity prologue is skipped entirely (has_pre=False)."""
    n, h, wdim, cin = x.shape
    cout, _, kh, kw = w_torch.shape
    stride, pad = 2, 3
    xp = jnp.pad(x, ((0, 0), (pad, pad), (pad, pad), (0, 0))).astype(jnp.bfloat16)
    ho = (h + 2 * pad - kh) // stride + 1
    wo = (wdim + 2 * pad - kw) // stride + 1
    slabs = [xp[:, dy::stride, dx::stride, :][:, :ho, :wo, :]
             for dy in range(kh) for dx in range(kw)]
    patches = jnp.concatenate(slabs, axis=-1).reshape(n * ho * wo, kh * kw * cin)
    wmat = jnp.transpose(w_torch, (2, 3, 1, 0)).reshape(kh * kw * cin, cout)
    m = n * ho * wo
    y = matmul_fused(patches, wmat, post=(post_scale, post_shift), post_relu=True)
    return y[:m, :cout].reshape(n, ho, wo, cout)


def conv1x1_fused(x, w_torch, pre, *, pre_relu, post=None, post_relu=False,
                  keep_padded=False):
    """1x1 conv with BN(+ReLU) fused as prologue / epilogue. With keep_padded the
    128-lane-padded output is returned directly (padded channels are exactly zero),
    so the consumer's K dimension stays lane-dense with zero-padded weight rows."""
    n, h, wdim, cin = x.shape
    cout = w_torch.shape[0]
    wmat = w_torch[:, :, 0, 0].T                             # (cin, cout)
    m = n * h * wdim
    y = matmul_fused(x.reshape(m, cin), wmat, pre=pre, post=post,
                     pre_relu=pre_relu, post_relu=post_relu)
    if keep_padded:
        return y[:m].reshape(n, h, wdim, y.shape[1])
    return y[:m, :cout].reshape(n, h, wdim, cout)


def conv3x3_s1_p1(x, w_torch):
    """3x3 / stride 1 / pad 1 conv, grid=(batch,), no im2col materialization.
    Accepts a lane-padded Cin (zero channels) and returns the true-channel result."""
    n, h, wdim, cin = x.shape                    # cin may be lane-padded (e.g. 128)
    cout, cin_w, kh, kw = w_torch.shape
    cout_pad = _round_up(cout, _LANE)
    wp = wdim + 2
    mo = h * wp                                  # output rows kept width-padded
    mflat = (h + 3) * wp                         # extra bottom row covers tap offsets
    xp = jnp.pad(x, ((0, 0), (1, 2), (1, 1), (0, 0))).astype(jnp.bfloat16)
    xflat = xp.reshape(n, mflat, cin)
    wt = jnp.transpose(w_torch, (2, 3, 1, 0)).reshape(kh * kw, cin_w, cout)
    wt = jnp.pad(wt, ((0, 0), (0, cin - cin_w), (0, cout_pad - cout))
                 ).astype(jnp.bfloat16)
    kern = functools.partial(_conv3x3_kernel, wp=wp, mo=mo, kh=kh, kw=kw)
    y = pl.pallas_call(
        kern,
        out_shape=jax.ShapeDtypeStruct((n, mo, cout_pad), jnp.bfloat16),
        grid=(n,),
        in_specs=[
            pl.BlockSpec((None, mflat, cin), lambda b: (b, 0, 0)),
            pl.BlockSpec((kh * kw, cin, cout_pad), lambda b: (0, 0, 0)),  # resident
        ],
        out_specs=pl.BlockSpec((None, mo, cout_pad), lambda b: (b, 0, 0)),
        scratch_shapes=[pltpu.VMEM((mo, cout_pad), jnp.float32)],
        compiler_params=_cparams(("parallel",)),
    )(xflat, wt)
    # drop the width padding columns and the lane-padded output channels
    return y.reshape(n, h, wp, cout_pad)[:, :, :wdim, :cout]


def max_pool_3x3_s2_p1(x):
    n, h, wdim, c = x.shape
    xp = jnp.pad(x, ((0, 0), (1, 1), (1, 1), (0, 0)), constant_values=-jnp.inf)
    ho = (h + 2 - 3) // 2 + 1
    wo = (wdim + 2 - 3) // 2 + 1
    m = n * ho * wo
    slabs = [xp[:, dy::2, dx::2, :][:, :ho, :wo, :].reshape(m, c)
             for dy in range(3) for dx in range(3)]
    tm, m_pad = _row_tile(m)
    if m_pad != m:
        slabs = [jnp.pad(s, ((0, m_pad - m), (0, 0))) for s in slabs]
    y = pl.pallas_call(
        _max_pool_kernel,
        out_shape=jax.ShapeDtypeStruct((m_pad, c), x.dtype),
        grid=(m_pad // tm,),
        in_specs=[pl.BlockSpec((tm, c), lambda i: (i, 0)) for _ in range(9)],
        out_specs=pl.BlockSpec((tm, c), lambda i: (i, 0)),
        compiler_params=_cparams(("parallel",), allow_input_fusion=[True] * 9),
    )(*slabs)
    return y[:m].reshape(n, ho, wo, c)


def avg_pool_2x2(x):
    n, h, wdim, c = x.shape
    ho, wo = h // 2, wdim // 2
    m = n * ho * wo
    slabs = [x[:, dy::2, dx::2, :][:, :ho, :wo, :].reshape(m, c)
             for dy in (0, 1) for dx in (0, 1)]
    tm, m_pad = _row_tile(m)
    if m_pad != m:
        slabs = [jnp.pad(s, ((0, m_pad - m), (0, 0))) for s in slabs]
    y = pl.pallas_call(
        _avg_pool_kernel,
        out_shape=jax.ShapeDtypeStruct((m_pad, c), x.dtype),
        grid=(m_pad // tm,),
        in_specs=[pl.BlockSpec((tm, c), lambda i: (i, 0)) for _ in range(4)],
        out_specs=pl.BlockSpec((tm, c), lambda i: (i, 0)),
        compiler_params=_cparams(("parallel",), allow_input_fusion=[True] * 4),
    )(*slabs)
    return y[:m].reshape(n, ho, wo, c)


def global_pool_classifier(x, scale, shift, clf_w, clf_b):
    # norm5 + outer ReLU + global average pool + Linear classifier, fused.
    # Single-TC tail cost accepted (tiny spatial reduction at the end of the net).
    n, h, wdim, c = x.shape
    hw = h * wdim
    x3 = x.reshape(n, hw, c)
    ts = _divisor_tile(hw)
    nc = clf_w.shape[0]
    kern = functools.partial(_gap_classifier_kernel, inv_hw=1.0 / hw)
    return pl.pallas_call(
        kern,
        out_shape=jax.ShapeDtypeStruct((n, nc), jnp.float32),
        grid=(hw // ts,),
        in_specs=[
            pl.BlockSpec((n, ts, c), lambda i: (0, i, 0)),
            pl.BlockSpec((1, 1, c), lambda i: (0, 0, 0)),
            pl.BlockSpec((1, 1, c), lambda i: (0, 0, 0)),
            pl.BlockSpec((c, nc), lambda i: (0, 0)),
            pl.BlockSpec((1, nc), lambda i: (0, 0)),
        ],
        out_specs=pl.BlockSpec((n, nc), lambda i: (0, 0)),
        scratch_shapes=[pltpu.VMEM((n, c), jnp.float32)],
        compiler_params=_cparams(("arbitrary",)),
    )(x3,
      scale.reshape(1, 1, c).astype(jnp.float32),
      shift.reshape(1, 1, c).astype(jnp.float32),
      clf_w.T.astype(jnp.float32),
      clf_b.reshape(1, nc).astype(jnp.float32))


def _bn_fold(bn):
    scale = bn["gamma"] / jnp.sqrt(bn["var"] + _BN_EPS)
    shift = bn["beta"] - bn["mean"] * scale
    return scale, shift


# ---------------------------------------------------------------------------
# Deterministic parameter initialization (shapes follow torchvision DenseNet)
# ---------------------------------------------------------------------------

def _conv_w(key, cout, cin, kh, kw):
    fan_in = cin * kh * kw
    return (jax.random.normal(key, (cout, cin, kh, kw), jnp.float32)
            / np.sqrt(fan_in)).astype(jnp.float32)


def _bn_p(key, c):
    k1, k2, k3, k4 = jax.random.split(key, 4)
    return dict(
        gamma=1.0 + 0.05 * jax.random.normal(k1, (c,), jnp.float32),
        beta=0.05 * jax.random.normal(k2, (c,), jnp.float32),
        mean=0.05 * jax.random.normal(k3, (c,), jnp.float32),
        var=0.5 + jnp.abs(jax.random.normal(k4, (c,), jnp.float32)),
    )


def init_densenet(key, in_ch, num_init_features, growth_rate, block_config, bn_size,
                  n_classes):
    keys = iter(jax.random.split(key, 1024))
    nk = lambda: next(keys)
    p = {}
    p["conv0"] = _conv_w(nk(), num_init_features, in_ch, 7, 7)
    p["norm0"] = _bn_p(nk(), num_init_features)

    blocks, transitions = [], []
    num_features = num_init_features
    for bi, num_layers in enumerate(block_config):
        layers = []
        for li in range(num_layers):
            cin = num_features + li * growth_rate
            layers.append(dict(
                norm1=_bn_p(nk(), cin),
                conv1=_conv_w(nk(), bn_size * growth_rate, cin, 1, 1),
                norm2=_bn_p(nk(), bn_size * growth_rate),
                conv2=_conv_w(nk(), growth_rate, bn_size * growth_rate, 3, 3),
            ))
        blocks.append(layers)
        num_features += num_layers * growth_rate
        if bi != len(block_config) - 1:
            cout = num_features // 2
            transitions.append(dict(
                norm=_bn_p(nk(), num_features),
                conv=_conv_w(nk(), cout, num_features, 1, 1),
            ))
            num_features = cout

    p["blocks"] = blocks
    p["transitions"] = transitions
    p["norm5"] = _bn_p(nk(), num_features)
    p["classifier_w"] = (jax.random.normal(nk(), (n_classes, num_features), jnp.float32)
                         / np.sqrt(num_features))
    p["classifier_b"] = jnp.full((n_classes,), 0.01, jnp.float32)
    return p


# ---------------------------------------------------------------------------
# Forward pass (matches DenseNet.forward: features -> relu -> avg_pool -> classifier)
# ---------------------------------------------------------------------------

def densenet_forward(params, x_nchw):
    x = jnp.transpose(x_nchw, (0, 2, 3, 1)).astype(jnp.bfloat16)   # NCHW -> NHWC

    # features: conv0 / norm0 / relu0 (fused epilogue) / pool0
    s0, b0 = _bn_fold(params["norm0"])
    x = conv0_7x7_s2_p3(x, params["conv0"], s0, b0)
    x = max_pool_3x3_s2_p1(x)

    # dense blocks + transitions
    for bi, layers in enumerate(params["blocks"]):
        for layer in layers:
            s1, b1 = _bn_fold(layer["norm1"])      # prologue of conv1 (norm1+relu1)
            s2, b2 = _bn_fold(layer["norm2"])      # epilogue of conv1 (norm2+relu2)
            h = conv1x1_fused(x, layer["conv1"], (s1, b1), pre_relu=True,
                              post=(s2, b2), post_relu=True, keep_padded=True)
            h = conv3x3_s1_p1(h, layer["conv2"])   # conv2, no activation
            x = jnp.concatenate([x, h], axis=-1)   # dense connectivity
        if bi != len(params["blocks"]) - 1:
            t = params["transitions"][bi]
            st, bt = _bn_fold(t["norm"])
            x = conv1x1_fused(x, t["conv"], (st, bt), pre_relu=True)  # norm+relu+conv
            x = avg_pool_2x2(x)

    # norm5 + outer F.relu + AvgPool(full spatial).view + Linear, all fused
    s5, b5 = _bn_fold(params["norm5"])
    return global_pool_classifier(x, s5, b5,
                                  params["classifier_w"], params["classifier_b"])


if __name__ == "__main__":
    key = jax.random.PRNGKey(0)
    pkey, xkey = jax.random.split(key)

    # Scaled-down DenseNet config (same structure as densenet121: growth_rate=32,
    # block_config=(6,12,24,16), bn_size=4, init=64), shrunk for a fast synthetic run.
    params = init_densenet(
        pkey, in_ch=3, num_init_features=16, growth_rate=8,
        block_config=(2, 2), bn_size=2, n_classes=N_CLASSES,
    )

    x = jax.random.normal(xkey, (2, 3, 32, 32), jnp.float32)  # NCHW, like PyTorch

    fwd = jax.jit(densenet_forward)
    out = fwd(params, x)
    jax.block_until_ready(out)
    assert out.shape == (2, N_CLASSES) and out.dtype == jnp.float32
    print("KERNEL_OK")
</pallas_src>

<mosaic_0001>
module attributes {stable_mosaic.version = 11 : i64} {
  func.func @_matmul_fused_kernel(%arg0: i32, %arg1: i32, %arg2: memref<256x147xbf16, #tpu.memory_space<vmem>>, %arg3: memref<147x128xbf16, #tpu.memory_space<vmem>>, %arg4: memref<1x128xf32, #tpu.memory_space<vmem>>, %arg5: memref<1x128xf32, #tpu.memory_space<vmem>>, %arg6: memref<256x128xbf16, #tpu.memory_space<vmem>>, %arg7: memref<256x128xf32, #tpu.memory_space<vmem>>) attributes {dimension_semantics = [#tpu.dimension_semantics<parallel>, #tpu.dimension_semantics<arbitrary>], iteration_bounds = array<i64: 2, 1>, scalar_prefetch = 0 : i64, scratch_operands = 1 : i64, tpu.core_type = #tpu.core_type<tc>, window_params = [{transform_indices = @transform_0, window_bounds = array<i64: 256, 147>}, {transform_indices = @transform_1, window_bounds = array<i64: 147, 128>}, {pipeline_mode = #tpu.pipeline_mode<synchronous>, transform_indices = @transform_2, window_bounds = array<i64: 1, 128>}, {pipeline_mode = #tpu.pipeline_mode<synchronous>, transform_indices = @transform_3, window_bounds = array<i64: 1, 128>}, {transform_indices = @transform_4, window_bounds = array<i64: 256, 128>}]} {
    %c0_i32 = arith.constant 0 : i32
    %0 = arith.cmpi eq, %arg1, %c0_i32 : i32
    %1 = arith.extui %0 : i1 to i32
    %c0_i32_0 = arith.constant 0 : i32
    %2 = arith.cmpi ne, %1, %c0_i32_0 : i32
    scf.if %2 {
      %cst_10 = arith.constant 0.000000e+00 : f32
      %12 = vector.broadcast %cst_10 : f32 to vector<256x128xf32>
      %c0_11 = arith.constant 0 : index
      %c0_12 = arith.constant 0 : index
      %13 = vector.load %arg7[%c0_11, %c0_12] : memref<256x128xf32, #tpu.memory_space<vmem>>, vector<256x128xf32>
      tpu.vector_store %arg7[%c0_11, %c0_12], %12 {strides = array<i32>} : memref<256x128xf32, #tpu.memory_space<vmem>>, vector<256x128xf32>,
    } else {
    }
    %c0 = arith.constant 0 : index
    %c0_1 = arith.constant 0 : index
    %3 = vector.load %arg2[%c0, %c0_1] : memref<256x147xbf16, #tpu.memory_space<vmem>>, vector<256x147xbf16>
    %c0_2 = arith.constant 0 : index
    %c0_3 = arith.constant 0 : index
    %4 = vector.load %arg7[%c0_2, %c0_3] : memref<256x128xf32, #tpu.memory_space<vmem>>, vector<256x128xf32>
    %c0_4 = arith.constant 0 : index
    %c0_5 = arith.constant 0 : index
    %5 = vector.load %arg3[%c0_4, %c0_5] : memref<147x128xbf16, #tpu.memory_space<vmem>>, vector<147x128xbf16>
    %cst = arith.constant dense<0.000000e+00> : vector<256x128xf32>
    %6 = tpu.matmul %3, %5, %cst {dimension_numbers = #tpu.dot_dimension_numbers<[1], [0], [0], [1], [0, 0, 1, 1], [], []>} : vector<256x147xbf16>, vector<147x128xbf16>, vector<256x128xf32> -> vector<256x128xf32>
    %7 = arith.addf %4, %6 : vector<256x128xf32>
    %c0_6 = arith.constant 0 : index
    %c0_7 = arith.constant 0 : index
    %8 = vector.load %arg7[%c0_6, %c0_7] : memref<256x128xf32, #tpu.memory_space<vmem>>, vector<256x128xf32>
    tpu.vector_store %arg7[%c0_6, %c0_7], %7 {strides = array<i32>} : memref<256x128xf32, #tpu.memory_space<vmem>>, vector<256x128xf32>,
    %c0_i32_8 = arith.constant 0 : i32
    %9 = arith.cmpi eq, %arg1, %c0_i32_8 : i32
    %10 = arith.extui %9 : i1 to i32
    %c0_i32_9 = arith.constant 0 : i32
    %11 = arith.cmpi ne, %10, %c0_i32_9 : i32
    scf.if %11 {
      %c0_10 = arith.constant 0 : index
      %c0_11 = arith.constant 0 : index
      %12 = vector.load %arg7[%c0_10, %c0_11] : memref<256x128xf32, #tpu.memory_space<vmem>>, vector<256x128xf32>
      %c0_12 = arith.constant 0 : index
      %c0_13 = arith.constant 0 : index
      %13 = vector.load %arg4[%c0_12, %c0_13] : memref<1x128xf32, #tpu.memory_space<vmem>>, vector<1x128xf32>
      %14 = vector.broadcast %13 : vector<1x128xf32> to vector<256x128xf32>
      %15 = arith.mulf %12, %14 : vector<256x128xf32>
      %c0_14 = arith.constant 0 : index
      %c0_15 = arith.constant 0 : index
      %16 = vector.load %arg5[%c0_14, %c0_15] : memref<1x128xf32, #tpu.memory_space<vmem>>, vector<1x128xf32>
      %17 = vector.broadcast %16 : vector<1x128xf32> to vector<256x128xf32>
      %18 = arith.addf %15, %17 : vector<256x128xf32>
      %cst_16 = arith.constant 0.000000e+00 : f32
      %19 = vector.broadcast %cst_16 : f32 to vector<256x128xf32>
      %20 = arith.maximumf %18, %19 : vector<256x128xf32>
      %21 = arith.truncf %20 : vector<256x128xf32> to vector<256x128xbf16>
      %c0_17 = arith.constant 0 : index
      %c0_18 = arith.constant 0 : index
      %22 = vector.load %arg6[%c0_17, %c0_18] : memref<256x128xbf16, #tpu.memory_space<vmem>>, vector<256x128xbf16>
      tpu.vector_store %arg6[%c0_17, %c0_18], %21 {strides = array<i32>} : memref<256x128xbf16, #tpu.memory_space<vmem>>, vector<256x128xbf16>,
    } else {
    }
    return
  }
  func.func @transform_0(%arg0: i32, %arg1: i32) -> (i32, i32) {
    %c0_i32 = arith.constant 0 : i32
    return %arg0, %arg1 : i32, i32
  }
  func.func @transform_1(%arg0: i32, %arg1: i32) -> (i32, i32) {
    %c0_i32 = arith.constant 0 : i32
    %c0_i32_0 = arith.constant 0 : i32
    return %arg1, %c0_i32 : i32, i32
  }
  func.func @transform_2(%arg0: i32, %arg1: i32) -> (i32, i32) {
    %c0_i32 = arith.constant 0 : i32
    %c0_i32_0 = arith.constant 0 : i32
    %c0_i32_1 = arith.constant 0 : i32
    return %c0_i32, %c0_i32_0 : i32, i32
  }
  func.func @transform_3(%arg0: i32, %arg1: i32) -> (i32, i32) {
    %c0_i32 = arith.constant 0 : i32
    %c0_i32_0 = arith.constant 0 : i32
    %c0_i32_1 = arith.constant 0 : i32
    return %c0_i32, %c0_i32_0 : i32, i32
  }
  func.func @transform_4(%arg0: i32, %arg1: i32) -> (i32, i32) {
    %c0_i32 = arith.constant 0 : i32
    %c0_i32_0 = arith.constant 0 : i32
    return %arg0, %c0_i32 : i32, i32
  }
}

module attributes {stable_mosaic.version = 11 : i64} {
  func.func @_max_pool_kernel(%arg0: i32, %arg1: memref<128x16xbf16, #tpu.memory_space<vmem>>, %arg2: memref<128x16xbf16, #tpu.memory_space<vmem>>, %arg3: memref<128x16xbf16, #tpu.memory_space<vmem>>, %arg4: memref<128x16xbf16, #tpu.memory_space<vmem>>, %arg5: memref<128x16xbf16, #tpu.memory_space<vmem>>, %arg6: memref<128x16xbf16, #tpu.memory_space<vmem>>, %arg7: memref<128x16xbf16, #tpu.memory_space<vmem>>, %arg8: memref<128x16xbf16, #tpu.memory_space<vmem>>, %arg9: memref<128x16xbf16, #tpu.memory_space<vmem>>, %arg10: memref<128x16xbf16, #tpu.memory_space<vmem>>) attributes {dimension_semantics = [#tpu.dimension_semantics<parallel>], iteration_bounds = array<i64: 1>, scalar_prefetch = 0 : i64, scratch_operands = 0 : i64, tpu.core_type = #tpu.core_type<tc>, window_params = [{transform_indices = @transform_0, window_bounds = array<i64: 128, 16>}, {transform_indices = @transform_1, window_bounds = array<i64: 128, 16>}, {transform_indices = @transform_2, window_bounds = array<i64: 128, 16>}, {transform_indices = @transform_3, window_bounds = array<i64: 128, 16>}, {transform_indices = @transform_4, window_bounds = array<i64: 128, 16>}, {transform_indices = @transform_5, window_bounds = array<i64: 128, 16>}, {transform_indices = @transform_6, window_bounds = array<i64: 128, 16>}, {transform_indices = @transform_7, window_bounds = array<i64: 128, 16>}, {transform_indices = @transform_8, window_bounds = array<i64: 128, 16>}, {transform_indices = @transform_9, window_bounds = array<i64: 128, 16>}]} {
    %c0 = arith.constant 0 : index
    %c0_0 = arith.constant 0 : index
    %0 = vector.load %arg1[%c0, %c0_0] : memref<128x16xbf16, #tpu.memory_space<vmem>>, vector<128x16xbf16>
    %c0_1 = arith.constant 0 : index
    %c0_2 = arith.constant 0 : index
    %1 = vector.load %arg2[%c0_1, %c0_2] : memref<128x16xbf16, #tpu.memory_space<vmem>>, vector<128x16xbf16>
    %2 = arith.maximumf %0, %1 : vector<128x16xbf16>
    %c0_3 = arith.constant 0 : index
    %c0_4 = arith.constant 0 : index
    %3 = vector.load %arg3[%c0_3, %c0_4] : memref<128x16xbf16, #tpu.memory_space<vmem>>, vector<128x16xbf16>
    %4 = arith.maximumf %2, %3 : vector<128x16xbf16>
    %c0_5 = arith.constant 0 : index
    %c0_6 = arith.constant 0 : index
    %5 = vector.load %arg4[%c0_5, %c0_6] : memref<128x16xbf16, #tpu.memory_space<vmem>>, vector<128x16xbf16>
    %6 = arith.maximumf %4, %5 : vector<128x16xbf16>
    %c0_7 = arith.constant 0 : index
    %c0_8 = arith.constant 0 : index
    %7 = vector.load %arg5[%c0_7, %c0_8] : memref<128x16xbf16, #tpu.memory_space<vmem>>, vector<128x16xbf16>
    %8 = arith.maximumf %6, %7 : vector<128x16xbf16>
    %c0_9 = arith.constant 0 : index
    %c0_10 = arith.constant 0 : index
    %9 = vector.load %arg6[%c0_9, %c0_10] : memref<128x16xbf16, #tpu.memory_space<vmem>>, vector<128x16xbf16>
    %10 = arith.maximumf %8, %9 : vector<128x16xbf16>
    %c0_11 = arith.constant 0 : index
    %c0_12 = arith.constant 0 : index
    %11 = vector.load %arg7[%c0_11, %c0_12] : memref<128x16xbf16, #tpu.memory_space<vmem>>, vector<128x16xbf16>
    %12 = arith.maximumf %10, %11 : vector<128x16xbf16>
    %c0_13 = arith.constant 0 : index
    %c0_14 = arith.constant 0 : index
    %13 = vector.load %arg8[%c0_13, %c0_14] : memref<128x16xbf16, #tpu.memory_space<vmem>>, vector<128x16xbf16>
    %14 = arith.maximumf %12, %13 : vector<128x16xbf16>
    %c0_15 = arith.constant 0 : index
    %c0_16 = arith.constant 0 : index
    %15 = vector.load %arg9[%c0_15, %c0_16] : memref<128x16xbf16, #tpu.memory_space<vmem>>, vector<128x16xbf16>
    %16 = arith.maximumf %14, %15 : vector<128x16xbf16>
    %c0_17 = arith.constant 0 : index
    %c0_18 = arith.constant 0 : index
    %17 = vector.load %arg10[%c0_17, %c0_18] : memref<128x16xbf16, #tpu.memory_space<vmem>>, vector<128x16xbf16>
    tpu.vector_store %arg10[%c0_17, %c0_18], %16 {strides = array<i32>} : memref<128x16xbf16, #tpu.memory_space<vmem>>, vector<128x16xbf16>,
    return
  }
  func.func @transform_0(%arg0: i32) -> (i32, i32) {
    %c0_i32 = arith.constant 0 : i32
    %c0_i32_0 = arith.constant 0 : i32
    return %arg0, %c0_i32 : i32, i32
  }
  func.func @transform_1(%arg0: i32) -> (i32, i32) {
    %c0_i32 = arith.constant 0 : i32
    %c0_i32_0 = arith.constant 0 : i32
    return %arg0, %c0_i32 : i32, i32
  }
  func.func @transform_2(%arg0: i32) -> (i32, i32) {
    %c0_i32 = arith.constant 0 : i32
    %c0_i32_0 = arith.constant 0 : i32
    return %arg0, %c0_i32 : i32, i32
  }
  func.func @transform_3(%arg0: i32) -> (i32, i32) {
    %c0_i32 = arith.constant 0 : i32
    %c0_i32_0 = arith.constant 0 : i32
    return %arg0, %c0_i32 : i32, i32
  }
  func.func @transform_4(%arg0: i32) -> (i32, i32) {
    %c0_i32 = arith.constant 0 : i32
    %c0_i32_0 = arith.constant 0 : i32
    return %arg0, %c0_i32 : i32, i32
  }
  func.func @transform_5(%arg0: i32) -> (i32, i32) {
    %c0_i32 = arith.constant 0 : i32
    %c0_i32_0 = arith.constant 0 : i32
    return %arg0, %c0_i32 : i32, i32
  }
  func.func @transform_6(%arg0: i32) -> (i32, i32) {
    %c0_i32 = arith.constant 0 : i32
    %c0_i32_0 = arith.constant 0 : i32
    return %arg0, %c0_i32 : i32, i32
  }
  func.func @transform_7(%arg0: i32) -> (i32, i32) {
    %c0_i32 = arith.constant 0 : i32
    %c0_i32_0 = arith.constant 0 : i32
    return %arg0, %c0_i32 : i32, i32
  }
  func.func @transform_8(%arg0: i32) -> (i32, i32) {
    %c0_i32 = arith.constant 0 : i32
    %c0_i32_0 = arith.constant 0 : i32
    return %arg0, %c0_i32 : i32, i32
  }
  func.func @transform_9(%arg0: i32) -> (i32, i32) {
    %c0_i32 = arith.constant 0 : i32
    %c0_i32_0 = arith.constant 0 : i32
    return %arg0, %c0_i32 : i32, i32
  }
}

module attributes {stable_mosaic.version = 11 : i64} {
  func.func @_matmul_fused_kernel(%arg0: i32, %arg1: i32, %arg2: memref<128x16xbf16, #tpu.memory_space<vmem>>, %arg3: memref<16x128xbf16, #tpu.memory_space<vmem>>, %arg4: memref<1x16xf32, #tpu.memory_space<vmem>>, %arg5: memref<1x16xf32, #tpu.memory_space<vmem>>, %arg6: memref<1x128xf32, #tpu.memory_space<vmem>>, %arg7: memref<1x128xf32, #tpu.memory_space<vmem>>, %arg8: memref<128x128xbf16, #tpu.memory_space<vmem>>, %arg9: memref<128x128xf32, #tpu.memory_space<vmem>>) attributes {dimension_semantics = [#tpu.dimension_semantics<parallel>, #tpu.dimension_semantics<arbitrary>], iteration_bounds = array<i64: 1, 1>, scalar_prefetch = 0 : i64, scratch_operands = 1 : i64, tpu.core_type = #tpu.core_type<tc>, window_params = [{transform_indices = @transform_0, window_bounds = array<i64: 128, 16>}, {transform_indices = @transform_1, window_bounds = array<i64: 16, 128>}, {transform_indices = @transform_2, window_bounds = array<i64: 1, 16>}, {transform_indices = @transform_3, window_bounds = array<i64: 1, 16>}, {pipeline_mode = #tpu.pipeline_mode<synchronous>, transform_indices = @transform_4, window_bounds = array<i64: 1, 128>}, {pipeline_mode = #tpu.pipeline_mode<synchronous>, transform_indices = @transform_5, window_bounds = array<i64: 1, 128>}, {transform_indices = @transform_6, window_bounds = array<i64: 128, 128>}]} {
    %c0_i32 = arith.constant 0 : i32
    %0 = arith.cmpi eq, %arg1, %c0_i32 : i32
    %1 = arith.extui %0 : i1 to i32
    %c0_i32_0 = arith.constant 0 : i32
    %2 = arith.cmpi ne, %1, %c0_i32_0 : i32
    scf.if %2 {
      %cst_15 = arith.constant 0.000000e+00 : f32
      %22 = vector.broadcast %cst_15 : f32 to vector<128x128xf32>
      %c0_16 = arith.constant 0 : index
      %c0_17 = arith.constant 0 : index
      %23 = vector.load %arg9[%c0_16, %c0_17] : memref<128x128xf32, #tpu.memory_space<vmem>>, vector<128x128xf32>
      tpu.vector_store %arg9[%c0_16, %c0_17], %22 {strides = array<i32>} : memref<128x128xf32, #tpu.memory_space<vmem>>, vector<128x128xf32>,
    } else {
    }
    %c0 = arith.constant 0 : index
    %c0_1 = arith.constant 0 : index
    %3 = vector.load %arg2[%c0, %c0_1] : memref<128x16xbf16, #tpu.memory_space<vmem>>, vector<128x16xbf16>
    %4 = arith.extf %3 : vector<128x16xbf16> to vector<128x16xf32>
    %c0_2 = arith.constant 0 : index
    %c0_3 = arith.constant 0 : index
    %5 = vector.load %arg4[%c0_2, %c0_3] : memref<1x16xf32, #tpu.memory_space<vmem>>, vector<1x16xf32>
    %6 = vector.broadcast %5 : vector<1x16xf32> to vector<128x16xf32>
    %7 = arith.mulf %4, %6 : vector<128x16xf32>
    %c0_4 = arith.constant 0 : index
    %c0_5 = arith.constant 0 : index
    %8 = vector.load %arg5[%c0_4, %c0_5] : memref<1x16xf32, #tpu.memory_space<vmem>>, vector<1x16xf32>
    %9 = vector.broadcast %8 : vector<1x16xf32> to vector<128x16xf32>
    %10 = arith.addf %7, %9 : vector<128x16xf32>
    %cst = arith.constant 0.000000e+00 : f32
    %11 = vector.broadcast %cst : f32 to vector<128x16xf32>
    %12 = arith.maximumf %10, %11 : vector<128x16xf32>
    %13 = arith.truncf %12 : vector<128x16xf32> to vector<128x16xbf16>
    %c0_6 = arith.constant 0 : index
    %c0_7 = arith.constant 0 : index
    %14 = vector.load %arg9[%c0_6, %c0_7] : memref<128x128xf32, #tpu.memory_space<vmem>>, vector<128x128xf32>
    %c0_8 = arith.constant 0 : index
    %c0_9 = arith.constant 0 : index
    %15 = vector.load %arg3[%c0_8, %c0_9] : memref<16x128xbf16, #tpu.memory_space<vmem>>, vector<16x128xbf16>
    %cst_10 = arith.constant dense<0.000000e+00> : vector<128x128xf32>
    %16 = tpu.matmul %13, %15, %cst_10 {dimension_numbers = #tpu.dot_dimension_numbers<[1], [0], [0], [1], [0, 0, 1, 1], [], []>} : vector<128x16xbf16>, vector<16x128xbf16>, vector<128x128xf32> -> vector<128x128xf32>
    %17 = arith.addf %14, %16 : vector<128x128xf32>
    %c0_11 = arith.constant 0 : index
    %c0_12 = arith.constant 0 : index
    %18 = vector.load %arg9[%c0_11, %c0_12] : memref<128x128xf32, #tpu.memory_space<vmem>>, vector<128x128xf32>
    tpu.vector_store %arg9[%c0_11, %c0_12], %17 {strides = array<i32>} : memref<128x128xf32, #tpu.memory_space<vmem>>, vector<128x128xf32>,
    %c0_i32_13 = arith.constant 0 : i32
    %19 = arith.cmpi eq, %arg1, %c0_i32_13 : i32
    %20 = arith.extui %19 : i1 to i32
    %c0_i32_14 = arith.constant 0 : i32
    %21 = arith.cmpi ne, %20, %c0_i32_14 : i32
    scf.if %21 {
      %c0_15 = arith.constant 0 : index
      %c0_16 = arith.constant 0 : index
      %22 = vector.load %arg9[%c0_15, %c0_16] : memref<128x128xf32, #tpu.memory_space<vmem>>, vector<128x128xf32>
      %c0_17 = arith.constant 0 : index
      %c0_18 = arith.constant 0 : index
      %23 = vector.load %arg6[%c0_17, %c0_18] : memref<1x128xf32, #tpu.memory_space<vmem>>, vector<1x128xf32>
      %24 = vector.broadcast %23 : vector<1x128xf32> to vector<128x128xf32>
      %25 = arith.mulf %22, %24 : vector<128x128xf32>
      %c0_19 = arith.constant 0 : index
      %c0_20 = arith.constant 0 : index
      %26 = vector.load %arg7[%c0_19, %c0_20] : memref<1x128xf32, #tpu.memory_space<vmem>>, vector<1x128xf32>
      %27 = vector.broadcast %26 : vector<1x128xf32> to vector<128x128xf32>
      %28 = arith.addf %25, %27 : vector<128x128xf32>
      %cst_21 = arith.constant 0.000000e+00 : f32
      %29 = vector.broadcast %cst_21 : f32 to vector<128x128xf32>
      %30 = arith.maximumf %28, %29 : vector<128x128xf32>
      %31 = arith.truncf %30 : vector<128x128xf32> to vector<128x128xbf16>
      %c0_22 = arith.constant 0 : index
      %c0_23 = arith.constant 0 : index
      %32 = vector.load %arg8[%c0_22, %c0_23] : memref<128x128xbf16, #tpu.memory_space<vmem>>, vector<128x128xbf16>
      tpu.vector_store %arg8[%c0_22, %c0_23], %31 {strides = array<i32>} : memref<128x128xbf16, #tpu.memory_space<vmem>>, vector<128x128xbf16>,
    } else {
    }
    return
  }
  func.func @transform_0(%arg0: i32, %arg1: i32) -> (i32, i32) {
    %c0_i32 = arith.constant 0 : i32
    return %arg0, %arg1 : i32, i32
  }
  func.func @transform_1(%arg0: i32, %arg1: i32) -> (i32, i32) {
    %c0_i32 = arith.constant 0 : i32
    %c0_i32_0 = arith.constant 0 : i32
    return %arg1, %c0_i32 : i32, i32
  }
  func.func @transform_2(%arg0: i32, %arg1: i32) -> (i32, i32) {
    %c0_i32 = arith.constant 0 : i32
    %c0_i32_0 = arith.constant 0 : i32
    return %c0_i32, %arg1 : i32, i32
  }
  func.func @transform_3(%arg0: i32, %arg1: i32) -> (i32, i32) {
    %c0_i32 = arith.constant 0 : i32
    %c0_i32_0 = arith.constant 0 : i32
    return %c0_i32, %arg1 : i32, i32
  }
  func.func @transform_4(%arg0: i32, %arg1: i32) -> (i32, i32) {
    %c0_i32 = arith.constant 0 : i32
    %c0_i32_0 = arith.constant 0 : i32
    %c0_i32_1 = arith.constant 0 : i32
    return %c0_i32, %c0_i32_0 : i32, i32
  }
  func.func @transform_5(%arg0: i32, %arg1: i32) -> (i32, i32) {
    %c0_i32 = arith.constant 0 : i32
    %c0_i32_0 = arith.constant 0 : i32
    %c0_i32_1 = arith.constant 0 : i32
    return %c0_i32, %c0_i32_0 : i32, i32
  }
  func.func @transform_6(%arg0: i32, %arg1: i32) -> (i32, i32) {
    %c0_i32 = arith.constant 0 : i32
    %c0_i32_0 = arith.constant 0 : i32
    return %arg0, %c0_i32 : i32, i32
  }
}

module attributes {stable_mosaic.version = 11 : i64} {
  func.func @_conv3x3_kernel(%arg0: i32, %arg1: memref<1x110x128xbf16, #tpu.memory_space<vmem>>, %arg2: memref<9x128x128xbf16, #tpu.memory_space<vmem>>, %arg3: memref<1x80x128xbf16, #tpu.memory_space<vmem>>, %arg4: memref<80x128xf32, #tpu.memory_space<vmem>>) attributes {dimension_semantics = [#tpu.dimension_semantics<parallel>], iteration_bounds = array<i64: 2>, scalar_prefetch = 0 : i64, scratch_operands = 1 : i64, tpu.core_type = #tpu.core_type<tc>, window_params = [{transform_indices = @transform_0, window_bounds = array<i64: 1, 110, 128>}, {pipeline_mode = #tpu.pipeline_mode<synchronous>, transform_indices = @transform_1, window_bounds = array<i64: 9, 128, 128>}, {transform_indices = @transform_2, window_bounds = array<i64: 1, 80, 128>}]} {
    %c0 = arith.constant 0 : index
    %c0_0 = arith.constant 0 : index
    %c0_1 = arith.constant 0 : index
    %0 = vector.load %arg1[%c0, %c0_0, %c0_1] : memref<1x110x128xbf16, #tpu.memory_space<vmem>>, vector<1x80x128xbf16>
    %1 = vector.shape_cast %0 : vector<1x80x128xbf16> to vector<80x128xbf16>
    %c0_2 = arith.constant 0 : index
    %c0_3 = arith.constant 0 : index
    %c0_4 = arith.constant 0 : index
    %2 = vector.load %arg2[%c0_2, %c0_3, %c0_4] : memref<9x128x128xbf16, #tpu.memory_space<vmem>>, vector<1x128x128xbf16>
    %3 = vector.shape_cast %2 : vector<1x128x128xbf16> to vector<128x128xbf16>
    %cst = arith.constant dense<0.000000e+00> : vector<80x128xf32>
    %4 = tpu.matmul %1, %3, %cst {dimension_numbers = #tpu.dot_dimension_numbers<[1], [0], [0], [1], [0, 0, 1, 1], [], []>} : vector<80x128xbf16>, vector<128x128xbf16>, vector<80x128xf32> -> vector<80x128xf32>
    %c0_5 = arith.constant 0 : index
    %c0_6 = arith.constant 0 : index
    %5 = vector.load %arg4[%c0_5, %c0_6] : memref<80x128xf32, #tpu.memory_space<vmem>>, vector<80x128xf32>
    tpu.vector_store %arg4[%c0_5, %c0_6], %4 {strides = array<i32>} : memref<80x128xf32, #tpu.memory_space<vmem>>, vector<80x128xf32>,
    %c0_7 = arith.constant 0 : index
    %c1 = arith.constant 1 : index
    %c0_8 = arith.constant 0 : index
    %6 = vector.load %arg1[%c0_7, %c1, %c0_8] : memref<1x110x128xbf16, #tpu.memory_space<vmem>>, vector<1x80x128xbf16>
    %7 = vector.shape_cast %6 : vector<1x80x128xbf16> to vector<80x128xbf16>
    %c1_9 = arith.constant 1 : index
    %c0_10 = arith.constant 0 : index
    %c0_11 = arith.constant 0 : index
    %8 = vector.load %arg2[%c1_9, %c0_10, %c0_11] : memref<9x128x128xbf16, #tpu.memory_space<vmem>>, vector<1x128x128xbf16>
    %9 = vector.shape_cast %8 : vector<1x128x128xbf16> to vector<128x128xbf16>
    %cst_12 = arith.constant dense<0.000000e+00> : vector<80x128xf32>
    %10 = tpu.matmul %7, %9, %cst_12 {dimension_numbers = #tpu.dot_dimension_numbers<[1], [0], [0], [1], [0, 0, 1, 1], [], []>} : vector<80x128xbf16>, vector<128x128xbf16>, vector<80x128xf32> -> vector<80x128xf32>
    %c0_13 = arith.constant 0 : index
    %c0_14 = arith.constant 0 : index
    %11 = vector.load %arg4[%c0_13, %c0_14] : memref<80x128xf32, #tpu.memory_space<vmem>>, vector<80x128xf32>
    %12 = arith.addf %11, %10 : vector<80x128xf32>
    %c0_15 = arith.constant 0 : index
    %c0_16 = arith.constant 0 : index
    %13 = vector.load %arg4[%c0_15, %c0_16] : memref<80x128xf32, #tpu.memory_space<vmem>>, vector<80x128xf32>
    tpu.vector_store %arg4[%c0_15, %c0_16], %12 {strides = array<i32>} : memref<80x128xf32, #tpu.memory_space<vmem>>, vector<80x128xf32>,
    %c0_17 = arith.constant 0 : index
    %c2 = arith.constant 2 : index
    %c0_18 = arith.constant 0 : index
    %14 = vector.load %arg1[%c0_17, %c2, %c0_18] : memref<1x110x128xbf16, #tpu.memory_space<vmem>>, vector<1x80x128xbf16>
    %15 = vector.shape_cast %14 : vector<1x80x128xbf16> to vector<80x128xbf16>
    %c2_19 = arith.constant 2 : index
    %c0_20 = arith.constant 0 : index
    %c0_21 = arith.constant 0 : index
    %16 = vector.load %arg2[%c2_19, %c0_20, %c0_21] : memref<9x128x128xbf16, #tpu.memory_space<vmem>>, vector<1x128x128xbf16>
    %17 = vector.shape_cast %16 : vector<1x128x128xbf16> to vector<128x128xbf16>
    %cst_22 = arith.constant dense<0.000000e+00> : vector<80x128xf32>
    %18 = tpu.matmul %15, %17, %cst_22 {dimension_numbers = #tpu.dot_dimension_numbers<[1], [0], [0], [1], [0, 0, 1, 1], [], []>} : vector<80x128xbf16>, vector<128x128xbf16>, vector<80x128xf32> -> vector<80x128xf32>
    %c0_23 = arith.constant 0 : index
    %c0_24 = arith.constant 0 : index
    %19 = vector.load %arg4[%c0_23, %c0_24] : memref<80x128xf32, #tpu.memory_space<vmem>>, vector<80x128xf32>
    %20 = arith.addf %19, %18 : vector<80x128xf32>
    %c0_25 = arith.constant 0 : index
    %c0_26 = arith.constant 0 : index
    %21 = vector.load %arg4[%c0_25, %c0_26] : memref<80x128xf32, #tpu.memory_space<vmem>>, vector<80x128xf32>
    tpu.vector_store %arg4[%c0_25, %c0_26], %20 {strides = array<i32>} : memref<80x128xf32, #tpu.memory_space<vmem>>, vector<80x128xf32>,
    %c0_27 = arith.constant 0 : index
    %c10 = arith.constant 10 : index
    %c0_28 = arith.constant 0 : index
    %22 = vector.load %arg1[%c0_27, %c10, %c0_28] : memref<1x110x128xbf16, #tpu.memory_space<vmem>>, vector<1x80x128xbf16>
    %23 = vector.shape_cast %22 : vector<1x80x128xbf16> to vector<80x128xbf16>
    %c3 = arith.constant 3 : index
    %c0_29 = arith.constant 0 : index
    %c0_30 = arith.constant 0 : index
    %24 = vector.load %arg2[%c3, %c0_29, %c0_30] : memref<9x128x128xbf16, #tpu.memory_space<vmem>>, vector<1x128x128xbf16>
    %25 = vector.shape_cast %24 : vector<1x128x128xbf16> to vector<128x128xbf16>
    %cst_31 = arith.constant dense<0.000000e+00> : vector<80x128xf32>
    %26 = tpu.matmul %23, %25, %cst_31 {dimension_numbers = #tpu.dot_dimension_numbers<[1], [0], [0], [1], [0, 0, 1, 1], [], []>} : vector<80x128xbf16>, vector<128x128xbf16>, vector<80x128xf32> -> vector<80x128xf32>
    %c0_32 = arith.constant 0 : index
    %c0_33 = arith.constant 0 : index
    %27 = vector.load %arg4[%c0_32, %c0_33] : memref<80x128xf32, #tpu.memory_space<vmem>>, vector<80x128xf32>
    %28 = arith.addf %27, %26 : vector<80x128xf32>
    %c0_34 = arith.constant 0 : index
    %c0_35 = arith.constant 0 : index
    %29 = vector.load %arg4[%c0_34, %c0_35] : memref<80x128xf32, #tpu.memory_space<vmem>>, vector<80x128xf32>
    tpu.vector_store %arg4[%c0_34, %c0_35], %28 {strides = array<i32>} : memref<80x128xf32, #tpu.memory_space<vmem>>, vector<80x128xf32>,
    %c0_36 = arith.constant 0 : index
    %c11 = arith.constant 11 : index
    %c0_37 = arith.constant 0 : index
    %30 = vector.load %arg1[%c0_36, %c11, %c0_37] : memref<1x110x128xbf16, #tpu.memory_space<vmem>>, vector<1x80x128xbf16>
    %31 = vector.shape_cast %30 : vector<1x80x128xbf16> to vector<80x128xbf16>
    %c4 = arith.constant 4 : index
    %c0_38 = arith.constant 0 : index
    %c0_39 = arith.constant 0 : index
    %32 = vector.load %arg2[%c4, %c0_38, %c0_39] : memref<9x128x128xbf16, #tpu.memory_space<vmem>>, vector<1x128x128xbf16>
    %33 = vector.shape_cast %32 : vector<1x128x128xbf16> to vector<128x128xbf16>
    %cst_40 = arith.constant dense<0.000000e+00> : vector<80x128xf32>
    %34 = tpu.matmul %31, %33, %cst_40 {dimension_numbers = #tpu.dot_dimension_numbers<[1], [0], [0], [1], [0, 0, 1, 1], [], []>} : vector<80x128xbf16>, vector<128x128xbf16>, vector<80x128xf32> -> vector<80x128xf32>
    %c0_41 = arith.constant 0 : index
    %c0_42 = arith.constant 0 : index
    %35 = vector.load %arg4[%c0_41, %c0_42] : memref<80x128xf32, #tpu.memory_space<vmem>>, vector<80x128xf32>
    %36 = arith.addf %35, %34 : vector<80x128xf32>
    %c0_43 = arith.constant 0 : index
    %c0_44 = arith.constant 0 : index
    %37 = vector.load %arg4[%c0_43, %c0_44] : memref<80x128xf32, #tpu.memory_space<vmem>>, vector<80x128xf32>
    tpu.vector_store %arg4[%c0_43, %c0_44], %36 {strides = array<i32>} : memref<80x128xf32, #tpu.memory_space<vmem>>, vector<80x128xf32>,
    %c0_45 = arith.constant 0 : index
    %c12 = arith.constant 12 : index
    %c0_46 = arith.constant 0 : index
    %38 = vector.load %arg1[%c0_45, %c12, %c0_46] : memref<1x110x128xbf16, #tpu.memory_space<vmem>>, vector<1x80x128xbf16>
    %39 = vector.shape_cast %38 : vector<1x80x128xbf16> to vector<80x128xbf16>
    %c5 = arith.constant 5 : index
    %c0_47 = arith.constant 0 : index
    %c0_48 = arith.constant 0 : index
    %40 = vector.load %arg2[%c5, %c0_47, %c0_48] : memref<9x128x128xbf16, #tpu.memory_space<vmem>>, vector<1x128x128xbf16>
    %41 = vector.shape_cast %40 : vector<1x128x128xbf16> to vector<128x128xbf16>
    %cst_49 = arith.constant dense<0.000000e+00> : vector<80x128xf32>
    %42 = tpu.matmul %39, %41, %cst_49 {dimension_numbers = #tpu.dot_dimension_numbers<[1], [0], [0], [1], [0, 0, 1, 1], [], []>} : vector<80x128xbf16>, vector<128x128xbf16>, vector<80x128xf32> -> vector<80x128xf32>
    %c0_50 = arith.constant 0 : index
    %c0_51 = arith.constant 0 : index
    %43 = vector.load %arg4[%c0_50, %c0_51] : memref<80x128xf32, #tpu.memory_space<vmem>>, vector<80x128xf32>
    %44 = arith.addf %43, %42 : vector<80x128xf32>
    %c0_52 = arith.constant 0 : index
    %c0_53 = arith.constant 0 : index
    %45 = vector.load %arg4[%c0_52, %c0_53] : memref<80x128xf32, #tpu.memory_space<vmem>>, vector<80x128xf32>
    tpu.vector_store %arg4[%c0_52, %c0_53], %44 {strides = array<i32>} : memref<80x128xf32, #tpu.memory_space<vmem>>, vector<80x128xf32>,
    %c0_54 = arith.constant 0 : index
    %c20 = arith.constant 20 : index
    %c0_55 = arith.constant 0 : index
    %46 = vector.load %arg1[%c0_54, %c20, %c0_55] : memref<1x110x128xbf16, #tpu.memory_space<vmem>>, vector<1x80x128xbf16>
    %47 = vector.shape_cast %46 : vector<1x80x128xbf16> to vector<80x128xbf16>
    %c6 = arith.constant 6 : index
    %c0_56 = arith.constant 0 : index
    %c0_57 = arith.constant 0 : index
    %48 = vector.load %arg2[%c6, %c0_56, %c0_57] : memref<9x128x128xbf16, #tpu.memory_space<vmem>>, vector<1x128x128xbf16>
    %49 = vector.shape_cast %48 : vector<1x128x128xbf16> to vector<128x128xbf16>
    %cst_58 = arith.constant dense<0.000000e+00> : vector<80x128xf32>
    %50 = tpu.matmul %47, %49, %cst_58 {dimension_numbers = #tpu.dot_dimension_numbers<[1], [0], [0], [1], [0, 0, 1, 1], [], []>} : vector<80x128xbf16>, vector<128x128xbf16>, vector<80x128xf32> -> vector<80x128xf32>
    %c0_59 = arith.constant 0 : index
    %c0_60 = arith.constant 0 : index
    %51 = vector.load %arg4[%c0_59, %c0_60] : memref<80x128xf32, #tpu.memory_space<vmem>>, vector<80x128xf32>
    %52 = arith.addf %51, %50 : vector<80x128xf32>
    %c0_61 = arith.constant 0 : index
    %c0_62 = arith.constant 0 : index
    %53 = vector.load %arg4[%c0_61, %c0_62] : memref<80x128xf32, #tpu.memory_space<vmem>>, vector<80x128xf32>
    tpu.vector_store %arg4[%c0_61, %c0_62], %52 {strides = array<i32>} : memref<80x128xf32, #tpu.memory_space<vmem>>, vector<80x128xf32>,
    %c0_63 = arith.constant 0 : index
    %c21 = arith.constant 21 : index
    %c0_64 = arith.constant 0 : index
    %54 = vector.load %arg1[%c0_63, %c21, %c0_64] : memref<1x110x128xbf16, #tpu.memory_space<vmem>>, vector<1x80x128xbf16>
    %55 = vector.shape_cast %54 : vector<1x80x128xbf16> to vector<80x128xbf16>
    %c7 = arith.constant 7 : index
    %c0_65 = arith.constant 0 : index
    %c0_66 = arith.constant 0 : index
    %56 = vector.load %arg2[%c7, %c0_65, %c0_66] : memref<9x128x128xbf16, #tpu.memory_space<vmem>>, vector<1x128x128xbf16>
    %57 = vector.shape_cast %56 : vector<1x128x128xbf16> to vector<128x128xbf16>
    %cst_67 = arith.constant dense<0.000000e+00> : vector<80x128xf32>
    %58 = tpu.matmul %55, %57, %cst_67 {dimension_numbers = #tpu.dot_dimension_numbers<[1], [0], [0], [1], [0, 0, 1, 1], [], []>} : vector<80x128xbf16>, vector<128x128xbf16>, vector<80x128xf32> -> vector<80x128xf32>
    %c0_68 = arith.constant 0 : index
    %c0_69 = arith.constant 0 : index
    %59 = vector.load %arg4[%c0_68, %c0_69] : memref<80x128xf32, #tpu.memory_space<vmem>>, vector<80x128xf32>
    %60 = arith.addf %59, %58 : vector<80x128xf32>
    %c0_70 = arith.constant 0 : index
    %c0_71 = arith.constant 0 : index
    %61 = vector.load %arg4[%c0_70, %c0_71] : memref<80x128xf32, #tpu.memory_space<vmem>>, vector<80x128xf32>
    tpu.vector_store %arg4[%c0_70, %c0_71], %60 {strides = array<i32>} : memref<80x128xf32, #tpu.memory_space<vmem>>, vector<80x128xf32>,
    %c0_72 = arith.constant 0 : index
    %c22 = arith.constant 22 : index
    %c0_73 = arith.constant 0 : index
    %62 = vector.load %arg1[%c0_72, %c22, %c0_73] : memref<1x110x128xbf16, #tpu.memory_space<vmem>>, vector<1x80x128xbf16>
    %63 = vector.shape_cast %62 : vector<1x80x128xbf16> to vector<80x128xbf16>
    %c8 = arith.constant 8 : index
    %c0_74 = arith.constant 0 : index
    %c0_75 = arith.constant 0 : index
    %64 = vector.load %arg2[%c8, %c0_74, %c0_75] : memref<9x128x128xbf16, #tpu.memory_space<vmem>>, vector<1x128x128xbf16>
    %65 = vector.shape_cast %64 : vector<1x128x128xbf16> to vector<128x128xbf16>
    %cst_76 = arith.constant dense<0.000000e+00> : vector<80x128xf32>
    %66 = tpu.matmul %63, %65, %cst_76 {dimension_numbers = #tpu.dot_dimension_numbers<[1], [0], [0], [1], [0, 0, 1, 1], [], []>} : vector<80x128xbf16>, vector<128x128xbf16>, vector<80x128xf32> -> vector<80x128xf32>
    %c0_77 = arith.constant 0 : index
    %c0_78 = arith.constant 0 : index
    %67 = vector.load %arg4[%c0_77, %c0_78] : memref<80x128xf32, #tpu.memory_space<vmem>>, vector<80x128xf32>
    %68 = arith.addf %67, %66 : vector<80x128xf32>
    %c0_79 = arith.constant 0 : index
    %c0_80 = arith.constant 0 : index
    %69 = vector.load %arg4[%c0_79, %c0_80] : memref<80x128xf32, #tpu.memory_space<vmem>>, vector<80x128xf32>
    tpu.vector_store %arg4[%c0_79, %c0_80], %68 {strides = array<i32>} : memref<80x128xf32, #tpu.memory_space<vmem>>, vector<80x128xf32>,
    %c0_81 = arith.constant 0 : index
    %c0_82 = arith.constant 0 : index
    %70 = vector.load %arg4[%c0_81, %c0_82] : memref<80x128xf32, #tpu.memory_space<vmem>>, vector<80x128xf32>
    %71 = arith.truncf %70 : vector<80x128xf32> to vector<80x128xbf16>
    %c0_83 = arith.constant 0 : index
    %c0_84 = arith.constant 0 : index
    %c0_85 = arith.constant 0 : index
    %72 = vector.load %arg3[%c0_83, %c0_84, %c0_85] : memref<1x80x128xbf16, #tpu.memory_space<vmem>>, vector<1x80x128xbf16>
    %73 = vector.shape_cast %72 : vector<1x80x128xbf16> to vector<80x128xbf16>
    %74 = vector.shape_cast %71 : vector<80x128xbf16> to vector<1x80x128xbf16>
    tpu.vector_store %arg3[%c0_83, %c0_84, %c0_85], %74 {strides = array<i32>} : memref<1x80x128xbf16, #tpu.memory_space<vmem>>, vector<1x80x128xbf16>,
    return
  }
  func.func @transform_0(%arg0: i32) -> (i32, i32, i32) {
    %c0_i32 = arith.constant 0 : i32
    %c0_i32_0 = arith.constant 0 : i32
    %c0_i32_1 = arith.constant 0 : i32
    return %arg0, %c0_i32, %c0_i32_0 : i32, i32, i32
  }
  func.func @transform_1(%arg0: i32) -> (i32, i32, i32) {
    %c0_i32 = arith.constant 0 : i32
    %c0_i32_0 = arith.constant 0 : i32
    %c0_i32_1 = arith.constant 0 : i32
    %c0_i32_2 = arith.constant 0 : i32
    return %c0_i32, %c0_i32_0, %c0_i32_1 : i32, i32, i32
  }
  func.func @transform_2(%arg0: i32) -> (i32, i32, i32) {
    %c0_i32 = arith.constant 0 : i32
    %c0_i32_0 = arith.constant 0 : i32
    %c0_i32_1 = arith.constant 0 : i32
    return %arg0, %c0_i32, %c0_i32_0 : i32, i32, i32
  }
}

module attributes {stable_mosaic.version = 11 : i64} {
  func.func @_matmul_fused_kernel(%arg0: i32, %arg1: i32, %arg2: memref<128x24xbf16, #tpu.memory_space<vmem>>, %arg3: memref<24x128xbf16, #tpu.memory_space<vmem>>, %arg4: memref<1x24xf32, #tpu.memory_space<vmem>>, %arg5: memref<1x24xf32, #tpu.memory_space<vmem>>, %arg6: memref<1x128xf32, #tpu.memory_space<vmem>>, %arg7: memref<1x128xf32, #tpu.memory_space<vmem>>, %arg8: memref<128x128xbf16, #tpu.memory_space<vmem>>, %arg9: memref<128x128xf32, #tpu.memory_space<vmem>>) attributes {dimension_semantics = [#tpu.dimension_semantics<parallel>, #tpu.dimension_semantics<arbitrary>], iteration_bounds = array<i64: 1, 1>, scalar_prefetch = 0 : i64, scratch_operands = 1 : i64, tpu.core_type = #tpu.core_type<tc>, window_params = [{transform_indices = @transform_0, window_bounds = array<i64: 128, 24>}, {transform_indices = @transform_1, window_bounds = array<i64: 24, 128>}, {transform_indices = @transform_2, window_bounds = array<i64: 1, 24>}, {transform_indices = @transform_3, window_bounds = array<i64: 1, 24>}, {pipeline_mode = #tpu.pipeline_mode<synchronous>, transform_indices = @transform_4, window_bounds = array<i64: 1, 128>}, {pipeline_mode = #tpu.pipeline_mode<synchronous>, transform_indices = @transform_5, window_bounds = array<i64: 1, 128>}, {transform_indices = @transform_6, window_bounds = array<i64: 128, 128>}]} {
    %c0_i32 = arith.constant 0 : i32
    %0 = arith.cmpi eq, %arg1, %c0_i32 : i32
    %1 = arith.extui %0 : i1 to i32
    %c0_i32_0 = arith.constant 0 : i32
    %2 = arith.cmpi ne, %1, %c0_i32_0 : i32
    scf.if %2 {
      %cst_15 = arith.constant 0.000000e+00 : f32
      %22 = vector.broadcast %cst_15 : f32 to vector<128x128xf32>
      %c0_16 = arith.constant 0 : index
      %c0_17 = arith.constant 0 : index
      %23 = vector.load %arg9[%c0_16, %c0_17] : memref<128x128xf32, #tpu.memory_space<vmem>>, vector<128x128xf32>
      tpu.vector_store %arg9[%c0_16, %c0_17], %22 {strides = array<i32>} : memref<128x128xf32, #tpu.memory_space<vmem>>, vector<128x128xf32>,
    } else {
    }
    %c0 = arith.constant 0 : index
    %c0_1 = arith.constant 0 : index
    %3 = vector.load %arg2[%c0, %c0_1] : memref<128x24xbf16, #tpu.memory_space<vmem>>, vector<128x24xbf16>
    %4 = arith.extf %3 : vector<128x24xbf16> to vector<128x24xf32>
    %c0_2 = arith.constant 0 : index
    %c0_3 = arith.constant 0 : index
    %5 = vector.load %arg4[%c0_2, %c0_3] : memref<1x24xf32, #tpu.memory_space<vmem>>, vector<1x24xf32>
    %6 = vector.broadcast %5 : vector<1x24xf32> to vector<128x24xf32>
    %7 = arith.mulf %4, %6 : vector<128x24xf32>
    %c0_4 = arith.constant 0 : index
    %c0_5 = arith.constant 0 : index
    %8 = vector.load %arg5[%c0_4, %c0_5] : memref<1x24xf32, #tpu.memory_space<vmem>>, vector<1x24xf32>
    %9 = vector.broadcast %8 : vector<1x24xf32> to vector<128x24xf32>
    %10 = arith.addf %7, %9 : vector<128x24xf32>
    %cst = arith.constant 0.000000e+00 : f32
    %11 = vector.broadcast %cst : f32 to vector<128x24xf32>
    %12 = arith.maximumf %10, %11 : vector<128x24xf32>
    %13 = arith.truncf %12 : vector<128x24xf32> to vector<128x24xbf16>
    %c0_6 = arith.constant 0 : index
    %c0_7 = arith.constant 0 : index
    %14 = vector.load %arg9[%c0_6, %c0_7] : memref<128x128xf32, #tpu.memory_space<vmem>>, vector<128x128xf32>
    %c0_8 = arith.constant 0 : index
    %c0_9 = arith.constant 0 : index
    %15 = vector.load %arg3[%c0_8, %c0_9] : memref<24x128xbf16, #tpu.memory_space<vmem>>, vector<24x128xbf16>
    %cst_10 = arith.constant dense<0.000000e+00> : vector<128x128xf32>
    %16 = tpu.matmul %13, %15, %cst_10 {dimension_numbers = #tpu.dot_dimension_numbers<[1], [0], [0], [1], [0, 0, 1, 1], [], []>} : vector<128x24xbf16>, vector<24x128xbf16>, vector<128x128xf32> -> vector<128x128xf32>
    %17 = arith.addf %14, %16 : vector<128x128xf32>
    %c0_11 = arith.constant 0 : index
    %c0_12 = arith.constant 0 : index
    %18 = vector.load %arg9[%c0_11, %c0_12] : memref<128x128xf32, #tpu.memory_space<vmem>>, vector<128x128xf32>
    tpu.vector_store %arg9[%c0_11, %c0_12], %17 {strides = array<i32>} : memref<128x128xf32, #tpu.memory_space<vmem>>, vector<128x128xf32>,
    %c0_i32_13 = arith.constant 0 : i32
    %19 = arith.cmpi eq, %arg1, %c0_i32_13 : i32
    %20 = arith.extui %19 : i1 to i32
    %c0_i32_14 = arith.constant 0 : i32
    %21 = arith.cmpi ne, %20, %c0_i32_14 : i32
    scf.if %21 {
      %c0_15 = arith.constant 0 : index
      %c0_16 = arith.constant 0 : index
      %22 = vector.load %arg9[%c0_15, %c0_16] : memref<128x128xf32, #tpu.memory_space<vmem>>, vector<128x128xf32>
      %c0_17 = arith.constant 0 : index
      %c0_18 = arith.constant 0 : index
      %23 = vector.load %arg6[%c0_17, %c0_18] : memref<1x128xf32, #tpu.memory_space<vmem>>, vector<1x128xf32>
      %24 = vector.broadcast %23 : vector<1x128xf32> to vector<128x128xf32>
      %25 = arith.mulf %22, %24 : vector<128x128xf32>
      %c0_19 = arith.constant 0 : index
      %c0_20 = arith.constant 0 : index
      %26 = vector.load %arg7[%c0_19, %c0_20] : memref<1x128xf32, #tpu.memory_space<vmem>>, vector<1x128xf32>
      %27 = vector.broadcast %26 : vector<1x128xf32> to vector<128x128xf32>
      %28 = arith.addf %25, %27 : vector<128x128xf32>
      %cst_21 = arith.constant 0.000000e+00 : f32
      %29 = vector.broadcast %cst_21 : f32 to vector<128x128xf32>
      %30 = arith.maximumf %28, %29 : vector<128x128xf32>
      %31 = arith.truncf %30 : vector<128x128xf32> to vector<128x128xbf16>
      %c0_22 = arith.constant 0 : index
      %c0_23 = arith.constant 0 : index
      %32 = vector.load %arg8[%c0_22, %c0_23] : memref<128x128xbf16, #tpu.memory_space<vmem>>, vector<128x128xbf16>
      tpu.vector_store %arg8[%c0_22, %c0_23], %31 {strides = array<i32>} : memref<128x128xbf16, #tpu.memory_space<vmem>>, vector<128x128xbf16>,
    } else {
    }
    return
  }
  func.func @transform_0(%arg0: i32, %arg1: i32) -> (i32, i32) {
    %c0_i32 = arith.constant 0 : i32
    return %arg0, %arg1 : i32, i32
  }
  func.func @transform_1(%arg0: i32, %arg1: i32) -> (i32, i32) {
    %c0_i32 = arith.constant 0 : i32
    %c0_i32_0 = arith.constant 0 : i32
    return %arg1, %c0_i32 : i32, i32
  }
  func.func @transform_2(%arg0: i32, %arg1: i32) -> (i32, i32) {
    %c0_i32 = arith.constant 0 : i32
    %c0_i32_0 = arith.constant 0 : i32
    return %c0_i32, %arg1 : i32, i32
  }
  func.func @transform_3(%arg0: i32, %arg1: i32) -> (i32, i32) {
    %c0_i32 = arith.constant 0 : i32
    %c0_i32_0 = arith.constant 0 : i32
    return %c0_i32, %arg1 : i32, i32
  }
  func.func @transform_4(%arg0: i32, %arg1: i32) -> (i32, i32) {
    %c0_i32 = arith.constant 0 : i32
    %c0_i32_0 = arith.constant 0 : i32
    %c0_i32_1 = arith.constant 0 : i32
    return %c0_i32, %c0_i32_0 : i32, i32
  }
  func.func @transform_5(%arg0: i32, %arg1: i32) -> (i32, i32) {
    %c0_i32 = arith.constant 0 : i32
    %c0_i32_0 = arith.constant 0 : i32
    %c0_i32_1 = arith.constant 0 : i32
    return %c0_i32, %c0_i32_0 : i32, i32
  }
  func.func @transform_6(%arg0: i32, %arg1: i32) -> (i32, i32) {
    %c0_i32 = arith.constant 0 : i32
    %c0_i32_0 = arith.constant 0 : i32
    return %arg0, %c0_i32 : i32, i32
  }
}

module attributes {stable_mosaic.version = 11 : i64} {
  func.func @_matmul_fused_kernel(%arg0: i32, %arg1: i32, %arg2: memref<128x32xbf16, #tpu.memory_space<vmem>>, %arg3: memref<32x128xbf16, #tpu.memory_space<vmem>>, %arg4: memref<1x32xf32, #tpu.memory_space<vmem>>, %arg5: memref<1x32xf32, #tpu.memory_space<vmem>>, %arg6: memref<128x128xbf16, #tpu.memory_space<vmem>>, %arg7: memref<128x128xf32, #tpu.memory_space<vmem>>) attributes {dimension_semantics = [#tpu.dimension_semantics<parallel>, #tpu.dimension_semantics<arbitrary>], iteration_bounds = array<i64: 1, 1>, scalar_prefetch = 0 : i64, scratch_operands = 1 : i64, tpu.core_type = #tpu.core_type<tc>, window_params = [{transform_indices = @transform_0, window_bounds = array<i64: 128, 32>}, {transform_indices = @transform_1, window_bounds = array<i64: 32, 128>}, {transform_indices = @transform_2, window_bounds = array<i64: 1, 32>}, {transform_indices = @transform_3, window_bounds = array<i64: 1, 32>}, {transform_indices = @transform_4, window_bounds = array<i64: 128, 128>}]} {
    %c0_i32 = arith.constant 0 : i32
    %0 = arith.cmpi eq, %arg1, %c0_i32 : i32
    %1 = arith.extui %0 : i1 to i32
    %c0_i32_0 = arith.constant 0 : i32
    %2 = arith.cmpi ne, %1, %c0_i32_0 : i32
    scf.if %2 {
      %cst_15 = arith.constant 0.000000e+00 : f32
      %22 = vector.broadcast %cst_15 : f32 to vector<128x128xf32>
      %c0_16 = arith.constant 0 : index
      %c0_17 = arith.constant 0 : index
      %23 = vector.load %arg7[%c0_16, %c0_17] : memref<128x128xf32, #tpu.memory_space<vmem>>, vector<128x128xf32>
      tpu.vector_store %arg7[%c0_16, %c0_17], %22 {strides = array<i32>} : memref<128x128xf32, #tpu.memory_space<vmem>>, vector<128x128xf32>,
    } else {
    }
    %c0 = arith.constant 0 : index
    %c0_1 = arith.constant 0 : index
    %3 = vector.load %arg2[%c0, %c0_1] : memref<128x32xbf16, #tpu.memory_space<vmem>>, vector<128x32xbf16>
    %4 = arith.extf %3 : vector<128x32xbf16> to vector<128x32xf32>
    %c0_2 = arith.constant 0 : index
    %c0_3 = arith.constant 0 : index
    %5 = vector.load %arg4[%c0_2, %c0_3] : memref<1x32xf32, #tpu.memory_space<vmem>>, vector<1x32xf32>
    %6 = vector.broadcast %5 : vector<1x32xf32> to vector<128x32xf32>
    %7 = arith.mulf %4, %6 : vector<128x32xf32>
    %c0_4 = arith.constant 0 : index
    %c0_5 = arith.constant 0 : index
    %8 = vector.load %arg5[%c0_4, %c0_5] : memref<1x32xf32, #tpu.memory_space<vmem>>, vector<1x32xf32>
    %9 = vector.broadcast %8 : vector<1x32xf32> to vector<128x32xf32>
    %10 = arith.addf %7, %9 : vector<128x32xf32>
    %cst = arith.constant 0.000000e+00 : f32
    %11 = vector.broadcast %cst : f32 to vector<128x32xf32>
    %12 = arith.maximumf %10, %11 : vector<128x32xf32>
    %13 = arith.truncf %12 : vector<128x32xf32> to vector<128x32xbf16>
    %c0_6 = arith.constant 0 : index
    %c0_7 = arith.constant 0 : index
    %14 = vector.load %arg7[%c0_6, %c0_7] : memref<128x128xf32, #tpu.memory_space<vmem>>, vector<128x128xf32>
    %c0_8 = arith.constant 0 : index
    %c0_9 = arith.constant 0 : index
    %15 = vector.load %arg3[%c0_8, %c0_9] : memref<32x128xbf16, #tpu.memory_space<vmem>>, vector<32x128xbf16>
    %cst_10 = arith.constant dense<0.000000e+00> : vector<128x128xf32>
    %16 = tpu.matmul %13, %15, %cst_10 {dimension_numbers = #tpu.dot_dimension_numbers<[1], [0], [0], [1], [0, 0, 1, 1], [], []>} : vector<128x32xbf16>, vector<32x128xbf16>, vector<128x128xf32> -> vector<128x128xf32>
    %17 = arith.addf %14, %16 : vector<128x128xf32>
    %c0_11 = arith.constant 0 : index
    %c0_12 = arith.constant 0 : index
    %18 = vector.load %arg7[%c0_11, %c0_12] : memref<128x128xf32, #tpu.memory_space<vmem>>, vector<128x128xf32>
    tpu.vector_store %arg7[%c0_11, %c0_12], %17 {strides = array<i32>} : memref<128x128xf32, #tpu.memory_space<vmem>>, vector<128x128xf32>,
    %c0_i32_13 = arith.constant 0 : i32
    %19 = arith.cmpi eq, %arg1, %c0_i32_13 : i32
    %20 = arith.extui %19 : i1 to i32
    %c0_i32_14 = arith.constant 0 : i32
    %21 = arith.cmpi ne, %20, %c0_i32_14 : i32
    scf.if %21 {
      %c0_15 = arith.constant 0 : index
      %c0_16 = arith.constant 0 : index
      %22 = vector.load %arg7[%c0_15, %c0_16] : memref<128x128xf32, #tpu.memory_space<vmem>>, vector<128x128xf32>
      %23 = arith.truncf %22 : vector<128x128xf32> to vector<128x128xbf16>
      %c0_17 = arith.constant 0 : index
      %c0_18 = arith.constant 0 : index
      %24 = vector.load %arg6[%c0_17, %c0_18] : memref<128x128xbf16, #tpu.memory_space<vmem>>, vector<128x128xbf16>
      tpu.vector_store %arg6[%c0_17, %c0_18], %23 {strides = array<i32>} : memref<128x128xbf16, #tpu.memory_space<vmem>>, vector<128x128xbf16>,
    } else {
    }
    return
  }
  func.func @transform_0(%arg0: i32, %arg1: i32) -> (i32, i32) {
    %c0_i32 = arith.constant 0 : i32
    return %arg0, %arg1 : i32, i32
  }
  func.func @transform_1(%arg0: i32, %arg1: i32) -> (i32, i32) {
    %c0_i32 = arith.constant 0 : i32
    %c0_i32_0 = arith.constant 0 : i32
    return %arg1, %c0_i32 : i32, i32
  }
  func.func @transform_2(%arg0: i32, %arg1: i32) -> (i32, i32) {
    %c0_i32 = arith.constant 0 : i32
    %c0_i32_0 = arith.constant 0 : i32
    return %c0_i32, %arg1 : i32, i32
  }
  func.func @transform_3(%arg0: i32, %arg1: i32) -> (i32, i32) {
    %c0_i32 = arith.constant 0 : i32
    %c0_i32_0 = arith.constant 0 : i32
    return %c0_i32, %arg1 : i32, i32
  }
  func.func @transform_4(%arg0: i32, %arg1: i32) -> (i32, i32) {
    %c0_i32 = arith.constant 0 : i32
    %c0_i32_0 = arith.constant 0 : i32
    return %arg0, %c0_i32 : i32, i32
  }
}

module attributes {stable_mosaic.version = 11 : i64} {
  func.func @_avg_pool_kernel(%arg0: i32, %arg1: memref<32x16xbf16, #tpu.memory_space<vmem>>, %arg2: memref<32x16xbf16, #tpu.memory_space<vmem>>, %arg3: memref<32x16xbf16, #tpu.memory_space<vmem>>, %arg4: memref<32x16xbf16, #tpu.memory_space<vmem>>, %arg5: memref<32x16xbf16, #tpu.memory_space<vmem>>) attributes {dimension_semantics = [#tpu.dimension_semantics<parallel>], iteration_bounds = array<i64: 1>, scalar_prefetch = 0 : i64, scratch_operands = 0 : i64, tpu.core_type = #tpu.core_type<tc>, window_params = [{transform_indices = @transform_0, window_bounds = array<i64: 32, 16>}, {transform_indices = @transform_1, window_bounds = array<i64: 32, 16>}, {transform_indices = @transform_2, window_bounds = array<i64: 32, 16>}, {transform_indices = @transform_3, window_bounds = array<i64: 32, 16>}, {transform_indices = @transform_4, window_bounds = array<i64: 32, 16>}]} {
    %c0 = arith.constant 0 : index
    %c0_0 = arith.constant 0 : index
    %0 = vector.load %arg1[%c0, %c0_0] : memref<32x16xbf16, #tpu.memory_space<vmem>>, vector<32x16xbf16>
    %1 = arith.extf %0 : vector<32x16xbf16> to vector<32x16xf32>
    %c0_1 = arith.constant 0 : index
    %c0_2 = arith.constant 0 : index
    %2 = vector.load %arg2[%c0_1, %c0_2] : memref<32x16xbf16, #tpu.memory_space<vmem>>, vector<32x16xbf16>
    %3 = arith.extf %2 : vector<32x16xbf16> to vector<32x16xf32>
    %4 = arith.addf %1, %3 : vector<32x16xf32>
    %c0_3 = arith.constant 0 : index
    %c0_4 = arith.constant 0 : index
    %5 = vector.load %arg3[%c0_3, %c0_4] : memref<32x16xbf16, #tpu.memory_space<vmem>>, vector<32x16xbf16>
    %6 = arith.extf %5 : vector<32x16xbf16> to vector<32x16xf32>
    %7 = arith.addf %4, %6 : vector<32x16xf32>
    %c0_5 = arith.constant 0 : index
    %c0_6 = arith.constant 0 : index
    %8 = vector.load %arg4[%c0_5, %c0_6] : memref<32x16xbf16, #tpu.memory_space<vmem>>, vector<32x16xbf16>
    %9 = arith.extf %8 : vector<32x16xbf16> to vector<32x16xf32>
    %10 = arith.addf %7, %9 : vector<32x16xf32>
    %cst = arith.constant 2.500000e-01 : f32
    %11 = vector.broadcast %cst : f32 to vector<32x16xf32>
    %12 = arith.mulf %10, %11 : vector<32x16xf32>
    %13 = arith.truncf %12 : vector<32x16xf32> to vector<32x16xbf16>
    %c0_7 = arith.constant 0 : index
    %c0_8 = arith.constant 0 : index
    %14 = vector.load %arg5[%c0_7, %c0_8] : memref<32x16xbf16, #tpu.memory_space<vmem>>, vector<32x16xbf16>
    tpu.vector_store %arg5[%c0_7, %c0_8], %13 {strides = array<i32>} : memref<32x16xbf16, #tpu.memory_space<vmem>>, vector<32x16xbf16>,
    return
  }
  func.func @transform_0(%arg0: i32) -> (i32, i32) {
    %c0_i32 = arith.constant 0 : i32
    %c0_i32_0 = arith.constant 0 : i32
    return %arg0, %c0_i32 : i32, i32
  }
  func.func @transform_1(%arg0: i32) -> (i32, i32) {
    %c0_i32 = arith.constant 0 : i32
    %c0_i32_0 = arith.constant 0 : i32
    return %arg0, %c0_i32 : i32, i32
  }
  func.func @transform_2(%arg0: i32) -> (i32, i32) {
    %c0_i32 = arith.constant 0 : i32
    %c0_i32_0 = arith.constant 0 : i32
    return %arg0, %c0_i32 : i32, i32
  }
  func.func @transform_3(%arg0: i32) -> (i32, i32) {
    %c0_i32 = arith.constant 0 : i32
    %c0_i32_0 = arith.constant 0 : i32
    return %arg0, %c0_i32 : i32, i32
  }
  func.func @transform_4(%arg0: i32) -> (i32, i32) {
    %c0_i32 = arith.constant 0 : i32
    %c0_i32_0 = arith.constant 0 : i32
    return %arg0, %c0_i32 : i32, i32
  }
}

module attributes {stable_mosaic.version = 11 : i64} {
  func.func @_matmul_fused_kernel(%arg0: i32, %arg1: i32, %arg2: memref<32x16xbf16, #tpu.memory_space<vmem>>, %arg3: memref<16x128xbf16, #tpu.memory_space<vmem>>, %arg4: memref<1x16xf32, #tpu.memory_space<vmem>>, %arg5: memref<1x16xf32, #tpu.memory_space<vmem>>, %arg6: memref<1x128xf32, #tpu.memory_space<vmem>>, %arg7: memref<1x128xf32, #tpu.memory_space<vmem>>, %arg8: memref<32x128xbf16, #tpu.memory_space<vmem>>, %arg9: memref<32x128xf32, #tpu.memory_space<vmem>>) attributes {dimension_semantics = [#tpu.dimension_semantics<parallel>, #tpu.dimension_semantics<arbitrary>], iteration_bounds = array<i64: 1, 1>, scalar_prefetch = 0 : i64, scratch_operands = 1 : i64, tpu.core_type = #tpu.core_type<tc>, window_params = [{transform_indices = @transform_0, window_bounds = array<i64: 32, 16>}, {transform_indices = @transform_1, window_bounds = array<i64: 16, 128>}, {transform_indices = @transform_2, window_bounds = array<i64: 1, 16>}, {transform_indices = @transform_3, window_bounds = array<i64: 1, 16>}, {pipeline_mode = #tpu.pipeline_mode<synchronous>, transform_indices = @transform_4, window_bounds = array<i64: 1, 128>}, {pipeline_mode = #tpu.pipeline_mode<synchronous>, transform_indices = @transform_5, window_bounds = array<i64: 1, 128>}, {transform_indices = @transform_6, window_bounds = array<i64: 32, 128>}]} {
    %c0_i32 = arith.constant 0 : i32
    %0 = arith.cmpi eq, %arg1, %c0_i32 : i32
    %1 = arith.extui %0 : i1 to i32
    %c0_i32_0 = arith.constant 0 : i32
    %2 = arith.cmpi ne, %1, %c0_i32_0 : i32
    scf.if %2 {
      %cst_15 = arith.constant 0.000000e+00 : f32
      %22 = vector.broadcast %cst_15 : f32 to vector<32x128xf32>
      %c0_16 = arith.constant 0 : index
      %c0_17 = arith.constant 0 : index
      %23 = vector.load %arg9[%c0_16, %c0_17] : memref<32x128xf32, #tpu.memory_space<vmem>>, vector<32x128xf32>
      tpu.vector_store %arg9[%c0_16, %c0_17], %22 {strides = array<i32>} : memref<32x128xf32, #tpu.memory_space<vmem>>, vector<32x128xf32>,
    } else {
    }
    %c0 = arith.constant 0 : index
    %c0_1 = arith.constant 0 : index
    %3 = vector.load %arg2[%c0, %c0_1] : memref<32x16xbf16, #tpu.memory_space<vmem>>, vector<32x16xbf16>
    %4 = arith.extf %3 : vector<32x16xbf16> to vector<32x16xf32>
    %c0_2 = arith.constant 0 : index
    %c0_3 = arith.constant 0 : index
    %5 = vector.load %arg4[%c0_2, %c0_3] : memref<1x16xf32, #tpu.memory_space<vmem>>, vector<1x16xf32>
    %6 = vector.broadcast %5 : vector<1x16xf32> to vector<32x16xf32>
    %7 = arith.mulf %4, %6 : vector<32x16xf32>
    %c0_4 = arith.constant 0 : index
    %c0_5 = arith.constant 0 : index
    %8 = vector.load %arg5[%c0_4, %c0_5] : memref<1x16xf32, #tpu.memory_space<vmem>>, vector<1x16xf32>
    %9 = vector.broadcast %8 : vector<1x16xf32> to vector<32x16xf32>
    %10 = arith.addf %7, %9 : vector<32x16xf32>
    %cst = arith.constant 0.000000e+00 : f32
    %11 = vector.broadcast %cst : f32 to vector<32x16xf32>
    %12 = arith.maximumf %10, %11 : vector<32x16xf32>
    %13 = arith.truncf %12 : vector<32x16xf32> to vector<32x16xbf16>
    %c0_6 = arith.constant 0 : index
    %c0_7 = arith.constant 0 : index
    %14 = vector.load %arg9[%c0_6, %c0_7] : memref<32x128xf32, #tpu.memory_space<vmem>>, vector<32x128xf32>
    %c0_8 = arith.constant 0 : index
    %c0_9 = arith.constant 0 : index
    %15 = vector.load %arg3[%c0_8, %c0_9] : memref<16x128xbf16, #tpu.memory_space<vmem>>, vector<16x128xbf16>
    %cst_10 = arith.constant dense<0.000000e+00> : vector<32x128xf32>
    %16 = tpu.matmul %13, %15, %cst_10 {dimension_numbers = #tpu.dot_dimension_numbers<[1], [0], [0], [1], [0, 0, 1, 1], [], []>} : vector<32x16xbf16>, vector<16x128xbf16>, vector<32x128xf32> -> vector<32x128xf32>
    %17 = arith.addf %14, %16 : vector<32x128xf32>
    %c0_11 = arith.constant 0 : index
    %c0_12 = arith.constant 0 : index
    %18 = vector.load %arg9[%c0_11, %c0_12] : memref<32x128xf32, #tpu.memory_space<vmem>>, vector<32x128xf32>
    tpu.vector_store %arg9[%c0_11, %c0_12], %17 {strides = array<i32>} : memref<32x128xf32, #tpu.memory_space<vmem>>, vector<32x128xf32>,
    %c0_i32_13 = arith.constant 0 : i32
    %19 = arith.cmpi eq, %arg1, %c0_i32_13 : i32
    %20 = arith.extui %19 : i1 to i32
    %c0_i32_14 = arith.constant 0 : i32
    %21 = arith.cmpi ne, %20, %c0_i32_14 : i32
    scf.if %21 {
      %c0_15 = arith.constant 0 : index
      %c0_16 = arith.constant 0 : index
      %22 = vector.load %arg9[%c0_15, %c0_16] : memref<32x128xf32, #tpu.memory_space<vmem>>, vector<32x128xf32>
      %c0_17 = arith.constant 0 : index
      %c0_18 = arith.constant 0 : index
      %23 = vector.load %arg6[%c0_17, %c0_18] : memref<1x128xf32, #tpu.memory_space<vmem>>, vector<1x128xf32>
      %24 = vector.broadcast %23 : vector<1x128xf32> to vector<32x128xf32>
      %25 = arith.mulf %22, %24 : vector<32x128xf32>
      %c0_19 = arith.constant 0 : index
      %c0_20 = arith.constant 0 : index
      %26 = vector.load %arg7[%c0_19, %c0_20] : memref<1x128xf32, #tpu.memory_space<vmem>>, vector<1x128xf32>
      %27 = vector.broadcast %26 : vector<1x128xf32> to vector<32x128xf32>
      %28 = arith.addf %25, %27 : vector<32x128xf32>
      %cst_21 = arith.constant 0.000000e+00 : f32
      %29 = vector.broadcast %cst_21 : f32 to vector<32x128xf32>
      %30 = arith.maximumf %28, %29 : vector<32x128xf32>
      %31 = arith.truncf %30 : vector<32x128xf32> to vector<32x128xbf16>
      %c0_22 = arith.constant 0 : index
      %c0_23 = arith.constant 0 : index
      %32 = vector.load %arg8[%c0_22, %c0_23] : memref<32x128xbf16, #tpu.memory_space<vmem>>, vector<32x128xbf16>
      tpu.vector_store %arg8[%c0_22, %c0_23], %31 {strides = array<i32>} : memref<32x128xbf16, #tpu.memory_space<vmem>>, vector<32x128xbf16>,
    } else {
    }
    return
  }
  func.func @transform_0(%arg0: i32, %arg1: i32) -> (i32, i32) {
    %c0_i32 = arith.constant 0 : i32
    return %arg0, %arg1 : i32, i32
  }
  func.func @transform_1(%arg0: i32, %arg1: i32) -> (i32, i32) {
    %c0_i32 = arith.constant 0 : i32
    %c0_i32_0 = arith.constant 0 : i32
    return %arg1, %c0_i32 : i32, i32
  }
  func.func @transform_2(%arg0: i32, %arg1: i32) -> (i32, i32) {
    %c0_i32 = arith.constant 0 : i32
    %c0_i32_0 = arith.constant 0 : i32
    return %c0_i32, %arg1 : i32, i32
  }
  func.func @transform_3(%arg0: i32, %arg1: i32) -> (i32, i32) {
    %c0_i32 = arith.constant 0 : i32
    %c0_i32_0 = arith.constant 0 : i32
    return %c0_i32, %arg1 : i32, i32
  }
  func.func @transform_4(%arg0: i32, %arg1: i32) -> (i32, i32) {
    %c0_i32 = arith.constant 0 : i32
    %c0_i32_0 = arith.constant 0 : i32
    %c0_i32_1 = arith.constant 0 : i32
    return %c0_i32, %c0_i32_0 : i32, i32
  }
  func.func @transform_5(%arg0: i32, %arg1: i32) -> (i32, i32) {
    %c0_i32 = arith.constant 0 : i32
    %c0_i32_0 = arith.constant 0 : i32
    %c0_i32_1 = arith.constant 0 : i32
    return %c0_i32, %c0_i32_0 : i32, i32
  }
  func.func @transform_6(%arg0: i32, %arg1: i32) -> (i32, i32) {
    %c0_i32 = arith.constant 0 : i32
    %c0_i32_0 = arith.constant 0 : i32
    return %arg0, %c0_i32 : i32, i32
  }
}

module attributes {stable_mosaic.version = 11 : i64} {
  func.func @_conv3x3_kernel(%arg0: i32, %arg1: memref<1x42x128xbf16, #tpu.memory_space<vmem>>, %arg2: memref<9x128x128xbf16, #tpu.memory_space<vmem>>, %arg3: memref<1x24x128xbf16, #tpu.memory_space<vmem>>, %arg4: memref<24x128xf32, #tpu.memory_space<vmem>>) attributes {dimension_semantics = [#tpu.dimension_semantics<parallel>], iteration_bounds = array<i64: 2>, scalar_prefetch = 0 : i64, scratch_operands = 1 : i64, tpu.core_type = #tpu.core_type<tc>, window_params = [{transform_indices = @transform_0, window_bounds = array<i64: 1, 42, 128>}, {pipeline_mode = #tpu.pipeline_mode<synchronous>, transform_indices = @transform_1, window_bounds = array<i64: 9, 128, 128>}, {transform_indices = @transform_2, window_bounds = array<i64: 1, 24, 128>}]} {
    %c0 = arith.constant 0 : index
    %c0_0 = arith.constant 0 : index
    %c0_1 = arith.constant 0 : index
    %0 = vector.load %arg1[%c0, %c0_0, %c0_1] : memref<1x42x128xbf16, #tpu.memory_space<vmem>>, vector<1x24x128xbf16>
    %1 = vector.shape_cast %0 : vector<1x24x128xbf16> to vector<24x128xbf16>
    %c0_2 = arith.constant 0 : index
    %c0_3 = arith.constant 0 : index
    %c0_4 = arith.constant 0 : index
    %2 = vector.load %arg2[%c0_2, %c0_3, %c0_4] : memref<9x128x128xbf16, #tpu.memory_space<vmem>>, vector<1x128x128xbf16>
    %3 = vector.shape_cast %2 : vector<1x128x128xbf16> to vector<128x128xbf16>
    %cst = arith.constant dense<0.000000e+00> : vector<24x128xf32>
    %4 = tpu.matmul %1, %3, %cst {dimension_numbers = #tpu.dot_dimension_numbers<[1], [0], [0], [1], [0, 0, 1, 1], [], []>} : vector<24x128xbf16>, vector<128x128xbf16>, vector<24x128xf32> -> vector<24x128xf32>
    %c0_5 = arith.constant 0 : index
    %c0_6 = arith.constant 0 : index
    %5 = vector.load %arg4[%c0_5, %c0_6] : memref<24x128xf32, #tpu.memory_space<vmem>>, vector<24x128xf32>
    tpu.vector_store %arg4[%c0_5, %c0_6], %4 {strides = array<i32>} : memref<24x128xf32, #tpu.memory_space<vmem>>, vector<24x128xf32>,
    %c0_7 = arith.constant 0 : index
    %c1 = arith.constant 1 : index
    %c0_8 = arith.constant 0 : index
    %6 = vector.load %arg1[%c0_7, %c1, %c0_8] : memref<1x42x128xbf16, #tpu.memory_space<vmem>>, vector<1x24x128xbf16>
    %7 = vector.shape_cast %6 : vector<1x24x128xbf16> to vector<24x128xbf16>
    %c1_9 = arith.constant 1 : index
    %c0_10 = arith.constant 0 : index
    %c0_11 = arith.constant 0 : index
    %8 = vector.load %arg2[%c1_9, %c0_10, %c0_11] : memref<9x128x128xbf16, #tpu.memory_space<vmem>>, vector<1x128x128xbf16>
    %9 = vector.shape_cast %8 : vector<1x128x128xbf16> to vector<128x128xbf16>
    %cst_12 = arith.constant dense<0.000000e+00> : vector<24x128xf32>
    %10 = tpu.matmul %7, %9, %cst_12 {dimension_numbers = #tpu.dot_dimension_numbers<[1], [0], [0], [1], [0, 0, 1, 1], [], []>} : vector<24x128xbf16>, vector<128x128xbf16>, vector<24x128xf32> -> vector<24x128xf32>
    %c0_13 = arith.constant 0 : index
    %c0_14 = arith.constant 0 : index
    %11 = vector.load %arg4[%c0_13, %c0_14] : memref<24x128xf32, #tpu.memory_space<vmem>>, vector<24x128xf32>
    %12 = arith.addf %11, %10 : vector<24x128xf32>
    %c0_15 = arith.constant 0 : index
    %c0_16 = arith.constant 0 : index
    %13 = vector.load %arg4[%c0_15, %c0_16] : memref<24x128xf32, #tpu.memory_space<vmem>>, vector<24x128xf32>
    tpu.vector_store %arg4[%c0_15, %c0_16], %12 {strides = array<i32>} : memref<24x128xf32, #tpu.memory_space<vmem>>, vector<24x128xf32>,
    %c0_17 = arith.constant 0 : index
    %c2 = arith.constant 2 : index
    %c0_18 = arith.constant 0 : index
    %14 = vector.load %arg1[%c0_17, %c2, %c0_18] : memref<1x42x128xbf16, #tpu.memory_space<vmem>>, vector<1x24x128xbf16>
    %15 = vector.shape_cast %14 : vector<1x24x128xbf16> to vector<24x128xbf16>
    %c2_19 = arith.constant 2 : index
    %c0_20 = arith.constant 0 : index
    %c0_21 = arith.constant 0 : index
    %16 = vector.load %arg2[%c2_19, %c0_20, %c0_21] : memref<9x128x128xbf16, #tpu.memory_space<vmem>>, vector<1x128x128xbf16>
    %17 = vector.shape_cast %16 : vector<1x128x128xbf16> to vector<128x128xbf16>
    %cst_22 = arith.constant dense<0.000000e+00> : vector<24x128xf32>
    %18 = tpu.matmul %15, %17, %cst_22 {dimension_numbers = #tpu.dot_dimension_numbers<[1], [0], [0], [1], [0, 0, 1, 1], [], []>} : vector<24x128xbf16>, vector<128x128xbf16>, vector<24x128xf32> -> vector<24x128xf32>
    %c0_23 = arith.constant 0 : index
    %c0_24 = arith.constant 0 : index
    %19 = vector.load %arg4[%c0_23, %c0_24] : memref<24x128xf32, #tpu.memory_space<vmem>>, vector<24x128xf32>
    %20 = arith.addf %19, %18 : vector<24x128xf32>
    %c0_25 = arith.constant 0 : index
    %c0_26 = arith.constant 0 : index
    %21 = vector.load %arg4[%c0_25, %c0_26] : memref<24x128xf32, #tpu.memory_space<vmem>>, vector<24x128xf32>
    tpu.vector_store %arg4[%c0_25, %c0_26], %20 {strides = array<i32>} : memref<24x128xf32, #tpu.memory_space<vmem>>, vector<24x128xf32>,
    %c0_27 = arith.constant 0 : index
    %c6 = arith.constant 6 : index
    %c0_28 = arith.constant 0 : index
    %22 = vector.load %arg1[%c0_27, %c6, %c0_28] : memref<1x42x128xbf16, #tpu.memory_space<vmem>>, vector<1x24x128xbf16>
    %23 = vector.shape_cast %22 : vector<1x24x128xbf16> to vector<24x128xbf16>
    %c3 = arith.constant 3 : index
    %c0_29 = arith.constant 0 : index
    %c0_30 = arith.constant 0 : index
    %24 = vector.load %arg2[%c3, %c0_29, %c0_30] : memref<9x128x128xbf16, #tpu.memory_space<vmem>>, vector<1x128x128xbf16>
    %25 = vector.shape_cast %24 : vector<1x128x128xbf16> to vector<128x128xbf16>
    %cst_31 = arith.constant dense<0.000000e+00> : vector<24x128xf32>
    %26 = tpu.matmul %23, %25, %cst_31 {dimension_numbers = #tpu.dot_dimension_numbers<[1], [0], [0], [1], [0, 0, 1, 1], [], []>} : vector<24x128xbf16>, vector<128x128xbf16>, vector<24x128xf32> -> vector<24x128xf32>
    %c0_32 = arith.constant 0 : index
    %c0_33 = arith.constant 0 : index
    %27 = vector.load %arg4[%c0_32, %c0_33] : memref<24x128xf32, #tpu.memory_space<vmem>>, vector<24x128xf32>
    %28 = arith.addf %27, %26 : vector<24x128xf32>
    %c0_34 = arith.constant 0 : index
    %c0_35 = arith.constant 0 : index
    %29 = vector.load %arg4[%c0_34, %c0_35] : memref<24x128xf32, #tpu.memory_space<vmem>>, vector<24x128xf32>
    tpu.vector_store %arg4[%c0_34, %c0_35], %28 {strides = array<i32>} : memref<24x128xf32, #tpu.memory_space<vmem>>, vector<24x128xf32>,
    %c0_36 = arith.constant 0 : index
    %c7 = arith.constant 7 : index
    %c0_37 = arith.constant 0 : index
    %30 = vector.load %arg1[%c0_36, %c7, %c0_37] : memref<1x42x128xbf16, #tpu.memory_space<vmem>>, vector<1x24x128xbf16>
    %31 = vector.shape_cast %30 : vector<1x24x128xbf16> to vector<24x128xbf16>
    %c4 = arith.constant 4 : index
    %c0_38 = arith.constant 0 : index
    %c0_39 = arith.constant 0 : index
    %32 = vector.load %arg2[%c4, %c0_38, %c0_39] : memref<9x128x128xbf16, #tpu.memory_space<vmem>>, vector<1x128x128xbf16>
    %33 = vector.shape_cast %32 : vector<1x128x128xbf16> to vector<128x128xbf16>
    %cst_40 = arith.constant dense<0.000000e+00> : vector<24x128xf32>
    %34 = tpu.matmul %31, %33, %cst_40 {dimension_numbers = #tpu.dot_dimension_numbers<[1], [0], [0], [1], [0, 0, 1, 1], [], []>} : vector<24x128xbf16>, vector<128x128xbf16>, vector<24x128xf32> -> vector<24x128xf32>
    %c0_41 = arith.constant 0 : index
    %c0_42 = arith.constant 0 : index
    %35 = vector.load %arg4[%c0_41, %c0_42] : memref<24x128xf32, #tpu.memory_space<vmem>>, vector<24x128xf32>
    %36 = arith.addf %35, %34 : vector<24x128xf32>
    %c0_43 = arith.constant 0 : index
    %c0_44 = arith.constant 0 : index
    %37 = vector.load %arg4[%c0_43, %c0_44] : memref<24x128xf32, #tpu.memory_space<vmem>>, vector<24x128xf32>
    tpu.vector_store %arg4[%c0_43, %c0_44], %36 {strides = array<i32>} : memref<24x128xf32, #tpu.memory_space<vmem>>, vector<24x128xf32>,
    %c0_45 = arith.constant 0 : index
    %c8 = arith.constant 8 : index
    %c0_46 = arith.constant 0 : index
    %38 = vector.load %arg1[%c0_45, %c8, %c0_46] : memref<1x42x128xbf16, #tpu.memory_space<vmem>>, vector<1x24x128xbf16>
    %39 = vector.shape_cast %38 : vector<1x24x128xbf16> to vector<24x128xbf16>
    %c5 = arith.constant 5 : index
    %c0_47 = arith.constant 0 : index
    %c0_48 = arith.constant 0 : index
    %40 = vector.load %arg2[%c5, %c0_47, %c0_48] : memref<9x128x128xbf16, #tpu.memory_space<vmem>>, vector<1x128x128xbf16>
    %41 = vector.shape_cast %40 : vector<1x128x128xbf16> to vector<128x128xbf16>
    %cst_49 = arith.constant dense<0.000000e+00> : vector<24x128xf32>
    %42 = tpu.matmul %39, %41, %cst_49 {dimension_numbers = #tpu.dot_dimension_numbers<[1], [0], [0], [1], [0, 0, 1, 1], [], []>} : vector<24x128xbf16>, vector<128x128xbf16>, vector<24x128xf32> -> vector<24x128xf32>
    %c0_50 = arith.constant 0 : index
    %c0_51 = arith.constant 0 : index
    %43 = vector.load %arg4[%c0_50, %c0_51] : memref<24x128xf32, #tpu.memory_space<vmem>>, vector<24x128xf32>
    %44 = arith.addf %43, %42 : vector<24x128xf32>
    %c0_52 = arith.constant 0 : index
    %c0_53 = arith.constant 0 : index
    %45 = vector.load %arg4[%c0_52, %c0_53] : memref<24x128xf32, #tpu.memory_space<vmem>>, vector<24x128xf32>
    tpu.vector_store %arg4[%c0_52, %c0_53], %44 {strides = array<i32>} : memref<24x128xf32, #tpu.memory_space<vmem>>, vector<24x128xf32>,
    %c0_54 = arith.constant 0 : index
    %c12 = arith.constant 12 : index
    %c0_55 = arith.constant 0 : index
    %46 = vector.load %arg1[%c0_54, %c12, %c0_55] : memref<1x42x128xbf16, #tpu.memory_space<vmem>>, vector<1x24x128xbf16>
    %47 = vector.shape_cast %46 : vector<1x24x128xbf16> to vector<24x128xbf16>
    %c6_56 = arith.constant 6 : index
    %c0_57 = arith.constant 0 : index
    %c0_58 = arith.constant 0 : index
    %48 = vector.load %arg2[%c6_56, %c0_57, %c0_58] : memref<9x128x128xbf16, #tpu.memory_space<vmem>>, vector<1x128x128xbf16>
    %49 = vector.shape_cast %48 : vector<1x128x128xbf16> to vector<128x128xbf16>
    %cst_59 = arith.constant dense<0.000000e+00> : vector<24x128xf32>
    %50 = tpu.matmul %47, %49, %cst_59 {dimension_numbers = #tpu.dot_dimension_numbers<[1], [0], [0], [1], [0, 0, 1, 1], [], []>} : vector<24x128xbf16>, vector<128x128xbf16>, vector<24x128xf32> -> vector<24x128xf32>
    %c0_60 = arith.constant 0 : index
    %c0_61 = arith.constant 0 : index
    %51 = vector.load %arg4[%c0_60, %c0_61] : memref<24x128xf32, #tpu.memory_space<vmem>>, vector<24x128xf32>
    %52 = arith.addf %51, %50 : vector<24x128xf32>
    %c0_62 = arith.constant 0 : index
    %c0_63 = arith.constant 0 : index
    %53 = vector.load %arg4[%c0_62, %c0_63] : memref<24x128xf32, #tpu.memory_space<vmem>>, vector<24x128xf32>
    tpu.vector_store %arg4[%c0_62, %c0_63], %52 {strides = array<i32>} : memref<24x128xf32, #tpu.memory_space<vmem>>, vector<24x128xf32>,
    %c0_64 = arith.constant 0 : index
    %c13 = arith.constant 13 : index
    %c0_65 = arith.constant 0 : index
    %54 = vector.load %arg1[%c0_64, %c13, %c0_65] : memref<1x42x128xbf16, #tpu.memory_space<vmem>>, vector<1x24x128xbf16>
    %55 = vector.shape_cast %54 : vector<1x24x128xbf16> to vector<24x128xbf16>
    %c7_66 = arith.constant 7 : index
    %c0_67 = arith.constant 0 : index
    %c0_68 = arith.constant 0 : index
    %56 = vector.load %arg2[%c7_66, %c0_67, %c0_68] : memref<9x128x128xbf16, #tpu.memory_space<vmem>>, vector<1x128x128xbf16>
    %57 = vector.shape_cast %56 : vector<1x128x128xbf16> to vector<128x128xbf16>
    %cst_69 = arith.constant dense<0.000000e+00> : vector<24x128xf32>
    %58 = tpu.matmul %55, %57, %cst_69 {dimension_numbers = #tpu.dot_dimension_numbers<[1], [0], [0], [1], [0, 0, 1, 1], [], []>} : vector<24x128xbf16>, vector<128x128xbf16>, vector<24x128xf32> -> vector<24x128xf32>
    %c0_70 = arith.constant 0 : index
    %c0_71 = arith.constant 0 : index
    %59 = vector.load %arg4[%c0_70, %c0_71] : memref<24x128xf32, #tpu.memory_space<vmem>>, vector<24x128xf32>
    %60 = arith.addf %59, %58 : vector<24x128xf32>
    %c0_72 = arith.constant 0 : index
    %c0_73 = arith.constant 0 : index
    %61 = vector.load %arg4[%c0_72, %c0_73] : memref<24x128xf32, #tpu.memory_space<vmem>>, vector<24x128xf32>
    tpu.vector_store %arg4[%c0_72, %c0_73], %60 {strides = array<i32>} : memref<24x128xf32, #tpu.memory_space<vmem>>, vector<24x128xf32>,
    %c0_74 = arith.constant 0 : index
    %c14 = arith.constant 14 : index
    %c0_75 = arith.constant 0 : index
    %62 = vector.load %arg1[%c0_74, %c14, %c0_75] : memref<1x42x128xbf16, #tpu.memory_space<vmem>>, vector<1x24x128xbf16>
    %63 = vector.shape_cast %62 : vector<1x24x128xbf16> to vector<24x128xbf16>
    %c8_76 = arith.constant 8 : index
    %c0_77 = arith.constant 0 : index
    %c0_78 = arith.constant 0 : index
    %64 = vector.load %arg2[%c8_76, %c0_77, %c0_78] : memref<9x128x128xbf16, #tpu.memory_space<vmem>>, vector<1x128x128xbf16>
    %65 = vector.shape_cast %64 : vector<1x128x128xbf16> to vector<128x128xbf16>
    %cst_79 = arith.constant dense<0.000000e+00> : vector<24x128xf32>
    %66 = tpu.matmul %63, %65, %cst_79 {dimension_numbers = #tpu.dot_dimension_numbers<[1], [0], [0], [1], [0, 0, 1, 1], [], []>} : vector<24x128xbf16>, vector<128x128xbf16>, vector<24x128xf32> -> vector<24x128xf32>
    %c0_80 = arith.constant 0 : index
    %c0_81 = arith.constant 0 : index
    %67 = vector.load %arg4[%c0_80, %c0_81] : memref<24x128xf32, #tpu.memory_space<vmem>>, vector<24x128xf32>
    %68 = arith.addf %67, %66 : vector<24x128xf32>
    %c0_82 = arith.constant 0 : index
    %c0_83 = arith.constant 0 : index
    %69 = vector.load %arg4[%c0_82, %c0_83] : memref<24x128xf32, #tpu.memory_space<vmem>>, vector<24x128xf32>
    tpu.vector_store %arg4[%c0_82, %c0_83], %68 {strides = array<i32>} : memref<24x128xf32, #tpu.memory_space<vmem>>, vector<24x128xf32>,
    %c0_84 = arith.constant 0 : index
    %c0_85 = arith.constant 0 : index
    %70 = vector.load %arg4[%c0_84, %c0_85] : memref<24x128xf32, #tpu.memory_space<vmem>>, vector<24x128xf32>
    %71 = arith.truncf %70 : vector<24x128xf32> to vector<24x128xbf16>
    %c0_86 = arith.constant 0 : index
    %c0_87 = arith.constant 0 : index
    %c0_88 = arith.constant 0 : index
    %72 = vector.load %arg3[%c0_86, %c0_87, %c0_88] : memref<1x24x128xbf16, #tpu.memory_space<vmem>>, vector<1x24x128xbf16>
    %73 = vector.shape_cast %72 : vector<1x24x128xbf16> to vector<24x128xbf16>
    %74 = vector.shape_cast %71 : vector<24x128xbf16> to vector<1x24x128xbf16>
    tpu.vector_store %arg3[%c0_86, %c0_87, %c0_88], %74 {strides = array<i32>} : memref<1x24x128xbf16, #tpu.memory_space<vmem>>, vector<1x24x128xbf16>,
    return
  }
  func.func @transform_0(%arg0: i32) -> (i32, i32, i32) {
    %c0_i32 = arith.constant 0 : i32
    %c0_i32_0 = arith.constant 0 : i32
    %c0_i32_1 = arith.constant 0 : i32
    return %arg0, %c0_i32, %c0_i32_0 : i32, i32, i32
  }
  func.func @transform_1(%arg0: i32) -> (i32, i32, i32) {
    %c0_i32 = arith.constant 0 : i32
    %c0_i32_0 = arith.constant 0 : i32
    %c0_i32_1 = arith.constant 0 : i32
    %c0_i32_2 = arith.constant 0 : i32
    return %c0_i32, %c0_i32_0, %c0_i32_1 : i32, i32, i32
  }
  func.func @transform_2(%arg0: i32) -> (i32, i32, i32) {
    %c0_i32 = arith.constant 0 : i32
    %c0_i32_0 = arith.constant 0 : i32
    %c0_i32_1 = arith.constant 0 : i32
    return %arg0, %c0_i32, %c0_i32_0 : i32, i32, i32
  }
}

module attributes {stable_mosaic.version = 11 : i64} {
  func.func @_matmul_fused_kernel(%arg0: i32, %arg1: i32, %arg2: memref<32x24xbf16, #tpu.memory_space<vmem>>, %arg3: memref<24x128xbf16, #tpu.memory_space<vmem>>, %arg4: memref<1x24xf32, #tpu.memory_space<vmem>>, %arg5: memref<1x24xf32, #tpu.memory_space<vmem>>, %arg6: memref<1x128xf32, #tpu.memory_space<vmem>>, %arg7: memref<1x128xf32, #tpu.memory_space<vmem>>, %arg8: memref<32x128xbf16, #tpu.memory_space<vmem>>, %arg9: memref<32x128xf32, #tpu.memory_space<vmem>>) attributes {dimension_semantics = [#tpu.dimension_semantics<parallel>, #tpu.dimension_semantics<arbitrary>], iteration_bounds = array<i64: 1, 1>, scalar_prefetch = 0 : i64, scratch_operands = 1 : i64, tpu.core_type = #tpu.core_type<tc>, window_params = [{transform_indices = @transform_0, window_bounds = array<i64: 32, 24>}, {transform_indices = @transform_1, window_bounds = array<i64: 24, 128>}, {transform_indices = @transform_2, window_bounds = array<i64: 1, 24>}, {transform_indices = @transform_3, window_bounds = array<i64: 1, 24>}, {pipeline_mode = #tpu.pipeline_mode<synchronous>, transform_indices = @transform_4, window_bounds = array<i64: 1, 128>}, {pipeline_mode = #tpu.pipeline_mode<synchronous>, transform_indices = @transform_5, window_bounds = array<i64: 1, 128>}, {transform_indices = @transform_6, window_bounds = array<i64: 32, 128>}]} {
    %c0_i32 = arith.constant 0 : i32
    %0 = arith.cmpi eq, %arg1, %c0_i32 : i32
    %1 = arith.extui %0 : i1 to i32
    %c0_i32_0 = arith.constant 0 : i32
    %2 = arith.cmpi ne, %1, %c0_i32_0 : i32
    scf.if %2 {
      %cst_15 = arith.constant 0.000000e+00 : f32
      %22 = vector.broadcast %cst_15 : f32 to vector<32x128xf32>
      %c0_16 = arith.constant 0 : index
      %c0_17 = arith.constant 0 : index
      %23 = vector.load %arg9[%c0_16, %c0_17] : memref<32x128xf32, #tpu.memory_space<vmem>>, vector<32x128xf32>
      tpu.vector_store %arg9[%c0_16, %c0_17], %22 {strides = array<i32>} : memref<32x128xf32, #tpu.memory_space<vmem>>, vector<32x128xf32>,
    } else {
    }
    %c0 = arith.constant 0 : index
    %c0_1 = arith.constant 0 : index
    %3 = vector.load %arg2[%c0, %c0_1] : memref<32x24xbf16, #tpu.memory_space<vmem>>, vector<32x24xbf16>
    %4 = arith.extf %3 : vector<32x24xbf16> to vector<32x24xf32>
    %c0_2 = arith.constant 0 : index
    %c0_3 = arith.constant 0 : index
    %5 = vector.load %arg4[%c0_2, %c0_3] : memref<1x24xf32, #tpu.memory_space<vmem>>, vector<1x24xf32>
    %6 = vector.broadcast %5 : vector<1x24xf32> to vector<32x24xf32>
    %7 = arith.mulf %4, %6 : vector<32x24xf32>
    %c0_4 = arith.constant 0 : index
    %c0_5 = arith.constant 0 : index
    %8 = vector.load %arg5[%c0_4, %c0_5] : memref<1x24xf32, #tpu.memory_space<vmem>>, vector<1x24xf32>
    %9 = vector.broadcast %8 : vector<1x24xf32> to vector<32x24xf32>
    %10 = arith.addf %7, %9 : vector<32x24xf32>
    %cst = arith.constant 0.000000e+00 : f32
    %11 = vector.broadcast %cst : f32 to vector<32x24xf32>
    %12 = arith.maximumf %10, %11 : vector<32x24xf32>
    %13 = arith.truncf %12 : vector<32x24xf32> to vector<32x24xbf16>
    %c0_6 = arith.constant 0 : index
    %c0_7 = arith.constant 0 : index
    %14 = vector.load %arg9[%c0_6, %c0_7] : memref<32x128xf32, #tpu.memory_space<vmem>>, vector<32x128xf32>
    %c0_8 = arith.constant 0 : index
    %c0_9 = arith.constant 0 : index
    %15 = vector.load %arg3[%c0_8, %c0_9] : memref<24x128xbf16, #tpu.memory_space<vmem>>, vector<24x128xbf16>
    %cst_10 = arith.constant dense<0.000000e+00> : vector<32x128xf32>
    %16 = tpu.matmul %13, %15, %cst_10 {dimension_numbers = #tpu.dot_dimension_numbers<[1], [0], [0], [1], [0, 0, 1, 1], [], []>} : vector<32x24xbf16>, vector<24x128xbf16>, vector<32x128xf32> -> vector<32x128xf32>
    %17 = arith.addf %14, %16 : vector<32x128xf32>
    %c0_11 = arith.constant 0 : index
    %c0_12 = arith.constant 0 : index
    %18 = vector.load %arg9[%c0_11, %c0_12] : memref<32x128xf32, #tpu.memory_space<vmem>>, vector<32x128xf32>
    tpu.vector_store %arg9[%c0_11, %c0_12], %17 {strides = array<i32>} : memref<32x128xf32, #tpu.memory_space<vmem>>, vector<32x128xf32>,
    %c0_i32_13 = arith.constant 0 : i32
    %19 = arith.cmpi eq, %arg1, %c0_i32_13 : i32
    %20 = arith.extui %19 : i1 to i32
    %c0_i32_14 = arith.constant 0 : i32
    %21 = arith.cmpi ne, %20, %c0_i32_14 : i32
    scf.if %21 {
      %c0_15 = arith.constant 0 : index
      %c0_16 = arith.constant 0 : index
      %22 = vector.load %arg9[%c0_15, %c0_16] : memref<32x128xf32, #tpu.memory_space<vmem>>, vector<32x128xf32>
      %c0_17 = arith.constant 0 : index
      %c0_18 = arith.constant 0 : index
      %23 = vector.load %arg6[%c0_17, %c0_18] : memref<1x128xf32, #tpu.memory_space<vmem>>, vector<1x128xf32>
      %24 = vector.broadcast %23 : vector<1x128xf32> to vector<32x128xf32>
      %25 = arith.mulf %22, %24 : vector<32x128xf32>
      %c0_19 = arith.constant 0 : index
      %c0_20 = arith.constant 0 : index
      %26 = vector.load %arg7[%c0_19, %c0_20] : memref<1x128xf32, #tpu.memory_space<vmem>>, vector<1x128xf32>
      %27 = vector.broadcast %26 : vector<1x128xf32> to vector<32x128xf32>
      %28 = arith.addf %25, %27 : vector<32x128xf32>
      %cst_21 = arith.constant 0.000000e+00 : f32
      %29 = vector.broadcast %cst_21 : f32 to vector<32x128xf32>
      %30 = arith.maximumf %28, %29 : vector<32x128xf32>
      %31 = arith.truncf %30 : vector<32x128xf32> to vector<32x128xbf16>
      %c0_22 = arith.constant 0 : index
      %c0_23 = arith.constant 0 : index
      %32 = vector.load %arg8[%c0_22, %c0_23] : memref<32x128xbf16, #tpu.memory_space<vmem>>, vector<32x128xbf16>
      tpu.vector_store %arg8[%c0_22, %c0_23], %31 {strides = array<i32>} : memref<32x128xbf16, #tpu.memory_space<vmem>>, vector<32x128xbf16>,
    } else {
    }
    return
  }
  func.func @transform_0(%arg0: i32, %arg1: i32) -> (i32, i32) {
    %c0_i32 = arith.constant 0 : i32
    return %arg0, %arg1 : i32, i32
  }
  func.func @transform_1(%arg0: i32, %arg1: i32) -> (i32, i32) {
    %c0_i32 = arith.constant 0 : i32
    %c0_i32_0 = arith.constant 0 : i32
    return %arg1, %c0_i32 : i32, i32
  }
  func.func @transform_2(%arg0: i32, %arg1: i32) -> (i32, i32) {
    %c0_i32 = arith.constant 0 : i32
    %c0_i32_0 = arith.constant 0 : i32
    return %c0_i32, %arg1 : i32, i32
  }
  func.func @transform_3(%arg0: i32, %arg1: i32) -> (i32, i32) {
    %c0_i32 = arith.constant 0 : i32
    %c0_i32_0 = arith.constant 0 : i32
    return %c0_i32, %arg1 : i32, i32
  }
  func.func @transform_4(%arg0: i32, %arg1: i32) -> (i32, i32) {
    %c0_i32 = arith.constant 0 : i32
    %c0_i32_0 = arith.constant 0 : i32
    %c0_i32_1 = arith.constant 0 : i32
    return %c0_i32, %c0_i32_0 : i32, i32
  }
  func.func @transform_5(%arg0: i32, %arg1: i32) -> (i32, i32) {
    %c0_i32 = arith.constant 0 : i32
    %c0_i32_0 = arith.constant 0 : i32
    %c0_i32_1 = arith.constant 0 : i32
    return %c0_i32, %c0_i32_0 : i32, i32
  }
  func.func @transform_6(%arg0: i32, %arg1: i32) -> (i32, i32) {
    %c0_i32 = arith.constant 0 : i32
    %c0_i32_0 = arith.constant 0 : i32
    return %arg0, %c0_i32 : i32, i32
  }
}

module attributes {stable_mosaic.version = 11 : i64} {
  func.func @_gap_classifier_kernel(%arg0: i32, %arg1: memref<2x16x32xbf16, #tpu.memory_space<vmem>>, %arg2: memref<1x1x32xf32, #tpu.memory_space<vmem>>, %arg3: memref<1x1x32xf32, #tpu.memory_space<vmem>>, %arg4: memref<32x1xf32, #tpu.memory_space<vmem>>, %arg5: memref<1x1xf32, #tpu.memory_space<vmem>>, %arg6: memref<2x1xf32, #tpu.memory_space<vmem>>, %arg7: memref<2x32xf32, #tpu.memory_space<vmem>>) attributes {dimension_semantics = [#tpu.dimension_semantics<arbitrary>], iteration_bounds = array<i64: 1>, scalar_prefetch = 0 : i64, scratch_operands = 1 : i64, tpu.core_type = #tpu.core_type<tc>, window_params = [{transform_indices = @transform_0, window_bounds = array<i64: 2, 16, 32>}, {pipeline_mode = #tpu.pipeline_mode<synchronous>, transform_indices = @transform_1, window_bounds = array<i64: 1, 1, 32>}, {pipeline_mode = #tpu.pipeline_mode<synchronous>, transform_indices = @transform_2, window_bounds = array<i64: 1, 1, 32>}, {pipeline_mode = #tpu.pipeline_mode<synchronous>, transform_indices = @transform_3, window_bounds = array<i64: 32, 1>}, {pipeline_mode = #tpu.pipeline_mode<synchronous>, transform_indices = @transform_4, window_bounds = array<i64: 1, 1>}, {pipeline_mode = #tpu.pipeline_mode<synchronous>, transform_indices = @transform_5, window_bounds = array<i64: 2, 1>}]} {
    %c0_i32 = arith.constant 0 : i32
    %0 = arith.cmpi eq, %arg0, %c0_i32 : i32
    %1 = arith.extui %0 : i1 to i32
    %c0_i32_0 = arith.constant 0 : i32
    %2 = arith.cmpi ne, %1, %c0_i32_0 : i32
    scf.if %2 {
      %cst_16 = arith.constant 0.000000e+00 : f32
      %20 = vector.broadcast %cst_16 : f32 to vector<2x32xf32>
      %c0_17 = arith.constant 0 : index
      %c0_18 = arith.constant 0 : index
      %21 = vector.load %arg7[%c0_17, %c0_18] : memref<2x32xf32, #tpu.memory_space<vmem>>, vector<2x32xf32>
      tpu.vector_store %arg7[%c0_17, %c0_18], %20 {strides = array<i32>} : memref<2x32xf32, #tpu.memory_space<vmem>>, vector<2x32xf32>,
    } else {
    }
    %c0 = arith.constant 0 : index
    %c0_1 = arith.constant 0 : index
    %c0_2 = arith.constant 0 : index
    %3 = vector.load %arg1[%c0, %c0_1, %c0_2] : memref<2x16x32xbf16, #tpu.memory_space<vmem>>, vector<2x16x32xbf16>
    %4 = arith.extf %3 : vector<2x16x32xbf16> to vector<2x16x32xf32>
    %c0_3 = arith.constant 0 : index
    %c0_4 = arith.constant 0 : index
    %c0_5 = arith.constant 0 : index
    %5 = vector.load %arg2[%c0_3, %c0_4, %c0_5] : memref<1x1x32xf32, #tpu.memory_space<vmem>>, vector<1x1x32xf32>
    %6 = vector.broadcast %5 : vector<1x1x32xf32> to vector<2x16x32xf32>
    %7 = arith.mulf %4, %6 : vector<2x16x32xf32>
    %c0_6 = arith.constant 0 : index
    %c0_7 = arith.constant 0 : index
    %c0_8 = arith.constant 0 : index
    %8 = vector.load %arg3[%c0_6, %c0_7, %c0_8] : memref<1x1x32xf32, #tpu.memory_space<vmem>>, vector<1x1x32xf32>
    %9 = vector.broadcast %8 : vector<1x1x32xf32> to vector<2x16x32xf32>
    %10 = arith.addf %7, %9 : vector<2x16x32xf32>
    %cst = arith.constant 0.000000e+00 : f32
    %11 = vector.broadcast %cst : f32 to vector<2x16x32xf32>
    %12 = arith.maximumf %10, %11 : vector<2x16x32xf32>
    %c0_9 = arith.constant 0 : index
    %c0_10 = arith.constant 0 : index
    %13 = vector.load %arg7[%c0_9, %c0_10] : memref<2x32xf32, #tpu.memory_space<vmem>>, vector<2x32xf32>
    %cst_11 = arith.constant dense<0.000000e+00> : vector<2x32xf32>
    %14 = vector.multi_reduction <add>, %12, %cst_11 [1] : vector<2x16x32xf32> to vector<2x32xf32>
    %15 = arith.addf %13, %14 : vector<2x32xf32>
    %c0_12 = arith.constant 0 : index
    %c0_13 = arith.constant 0 : index
    %16 = vector.load %arg7[%c0_12, %c0_13] : memref<2x32xf32, #tpu.memory_space<vmem>>, vector<2x32xf32>
    tpu.vector_store %arg7[%c0_12, %c0_13], %15 {strides = array<i32>} : memref<2x32xf32, #tpu.memory_space<vmem>>, vector<2x32xf32>,
    %c0_i32_14 = arith.constant 0 : i32
    %17 = arith.cmpi eq, %arg0, %c0_i32_14 : i32
    %18 = arith.extui %17 : i1 to i32
    %c0_i32_15 = arith.constant 0 : i32
    %19 = arith.cmpi ne, %18, %c0_i32_15 : i32
    scf.if %19 {
      %c0_16 = arith.constant 0 : index
      %c0_17 = arith.constant 0 : index
      %20 = vector.load %arg7[%c0_16, %c0_17] : memref<2x32xf32, #tpu.memory_space<vmem>>, vector<2x32xf32>
      %cst_18 = arith.constant 6.250000e-02 : f32
      %21 = vector.broadcast %cst_18 : f32 to vector<2x32xf32>
      %22 = arith.mulf %20, %21 : vector<2x32xf32>
      %c0_19 = arith.constant 0 : index
      %c0_20 = arith.constant 0 : index
      %23 = vector.load %arg4[%c0_19, %c0_20] : memref<32x1xf32, #tpu.memory_space<vmem>>, vector<32x1xf32>
      %cst_21 = arith.constant dense<0.000000e+00> : vector<2x1xf32>
      %24 = tpu.matmul %22, %23, %cst_21 {dimension_numbers = #tpu.dot_dimension_numbers<[1], [0], [0], [1], [0, 0, 1, 1], [], []>} : vector<2x32xf32>, vector<32x1xf32>, vector<2x1xf32> -> vector<2x1xf32>
      %c0_22 = arith.constant 0 : index
      %c0_23 = arith.constant 0 : index
      %25 = vector.load %arg5[%c0_22, %c0_23] : memref<1x1xf32, #tpu.memory_space<vmem>>, vector<1x1xf32>
      %26 = vector.broadcast %25 : vector<1x1xf32> to vector<2x1xf32>
      %27 = arith.addf %24, %26 : vector<2x1xf32>
      %c0_24 = arith.constant 0 : index
      %c0_25 = arith.constant 0 : index
      %28 = vector.load %arg6[%c0_24, %c0_25] : memref<2x1xf32, #tpu.memory_space<vmem>>, vector<2x1xf32>
      tpu.vector_store %arg6[%c0_24, %c0_25], %27 {strides = array<i32>} : memref<2x1xf32, #tpu.memory_space<vmem>>, vector<2x1xf32>,
    } else {
    }
    return
  }
  func.func @transform_0(%arg0: i32) -> (i32, i32, i32) {
    %c0_i32 = arith.constant 0 : i32
    %c0_i32_0 = arith.constant 0 : i32
    %c0_i32_1 = arith.constant 0 : i32
    return %c0_i32, %arg0, %c0_i32_0 : i32, i32, i32
  }
  func.func @transform_1(%arg0: i32) -> (i32, i32, i32) {
    %c0_i32 = arith.constant 0 : i32
    %c0_i32_0 = arith.constant 0 : i32
    %c0_i32_1 = arith.constant 0 : i32
    %c0_i32_2 = arith.constant 0 : i32
    return %c0_i32, %c0_i32_0, %c0_i32_1 : i32, i32, i32
  }
  func.func @transform_2(%arg0: i32) -> (i32, i32, i32) {
    %c0_i32 = arith.constant 0 : i32
    %c0_i32_0 = arith.constant 0 : i32
    %c0_i32_1 = arith.constant 0 : i32
    %c0_i32_2 = arith.constant 0 : i32
    return %c0_i32, %c0_i32_0, %c0_i32_1 : i32, i32, i32
  }
  func.func @transform_3(%arg0: i32) -> (i32, i32) {
    %c0_i32 = arith.constant 0 : i32
    %c0_i32_0 = arith.constant 0 : i32
    %c0_i32_1 = arith.constant 0 : i32
    return %c0_i32, %c0_i32_0 : i32, i32
  }
  func.func @transform_4(%arg0: i32) -> (i32, i32) {
    %c0_i32 = arith.constant 0 : i32
    %c0_i32_0 = arith.constant 0 : i32
    %c0_i32_1 = arith.constant 0 : i32
    return %c0_i32, %c0_i32_0 : i32, i32
  }
  func.func @transform_5(%arg0: i32) -> (i32, i32) {
    %c0_i32 = arith.constant 0 : i32
    %c0_i32_0 = arith.constant 0 : i32
    %c0_i32_1 = arith.constant 0 : i32
    return %c0_i32, %c0_i32_0 : i32, i32
  }
}

</mosaic_0001>

<bundles_post_ra>
// kernel: densenet_forward.15
= control target key start
LH: loop header
LB: loop body
LE: loop exit
PB: predicated region body
PF: predicated region fallthrough
CT: control target
= control target key end

     0   :  { %vm170_vm0 = vcmask 130048   ;;  %s828_s1 = inlined_call_operand.vmem [shape: bf16[16,128], index: 1, kind: input, shape index: {}]   ;;  %s829_s0 = inlined_call_operand.vmem [shape: bf16[128,16], index: 0, kind: input, shape index: {}]   ;;  %s830_s2 = inlined_call_operand.vmem [shape: f32[1,16], index: 2, kind: input, shape index: {}]   ;;  %s831_s3 = inlined_call_operand.vmem [shape: f32[1,16], index: 3, kind: input, shape index: {}]   ;;  %s832_s4 = inlined_call_operand.vmem [shape: f32[1,128], index: 4, kind: input, shape index: {}]   ;;  %s833_s5 = inlined_call_operand.vmem [shape: f32[1,128], index: 5, kind: input, shape index: {}]   ;;  %s834_s6 = inlined_call_operand.vmem [shape: bf16[128,128], index: 6, kind: output, shape index: {}]  }
   0x1   :  { %v649_v0 = vld [vmem:[%s828_s1] sm:$0xff]   ;;  %v606_v6 = vld [vmem:[%s829_s0 + $0x8] sm:$0xff]   ;;  %v607_v29 = vld [vmem:[%s829_s0 + $0x10] sm:$0xff]  }
   0x2   :  { %v535_v1 = vld [vmem:[%s829_s0] sm:$0xff]   ;;  %629 = vmatprep.subr.bf16.mxu0 %v649_v0  ;;  %647 = vmatprep.subr.bf16.mxu1 %v649_v0  ;;  %v610_v7 = vld [vmem:[%s829_s0 + $0x28] sm:$0xff]   ;;  %v540_v11 = vunpack.c.l.bf16 %v606_v6  ;;  %v541_v12 = vunpack.c.h.bf16 %v606_v6  ;;  %v611_v34 = vld [vmem:[%s829_s0 + $0x30] sm:$0xff]   ;;  %v544_v43 = vunpack.c.l.bf16 %v607_v29  ;;  %v545_v47 = vunpack.c.h.bf16 %v607_v29 }
   0x3   :  { %v694_v2 = vld [vmem:[%s830_s2] ss:$0 sm:$0xff]  ;;  %v536_v3 = vunpack.c.l.bf16 %v535_v1  ;;  %v537_v4 = vunpack.c.h.bf16 %v535_v1  ;;  %630 = vmatpush3.bf16.msra.mxu0 %v649_v0  ;;  %648 = vmatpush3.bf16.msra.mxu1 %v649_v0  ;;  %v556_v15 = vunpack.c.l.bf16 %v610_v7  ;;  %v557_v16 = vunpack.c.h.bf16 %v610_v7  ;;  %v608_v39 = vld [vmem:[%s829_s0 + $0x18] sm:$0xff]  }
   0x4   :  { %v609_v5 = vld [vmem:[%s829_s0 + $0x20] sm:$0xff]   ;;  %v85_v19 = vmul.f32 %v540_v11, %v694_v2  ;;  %v86_v20 = vmul.f32 %v541_v12, %v694_v2  ;;  %v612_v44 = vld [vmem:[%s829_s0 + $0x38] sm:$0xff]   ;;  %v560_v48 = vunpack.c.l.bf16 %v611_v34  ;;  %v87_v50 = vmul.f32 %v544_v43, %v694_v2 }
   0x5   :  { %v708_v8 = vld [vmem:[%s831_s3] ss:$0 sm:$0xff]  ;;  %v552_v9 = vunpack.c.l.bf16 %v609_v5  ;;  %v553_v10 = vunpack.c.h.bf16 %v609_v5  ;;  %v83_v13 = vmul.f32 %v536_v3, %v694_v2  ;;  %v84_v14 = vmul.f32 %v537_v4, %v694_v2 }
   0x6   :  { %v93_v23 = vmul.f32 %v556_v15, %v694_v2  ;;  %v94_v24 = vmul.f32 %v557_v16, %v694_v2  ;;  %v108_v27 = vadd.f32 %v708_v8, %v85_v19  ;;  %v109_v28 = vadd.f32 %v708_v8, %v86_v20  ;;  %v765_v20 = vld [vmem:[%s832_s4] ss:$0 sm:$0xff] }
   0x7   :  { %v91_v17 = vmul.f32 %v552_v9, %v694_v2  ;;  %v92_v18 = vmul.f32 %v553_v10, %v694_v2  ;;  %v106_v21 = vadd.f32 %v708_v8, %v83_v13  ;;  %v107_v22 = vadd.f32 %v708_v8, %v84_v14 }
   0x8   :  { %v116_v32 = vadd.f32 %v708_v8, %v93_v23  ;;  %v117_v33 = vadd.f32 %v708_v8, %v94_v24  ;;  %v124_v37 = vmax.f32 %v108_v27, 0.0  ;;  %v125_v38 = vmax.f32 %v109_v28, 0.0 }
   0x9   :  { %v114_v25 = vadd.f32 %v708_v8, %v91_v17  ;;  %v115_v26 = vadd.f32 %v708_v8, %v92_v18  ;;  %v122_v30 = vmax.f32 %v106_v21, 0.0  ;;  %v123_v31 = vmax.f32 %v107_v22, 0.0  ;;  %v770_v21 = vld [vmem:[%s833_s5] ss:$0 sm:$0xff] }
   0xa   :  { %v132_v41 = vmax.f32 %v116_v32, 0.0  ;;  %v133_v42 = vmax.f32 %v117_v33, 0.0  ;;  %v139_v46 = vpack.c.bf16 %v125_v38, %v124_v37  ;;  %v561_v51 = vunpack.c.h.bf16 %v611_v34 }
   0xb   :  { %v130_v35 = vmax.f32 %v114_v25, 0.0  ;;  %v131_v36 = vmax.f32 %v115_v26, 0.0  ;;  %v138_v40 = vpack.c.bf16 %v123_v31, %v122_v30  ;;  %v548_v52 = vunpack.c.l.bf16 %v608_v39 }
   0xc   :  { %v143_v49 = vpack.c.bf16 %v133_v42, %v132_v41  ;;  %v88_v53 = vmul.f32 %v545_v47, %v694_v2  ;;  %v95_v54 = vmul.f32 %v560_v48, %v694_v2  ;;  %v549_v55 = vunpack.c.h.bf16 %v608_v39 }
   0xd   :  { %v142_v45 = vpack.c.bf16 %v131_v36, %v130_v35  ;;  %631 = vmatprep.mubr.msk.bf16.mxu0 %vm170_vm0, %v138_v40  ;;  %v564_v56 = vunpack.c.l.bf16 %v612_v44  ;;  %v110_v57 = vadd.f32 %v708_v8, %v87_v50  ;;  %v96_v58 = vmul.f32 %v561_v51, %v694_v2 }
   0xe   :  { %632 = vmatmul.mubr.msk.bf16.vlgmr.msra.gmra.mrb[0].mxu0 %vm170_vm0, %v139_v46  ;;  %v89_v59 = vmul.f32 %v548_v52, %v694_v2  ;;  %v565_v60 = vunpack.c.h.bf16 %v612_v44  ;;  %v111_v61 = vadd.f32 %v708_v8, %v88_v53  ;;  %v118_v62 = vadd.f32 %v708_v8, %v95_v54 }
   0xf   :  { %639 = vmatprep.mubr.msk.bf16.mxu1 %vm170_vm0, %v142_v45  ;;  %v90_v63 = vmul.f32 %v549_v55, %v694_v2  ;;  %v97_v0 = vmul.f32 %v564_v56, %v694_v2  ;;  %v126_v1 = vmax.f32 %v110_v57, 0.0  ;;  %v119_v3 = vadd.f32 %v708_v8, %v96_v58 }
  0x10   :  { %640 = vmatmul.mubr.msk.bf16.vlgmr.msra.gmra.mrb[0].mxu1 %vm170_vm0, %v143_v49  ;;  %v112_v4 = vadd.f32 %v708_v8, %v89_v59  ;;  %v98_v5 = vmul.f32 %v565_v60, %v694_v2  ;;  %v127_v6 = vmax.f32 %v111_v61, 0.0  ;;  %v134_v7 = vmax.f32 %v118_v62, 0.0 }
  0x11   :  { %v113_v9 = vadd.f32 %v708_v8, %v90_v63  ;;  %v120_v10 = vadd.f32 %v708_v8, %v97_v0  ;;  %v135_v11 = vmax.f32 %v119_v3, 0.0 }
  0x12   :  { %v128_v12 = vmax.f32 %v112_v4, 0.0  ;;  %v121_v13 = vadd.f32 %v708_v8, %v98_v5  ;;  %v140_v14 = vpack.c.bf16 %v127_v6, %v126_v1 }
  0x13   :  { %v129_v15 = vmax.f32 %v113_v9, 0.0  ;;  %v136_v16 = vmax.f32 %v120_v10, 0.0  ;;  %v144_v17 = vpack.c.bf16 %v135_v11, %v134_v7 }
  0x14   :  { %v137_v18 = vmax.f32 %v121_v13, 0.0  ;;  %635 = vmatprep.mubr.msk.bf16.mxu0 %vm170_vm0, %v140_v14 }
  0x15   :  { %v141_v19 = vpack.c.bf16 %v129_v15, %v128_v12  ;;  %643 = vmatprep.mubr.msk.bf16.mxu1 %vm170_vm0, %v144_v17 }
  0x16   :  { %v145_v2 = vpack.c.bf16 %v137_v18, %v136_v16 }
  0x17   :  { %636 = vmatmul.mubr.msk.bf16.gmra.mrb[4].mxu0 %vm170_vm0, %v141_v19 }
  0x18   :  { %644 = vmatmul.mubr.msk.bf16.gmra.mrb[4].mxu1 %vm170_vm0, %v145_v2 }
  0xe1   :  { %v633_v8 = vpop.f32.mrb[0].mxu0 }
  0xe2   :  { %v352_v22 = vmul.f32 %v633_v8, %v765_v20  ;;  %v229_v24 = vpop.f32.mrb[1].mxu0 }
  0xe3   :  { %v641_v23 = vpop.f32.mrb[0].mxu1  ;;  %v350_v26 = vmul.f32 %v765_v20, %v229_v24  ;;  %v634_v28 = vpop.f32.mrb[2].mxu0 }
  0xe4   :  { %v360_v25 = vmul.f32 %v641_v23, %v765_v20  ;;  %v261_v27 = vpop.f32.mrb[1].mxu1  ;;  %v375_v29 = vadd.f32 %v770_v21, %v352_v22  ;;  %v353_v31 = vmul.f32 %v634_v28, %v765_v20  ;;  %v232_v33 = vpop.f32.mrb[3].mxu0 }
  0xe5   :  { %v358_v30 = vmul.f32 %v765_v20, %v261_v27  ;;  %v642_v32 = vpop.f32.mrb[2].mxu1  ;;  %v373_v35 = vadd.f32 %v770_v21, %v350_v26  ;;  %v351_v37 = vmul.f32 %v765_v20, %v232_v33 }
  0xe6   :  { %v383_v34 = vadd.f32 %v770_v21, %v360_v25  ;;  %v361_v36 = vmul.f32 %v642_v32, %v765_v20  ;;  %v264_v38 = vpop.f32.mrb[3].mxu1  ;;  %v376_v40 = vadd.f32 %v770_v21, %v353_v31  ;;  %v391_v44 = vmax.f32 %v375_v29, 0.0 }
  0xe7   :  { %v381_v39 = vadd.f32 %v770_v21, %v358_v30  ;;  %v359_v41 = vmul.f32 %v765_v20, %v264_v38  ;;  %v374_v43 = vadd.f32 %v770_v21, %v351_v37  ;;  %v389_v48 = vmax.f32 %v373_v35, 0.0 }
  0xe8   :  { %v384_v42 = vadd.f32 %v770_v21, %v361_v36  ;;  %v392_v45 = vmax.f32 %v376_v40, 0.0  ;;  %v399_v47 = vmax.f32 %v383_v34, 0.0 }
  0xe9   :  { %v382_v46 = vadd.f32 %v770_v21, %v359_v41  ;;  %v390_v50 = vmax.f32 %v374_v43, 0.0  ;;  %v397_v51 = vmax.f32 %v381_v39, 0.0 }
  0xea   :  { %v400_v49 = vmax.f32 %v384_v42, 0.0  ;;  %v574_v52 = vpack.c.bf16 %v392_v45, %v391_v44  ;;  %v637_v56 = vpop.f32.mrb[4].mxu0 }
  0xeb   :  { %v398_v53 = vmax.f32 %v382_v46, 0.0  ;;  %v569_v55 = vpack.c.bf16 %v390_v50, %v389_v48  ;;  %v356_v58 = vmul.f32 %v637_v56, %v765_v20  ;;  %v645_v59 = vpop.f32.mrb[4].mxu1  ;;  %v245_v60 = vpop.f32.mrb[5].mxu0 }
  0xec   :  { %v594_v54 = vpack.c.bf16 %v400_v49, %v399_v47  ;;  %613 = vst [vmem:[%s834_s6 + $0x8] sm:$0xff] %v574_v52   ;;  %v364_v61 = vmul.f32 %v645_v59, %v765_v20  ;;  %v354_v62 = vmul.f32 %v765_v20, %v245_v60  ;;  %v277_v63 = vpop.f32.mrb[5].mxu1  ;;  %v638_v0 = vpop.f32.mrb[6].mxu0 }
  0xed   :  { %v589_v57 = vpack.c.bf16 %v398_v53, %v397_v51  ;;  %570 = vst [vmem:[%s834_s6] sm:$0xff] %v569_v55   ;;  %v379_v1 = vadd.f32 %v770_v21, %v356_v58  ;;  %v362_v3 = vmul.f32 %v765_v20, %v277_v63  ;;  %v357_v4 = vmul.f32 %v638_v0, %v765_v20  ;;  %v646_v5 = vpop.f32.mrb[6].mxu1  ;;  %v248_v6 = vpop.f32.mrb[7].mxu0 }
  0xee   :  { %617 = vst [vmem:[%s834_s6 + $0x28] sm:$0xff] %v594_v54   ;;  %v387_v7 = vadd.f32 %v770_v21, %v364_v61  ;;  %v377_v9 = vadd.f32 %v770_v21, %v354_v62  ;;  %v365_v10 = vmul.f32 %v646_v5, %v765_v20  ;;  %v355_v11 = vmul.f32 %v765_v20, %v248_v6  ;;  %v280_v12 = vpop.f32.mrb[7].mxu1 }
  0xef   :  { %616 = vst [vmem:[%s834_s6 + $0x20] sm:$0xff] %v589_v57   ;;  %v385_v13 = vadd.f32 %v770_v21, %v362_v3  ;;  %v380_v14 = vadd.f32 %v770_v21, %v357_v4  ;;  %v363_v15 = vmul.f32 %v765_v20, %v280_v12  ;;  %v395_v18 = vmax.f32 %v379_v1, 0.0 }
  0xf0   :  { %v388_v16 = vadd.f32 %v770_v21, %v365_v10  ;;  %v378_v17 = vadd.f32 %v770_v21, %v355_v11  ;;  %v403_v8 = vmax.f32 %v387_v7, 0.0  ;;  %v393_v22 = vmax.f32 %v377_v9, 0.0 }
  0xf1   :  { %v396_v19 = vmax.f32 %v380_v14, 0.0  ;;  %v386_v2 = vadd.f32 %v770_v21, %v363_v15  ;;  %v401_v25 = vmax.f32 %v385_v13, 0.0 }
  0xf2   :  { %v404_v23 = vmax.f32 %v388_v16, 0.0  ;;  %v394_v24 = vmax.f32 %v378_v17, 0.0 }
  0xf3   :  { %v584_v26 = vpack.c.bf16 %v396_v19, %v395_v18  ;;  %v402_v27 = vmax.f32 %v386_v2, 0.0 }
  0xf4   :  { %v604_v28 = vpack.c.bf16 %v404_v23, %v403_v8  ;;  %v579_v29 = vpack.c.bf16 %v394_v24, %v393_v22 }
  0xf5   :  { %615 = vst [vmem:[%s834_s6 + $0x18] sm:$0xff] %v584_v26   ;;  %v599_v20 = vpack.c.bf16 %v402_v27, %v401_v25 }
  0xf6   :  { %619 = vst [vmem:[%s834_s6 + $0x38] sm:$0xff] %v604_v28   ;;  %614 = vst [vmem:[%s834_s6 + $0x10] sm:$0xff] %v579_v29  }
  0xf7   :  { %618 = vst [vmem:[%s834_s6 + $0x30] sm:$0xff] %v599_v20  }

// kernel: densenet_forward.14
= control target key start
LH: loop header
LB: loop body
LE: loop exit
PB: predicated region body
PF: predicated region fallthrough
CT: control target
= control target key end

     0   :  { %vm304_vm0 = vcmask 125952   ;;  %s871_s0 = inlined_call_operand.vmem [shape: bf16[128,16], index: 0, kind: input, shape index: {}]   ;;  %s872_s1 = inlined_call_operand.vmem [shape: bf16[128,16], index: 1, kind: input, shape index: {}]   ;;  %s873_s2 = inlined_call_operand.vmem [shape: bf16[128,16], index: 2, kind: input, shape index: {}]   ;;  %s874_s3 = inlined_call_operand.vmem [shape: bf16[128,16], index: 3, kind: input, shape index: {}]   ;;  %s875_s4 = inlined_call_operand.vmem [shape: bf16[128,16], index: 4, kind: input, shape index: {}]   ;;  %s876_s5 = inlined_call_operand.vmem [shape: bf16[128,16], index: 5, kind: input, shape index: {}]   ;;  %s877_s6 = inlined_call_operand.vmem [shape: bf16[128,16], index: 6, kind: input, shape index: {}]   ;;  %s878_s7 = inlined_call_operand.vmem [shape: bf16[128,16], index: 7, kind: input, shape index: {}]   ;;  %s879_s8 = inlined_call_operand.vmem [shape: bf16[128,16], index: 8, kind: input, shape index: {}]   ;;  %s880_s9 = inlined_call_operand.vmem [shape: bf16[128,16], index: 9, kind: output, shape index: {}]  }
   0x1   :  { %v32_v0 = vld [vmem:[%s871_s0] sm:$0xf]  ;;  %v33_v6 = vld [vmem:[%s871_s0 + $0x4] sm:$0xf]  ;;  %v34_v15 = vld [vmem:[%s871_s0 + $0x8] sm:$0xf] }
   0x2   :  { %v48_v1 = vld [vmem:[%s872_s1] sm:$0xf]  ;;  %v49_v7 = vld [vmem:[%s872_s1 + $0x4] sm:$0xf]  ;;  %v50_v16 = vld [vmem:[%s872_s1 + $0x8] sm:$0xf] }
   0x3   :  { %v80_v2 = vld [vmem:[%s873_s2] sm:$0xf]  ;;  %v64_v3 = vmax.bf16 %v48_v1, %v32_v0  ;;  %v81_v8 = vld [vmem:[%s873_s2 + $0x4] sm:$0xf]  ;;  %v65_v10 = vmax.bf16 %v49_v7, %v33_v6  ;;  %v82_v17 = vld [vmem:[%s873_s2 + $0x8] sm:$0xf]  ;;  %v66_v20 = vmax.bf16 %v50_v16, %v34_v15 }
   0x4   :  { %v112_v4 = vld [vmem:[%s874_s3] sm:$0xf]  ;;  %v113_v13 = vld [vmem:[%s874_s3 + $0x4] sm:$0xf]  ;;  %v114_v24 = vld [vmem:[%s874_s3 + $0x8] sm:$0xf] }
   0x5   :  { %v96_v5 = vmax.bf16 %v80_v2, %v64_v3  ;;  %v144_v9 = vld [vmem:[%s875_s4] sm:$0xf]  ;;  %v97_v14 = vmax.bf16 %v81_v8, %v65_v10  ;;  %v145_v19 = vld [vmem:[%s875_s4 + $0x4] sm:$0xf]  ;;  %v98_v26 = vmax.bf16 %v82_v17, %v66_v20  ;;  %v35_v27 = vld [vmem:[%s871_s0 + $0xc] sm:$0xf] }
   0x6   :  { %v176_v12 = vld [vmem:[%s876_s5] sm:$0xf]  ;;  %v177_v23 = vld [vmem:[%s876_s5 + $0x4] sm:$0xf]  ;;  %v51_v28 = vld [vmem:[%s872_s1 + $0xc] sm:$0xf] }
   0x7   :  { %v128_v11 = vmax.bf16 %v112_v4, %v96_v5  ;;  %v208_v21 = vld [vmem:[%s877_s6] sm:$0xf]  ;;  %v129_v22 = vmax.bf16 %v113_v13, %v97_v14  ;;  %v83_v29 = vld [vmem:[%s873_s2 + $0xc] sm:$0xf]  ;;  %v146_v33 = vld [vmem:[%s875_s4 + $0x8] sm:$0xf]  ;;  %v67_v34 = vmax.bf16 %v51_v28, %v35_v27  ;;  %v130_v37 = vmax.bf16 %v114_v24, %v98_v26 }
   0x8   :  { %v240_v30 = vld [vmem:[%s878_s7] sm:$0xf]  ;;  %v209_v36 = vld [vmem:[%s877_s6 + $0x4] sm:$0xf]  ;;  %v178_v38 = vld [vmem:[%s876_s5 + $0x8] sm:$0xf] }
   0x9   :  { %v160_v18 = vmax.bf16 %v144_v9, %v128_v11  ;;  %v272_v31 = vld [vmem:[%s879_s8] sm:$0xf]  ;;  %v161_v32 = vmax.bf16 %v145_v19, %v129_v22  ;;  %v115_v39 = vld [vmem:[%s874_s3 + $0xc] sm:$0xf]  ;;  %v99_v41 = vmax.bf16 %v83_v29, %v67_v34  ;;  %v36_v42 = vld [vmem:[%s871_s0 + $0x10] sm:$0xf]  ;;  %v162_v48 = vmax.bf16 %v146_v33, %v130_v37 }
   0xa   :  { %v52_v43 = vld [vmem:[%s872_s1 + $0x10] sm:$0xf]  ;;  %v241_v46 = vld [vmem:[%s878_s7 + $0x4] sm:$0xf]  ;;  %v147_v49 = vld [vmem:[%s875_s4 + $0xc] sm:$0xf] }
   0xb   :  { %v192_v25 = vmax.bf16 %v176_v12, %v160_v18  ;;  %v193_v40 = vmax.bf16 %v177_v23, %v161_v32  ;;  %v84_v44 = vld [vmem:[%s873_s2 + $0x10] sm:$0xf]  ;;  %v273_v47 = vld [vmem:[%s879_s8 + $0x4] sm:$0xf]  ;;  %v68_v50 = vmax.bf16 %v52_v43, %v36_v42  ;;  %v210_v52 = vld [vmem:[%s877_s6 + $0x8] sm:$0xf]  ;;  %v131_v53 = vmax.bf16 %v115_v39, %v99_v41 }
   0xc   :  { %v179_v54 = vld [vmem:[%s876_s5 + $0xc] sm:$0xf]  ;;  %v116_v55 = vld [vmem:[%s874_s3 + $0x10] sm:$0xf]  ;;  %v194_v57 = vmax.bf16 %v178_v38, %v162_v48  ;;  %v37_v59 = vld [vmem:[%s871_s0 + $0x14] sm:$0xf] }
   0xd   :  { %v224_v35 = vmax.bf16 %v208_v21, %v192_v25  ;;  %v225_v51 = vmax.bf16 %v209_v36, %v193_v40  ;;  %v100_v58 = vmax.bf16 %v84_v44, %v68_v50  ;;  %v53_v60 = vld [vmem:[%s872_s1 + $0x14] sm:$0xf]  ;;  %v242_v63 = vld [vmem:[%s878_s7 + $0x8] sm:$0xf]  ;;  %v163_v1 = vmax.bf16 %v147_v49, %v131_v53  ;;  %v148_v2 = vld [vmem:[%s875_s4 + $0x10] sm:$0xf] }
   0xe   :  { %v85_v61 = vld [vmem:[%s873_s2 + $0x14] sm:$0xf]  ;;  %v274_v0 = vld [vmem:[%s879_s8 + $0x8] sm:$0xf]  ;;  %v69_v3 = vmax.bf16 %v53_v60, %v37_v59  ;;  %v226_v4 = vmax.bf16 %v210_v52, %v194_v57  ;;  %v211_v5 = vld [vmem:[%s877_s6 + $0xc] sm:$0xf] }
   0xf   :  { %v256_v45 = vmax.bf16 %v240_v30, %v224_v35  ;;  %v257_v62 = vmax.bf16 %v241_v46, %v225_v51  ;;  %v132_v6 = vmax.bf16 %v116_v55, %v100_v58  ;;  %v180_v7 = vld [vmem:[%s876_s5 + $0x10] sm:$0xf]  ;;  %v117_v8 = vld [vmem:[%s874_s3 + $0x14] sm:$0xf]  ;;  %v195_v10 = vmax.bf16 %v179_v54, %v163_v1  ;;  %v38_v12 = vld [vmem:[%s871_s0 + $0x18] sm:$0xf] }
  0x10   :  { %v101_v11 = vmax.bf16 %v85_v61, %v69_v3  ;;  %v54_v13 = vld [vmem:[%s872_s1 + $0x18] sm:$0xf]  ;;  %v258_v15 = vmax.bf16 %v242_v63, %v226_v4  ;;  %v243_v16 = vld [vmem:[%s878_s7 + $0xc] sm:$0xf]  ;;  %v149_v19 = vld [vmem:[%s875_s4 + $0x14] sm:$0xf] }
  0x11   :  { %v288_v56 = vmax.bf16 %v272_v31, %v256_v45  ;;  %v289_v9 = vmax.bf16 %v273_v47, %v257_v62  ;;  %v86_v14 = vld [vmem:[%s873_s2 + $0x18] sm:$0xf]  ;;  %v275_v17 = vld [vmem:[%s879_s8 + $0xc] sm:$0xf]  ;;  %v164_v18 = vmax.bf16 %v148_v2, %v132_v6  ;;  %v70_v20 = vmax.bf16 %v54_v13, %v38_v12  ;;  %v212_v22 = vld [vmem:[%s877_s6 + $0x10] sm:$0xf] }
  0x12   :  { %v227_v21 = vmax.bf16 %v211_v5, %v195_v10  ;;  %v133_v23 = vmax.bf16 %v117_v8, %v101_v11  ;;  %v181_v24 = vld [vmem:[%s876_s5 + $0x14] sm:$0xf]  ;;  %v118_v25 = vld [vmem:[%s874_s3 + $0x18] sm:$0xf]  ;;  %v290_v26 = vmax.bf16 %v274_v0, %v258_v15  ;;  %v39_v29 = vld [vmem:[%s871_s0 + $0x1c] sm:$0xf] }
  0x13   :  { %305 = vst.msk [vmem:[%s880_s9] sm:$0xf] %vm304_vm0, %v288_v56  ;;  %306 = vst.msk [vmem:[%s880_s9 + $0x4] sm:$0xf] %vm304_vm0, %v289_v9  ;;  %v196_v27 = vmax.bf16 %v180_v7, %v164_v18  ;;  %v102_v28 = vmax.bf16 %v86_v14, %v70_v20  ;;  %v55_v30 = vld [vmem:[%s872_s1 + $0x1c] sm:$0xf] }
  0x14   :  { %v87_v31 = vld [vmem:[%s873_s2 + $0x1c] sm:$0xf]  ;;  %v259_v32 = vmax.bf16 %v243_v16, %v227_v21  ;;  %v244_v33 = vld [vmem:[%s878_s7 + $0x10] sm:$0xf]  ;;  %v165_v35 = vmax.bf16 %v149_v19, %v133_v23  ;;  %v150_v36 = vld [vmem:[%s875_s4 + $0x18] sm:$0xf]  ;;  %v71_v37 = vmax.bf16 %v55_v30, %v39_v29 }
  0x15   :  { %v276_v34 = vld [vmem:[%s879_s8 + $0x10] sm:$0xf]  ;;  %307 = vst.msk [vmem:[%s880_s9 + $0x8] sm:$0xf] %vm304_vm0, %v290_v26  ;;  %v228_v38 = vmax.bf16 %v212_v22, %v196_v27  ;;  %v213_v39 = vld [vmem:[%s877_s6 + $0x14] sm:$0xf]  ;;  %v134_v40 = vmax.bf16 %v118_v25, %v102_v28 }
  0x16   :  { %v182_v41 = vld [vmem:[%s876_s5 + $0x18] sm:$0xf]  ;;  %v119_v42 = vld [vmem:[%s874_s3 + $0x1c] sm:$0xf]  ;;  %v291_v43 = vmax.bf16 %v275_v17, %v259_v32  ;;  %v197_v44 = vmax.bf16 %v181_v24, %v165_v35  ;;  %v103_v45 = vmax.bf16 %v87_v31, %v71_v37  ;;  %v40_v46 = vld [vmem:[%s871_s0 + $0x20] sm:$0xf] }
  0x17   :  { %v56_v47 = vld [vmem:[%s872_s1 + $0x20] sm:$0xf]  ;;  %v260_v49 = vmax.bf16 %v244_v33, %v228_v38  ;;  %v245_v50 = vld [vmem:[%s878_s7 + $0x14] sm:$0xf]  ;;  %v166_v52 = vmax.bf16 %v150_v36, %v134_v40  ;;  %v151_v53 = vld [vmem:[%s875_s4 + $0x1c] sm:$0xf] }
  0x18   :  { %v88_v48 = vld [vmem:[%s873_s2 + $0x20] sm:$0xf]  ;;  %v277_v51 = vld [vmem:[%s879_s8 + $0x14] sm:$0xf]  ;;  %v72_v54 = vmax.bf16 %v56_v47, %v40_v46  ;;  %308 = vst.msk [vmem:[%s880_s9 + $0xc] sm:$0xf] %vm304_vm0, %v291_v43  ;;  %v229_v55 = vmax.bf16 %v213_v39, %v197_v44  ;;  %v135_v57 = vmax.bf16 %v119_v42, %v103_v45 }
  0x19   :  { %v214_v56 = vld [vmem:[%s877_s6 + $0x18] sm:$0xf]  ;;  %v183_v58 = vld [vmem:[%s876_s5 + $0x1c] sm:$0xf]  ;;  %v120_v59 = vld [vmem:[%s874_s3 + $0x20] sm:$0xf]  ;;  %v292_v60 = vmax.bf16 %v276_v34, %v260_v49  ;;  %v198_v61 = vmax.bf16 %v182_v41, %v166_v52 }
  0x1a   :  { %v104_v62 = vmax.bf16 %v88_v48, %v72_v54  ;;  %v41_v63 = vld [vmem:[%s871_s0 + $0x24] sm:$0xf]  ;;  %v261_v2 = vmax.bf16 %v245_v50, %v229_v55  ;;  %v246_v3 = vld [vmem:[%s878_s7 + $0x18] sm:$0xf]  ;;  %v167_v5 = vmax.bf16 %v151_v53, %v135_v57  ;;  %v152_v6 = vld [vmem:[%s875_s4 + $0x20] sm:$0xf] }
  0x1b   :  { %v57_v0 = vld [vmem:[%s872_s1 + $0x24] sm:$0xf]  ;;  %v278_v4 = vld [vmem:[%s879_s8 + $0x18] sm:$0xf]  ;;  %309 = vst.msk [vmem:[%s880_s9 + $0x10] sm:$0xf] %vm304_vm0, %v292_v60  ;;  %v230_v8 = vmax.bf16 %v214_v56, %v198_v61 }
  0x1c   :  { %v89_v1 = vld [vmem:[%s873_s2 + $0x24] sm:$0xf]  ;;  %v73_v7 = vmax.bf16 %v57_v0, %v41_v63  ;;  %v215_v9 = vld [vmem:[%s877_s6 + $0x1c] sm:$0xf]  ;;  %v136_v10 = vmax.bf16 %v120_v59, %v104_v62  ;;  %v184_v11 = vld [vmem:[%s876_s5 + $0x20] sm:$0xf]  ;;  %v293_v13 = vmax.bf16 %v277_v51, %v261_v2  ;;  %v199_v14 = vmax.bf16 %v183_v58, %v167_v5 }
  0x1d   :  { %v121_v12 = vld [vmem:[%s874_s3 + $0x24] sm:$0xf]  ;;  %v42_v16 = vld [vmem:[%s871_s0 + $0x28] sm:$0xf]  ;;  %v262_v19 = vmax.bf16 %v246_v3, %v230_v8  ;;  %v247_v20 = vld [vmem:[%s878_s7 + $0x1c] sm:$0xf] }
  0x1e   :  { %v105_v15 = vmax.bf16 %v89_v1, %v73_v7  ;;  %v58_v17 = vld [vmem:[%s872_s1 + $0x28] sm:$0xf]  ;;  %v279_v21 = vld [vmem:[%s879_s8 + $0x1c] sm:$0xf]  ;;  %v168_v22 = vmax.bf16 %v152_v6, %v136_v10  ;;  %v153_v23 = vld [vmem:[%s875_s4 + $0x24] sm:$0xf]  ;;  %v231_v25 = vmax.bf16 %v215_v9, %v199_v14 }
  0x1f   :  { %v90_v18 = vld [vmem:[%s873_s2 + $0x28] sm:$0xf]  ;;  %v74_v24 = vmax.bf16 %v58_v17, %v42_v16  ;;  %310 = vst.msk [vmem:[%s880_s9 + $0x14] sm:$0xf] %vm304_vm0, %v293_v13  ;;  %v216_v26 = vld [vmem:[%s877_s6 + $0x20] sm:$0xf]  ;;  %v294_v30 = vmax.bf16 %v278_v4, %v262_v19 }
  0x20   :  { %v137_v27 = vmax.bf16 %v121_v12, %v105_v15  ;;  %v185_v28 = vld [vmem:[%s876_s5 + $0x24] sm:$0xf]  ;;  %v122_v29 = vld [vmem:[%s874_s3 + $0x28] sm:$0xf]  ;;  %v200_v31 = vmax.bf16 %v184_v11, %v168_v22  ;;  %v43_v33 = vld [vmem:[%s871_s0 + $0x2c] sm:$0xf]  ;;  %v263_v36 = vmax.bf16 %v247_v20, %v231_v25 }
  0x21   :  { %v106_v32 = vmax.bf16 %v90_v18, %v74_v24  ;;  %v59_v34 = vld [vmem:[%s872_s1 + $0x2c] sm:$0xf]  ;;  %v248_v37 = vld [vmem:[%s878_s7 + $0x20] sm:$0xf]  ;;  %v154_v40 = vld [vmem:[%s875_s4 + $0x28] sm:$0xf] }
  0x22   :  { %v91_v35 = vld [vmem:[%s873_s2 + $0x2c] sm:$0xf]  ;;  %v280_v38 = vld [vmem:[%s879_s8 + $0x20] sm:$0xf]  ;;  %v169_v39 = vmax.bf16 %v153_v23, %v137_v27  ;;  %v75_v41 = vmax.bf16 %v59_v34, %v43_v33  ;;  %311 = vst.msk [vmem:[%s880_s9 + $0x18] sm:$0xf] %vm304_vm0, %v294_v30  ;;  %v232_v42 = vmax.bf16 %v216_v26, %v200_v31  ;;  %v295_v47 = vmax.bf16 %v279_v21, %v263_v36 }
  0x23   :  { %v217_v43 = vld [vmem:[%s877_s6 + $0x24] sm:$0xf]  ;;  %v138_v44 = vmax.bf16 %v122_v29, %v106_v32  ;;  %v186_v45 = vld [vmem:[%s876_s5 + $0x28] sm:$0xf]  ;;  %v123_v46 = vld [vmem:[%s874_s3 + $0x2c] sm:$0xf] }
  0x24   :  { %v201_v48 = vmax.bf16 %v185_v28, %v169_v39  ;;  %v107_v49 = vmax.bf16 %v91_v35, %v75_v41  ;;  %v44_v50 = vld [vmem:[%s871_s0 + $0x30] sm:$0xf]  ;;  %v264_v53 = vmax.bf16 %v248_v37, %v232_v42  ;;  %v249_v54 = vld [vmem:[%s878_s7 + $0x24] sm:$0xf]  ;;  %v155_v57 = vld [vmem:[%s875_s4 + $0x2c] sm:$0xf] }
  0x25   :  { %v60_v51 = vld [vmem:[%s872_s1 + $0x30] sm:$0xf]  ;;  %v281_v55 = vld [vmem:[%s879_s8 + $0x24] sm:$0xf]  ;;  %v170_v56 = vmax.bf16 %v154_v40, %v138_v44  ;;  %312 = vst.msk [vmem:[%s880_s9 + $0x1c] sm:$0xf] %vm304_vm0, %v295_v47 }
  0x26   :  { %v92_v52 = vld [vmem:[%s873_s2 + $0x30] sm:$0xf]  ;;  %v76_v58 = vmax.bf16 %v60_v51, %v44_v50  ;;  %v233_v59 = vmax.bf16 %v217_v43, %v201_v48  ;;  %v218_v60 = vld [vmem:[%s877_s6 + $0x28] sm:$0xf]  ;;  %v139_v61 = vmax.bf16 %v123_v46, %v107_v49  ;;  %v187_v62 = vld [vmem:[%s876_s5 + $0x2c] sm:$0xf]  ;;  %v296_v0 = vmax.bf16 %v280_v38, %v264_v53 }
  0x27   :  { %v124_v63 = vld [vmem:[%s874_s3 + $0x30] sm:$0xf]  ;;  %v202_v1 = vmax.bf16 %v186_v45, %v170_v56  ;;  %v45_v3 = vld [vmem:[%s871_s0 + $0x34] sm:$0xf]  ;;  %v250_v7 = vld [vmem:[%s878_s7 + $0x28] sm:$0xf] }
  0x28   :  { %v108_v2 = vmax.bf16 %v92_v52, %v76_v58  ;;  %v61_v4 = vld [vmem:[%s872_s1 + $0x34] sm:$0xf]  ;;  %v265_v6 = vmax.bf16 %v249_v54, %v233_v59  ;;  %v282_v8 = vld [vmem:[%s879_s8 + $0x28] sm:$0xf]  ;;  %v171_v9 = vmax.bf16 %v155_v57, %v139_v61  ;;  %v156_v10 = vld [vmem:[%s875_s4 + $0x30] sm:$0xf] }
  0x29   :  { %v93_v5 = vld [vmem:[%s873_s2 + $0x34] sm:$0xf]  ;;  %v77_v11 = vmax.bf16 %v61_v4, %v45_v3  ;;  %313 = vst.msk [vmem:[%s880_s9 + $0x20] sm:$0xf] %vm304_vm0, %v296_v0  ;;  %v234_v12 = vmax.bf16 %v218_v60, %v202_v1  ;;  %v219_v13 = vld [vmem:[%s877_s6 + $0x2c] sm:$0xf] }
  0x2a   :  { %v140_v14 = vmax.bf16 %v124_v63, %v108_v2  ;;  %v188_v15 = vld [vmem:[%s876_s5 + $0x30] sm:$0xf]  ;;  %v125_v16 = vld [vmem:[%s874_s3 + $0x34] sm:$0xf]  ;;  %v297_v17 = vmax.bf16 %v281_v55, %v265_v6  ;;  %v203_v18 = vmax.bf16 %v187_v62, %v171_v9  ;;  %v46_v20 = vld [vmem:[%s871_s0 + $0x38] sm:$0xf] }
  0x2b   :  { %v109_v19 = vmax.bf16 %v93_v5, %v77_v11  ;;  %v62_v21 = vld [vmem:[%s872_s1 + $0x38] sm:$0xf]  ;;  %v266_v23 = vmax.bf16 %v250_v7, %v234_v12  ;;  %v251_v24 = vld [vmem:[%s878_s7 + $0x2c] sm:$0xf]  ;;  %v157_v27 = vld [vmem:[%s875_s4 + $0x34] sm:$0xf] }
  0x2c   :  { %v94_v22 = vld [vmem:[%s873_s2 + $0x38] sm:$0xf]  ;;  %v283_v25 = vld [vmem:[%s879_s8 + $0x2c] sm:$0xf]  ;;  %v172_v26 = vmax.bf16 %v156_v10, %v140_v14  ;;  %v78_v28 = vmax.bf16 %v62_v21, %v46_v20  ;;  %314 = vst.msk [vmem:[%s880_s9 + $0x24] sm:$0xf] %vm304_vm0, %v297_v17  ;;  %v235_v29 = vmax.bf16 %v219_v13, %v203_v18 }
  0x2d   :  { %v220_v30 = vld [vmem:[%s877_s6 + $0x30] sm:$0xf]  ;;  %v141_v31 = vmax.bf16 %v125_v16, %v109_v19  ;;  %v189_v32 = vld [vmem:[%s876_s5 + $0x34] sm:$0xf]  ;;  %v126_v33 = vld [vmem:[%s874_s3 + $0x38] sm:$0xf]  ;;  %v298_v34 = vmax.bf16 %v282_v8, %v266_v23 }
  0x2e   :  { %v204_v35 = vmax.bf16 %v188_v15, %v172_v26  ;;  %v110_v36 = vmax.bf16 %v94_v22, %v78_v28  ;;  %v47_v37 = vld [vmem:[%s871_s0 + $0x3c] sm:$0xf]  ;;  %v267_v40 = vmax.bf16 %v251_v24, %v235_v29  ;;  %v252_v41 = vld [vmem:[%s878_s7 + $0x30] sm:$0xf]  ;;  %v158_v43 = vld [vmem:[%s875_s4 + $0x38] sm:$0xf] }
  0x2f   :  { %v63_v38 = vld [vmem:[%s872_s1 + $0x3c] sm:$0xf]  ;;  %v173_v42 = vmax.bf16 %v157_v27, %v141_v31  ;;  %315 = vst.msk [vmem:[%s880_s9 + $0x28] sm:$0xf] %vm304_vm0, %v298_v34  ;;  %v221_v46 = vld [vmem:[%s877_s6 + $0x34] sm:$0xf] }
  0x30   :  { %v95_v39 = vld [vmem:[%s873_s2 + $0x3c] sm:$0xf]  ;;  %v79_v44 = vmax.bf16 %v63_v38, %v47_v37  ;;  %v236_v45 = vmax.bf16 %v220_v30, %v204_v35  ;;  %v142_v47 = vmax.bf16 %v126_v33, %v110_v36  ;;  %v299_v49 = vmax.bf16 %v283_v25, %v267_v40  ;;  %v284_v50 = vld [vmem:[%s879_s8 + $0x30] sm:$0xf]  ;;  %v190_v52 = vld [vmem:[%s876_s5 + $0x38] sm:$0xf] }
  0x31   :  { %v127_v48 = vld [vmem:[%s874_s3 + $0x3c] sm:$0xf]  ;;  %v205_v51 = vmax.bf16 %v189_v32, %v173_v42  ;;  %v253_v55 = vld [vmem:[%s878_s7 + $0x34] sm:$0xf]  ;;  %v222_v59 = vld [vmem:[%s877_s6 + $0x38] sm:$0xf] }
  0x32   :  { %v111_v53 = vmax.bf16 %v95_v39, %v79_v44  ;;  %v268_v54 = vmax.bf16 %v252_v41, %v236_v45  ;;  %v174_v56 = vmax.bf16 %v158_v43, %v142_v47  ;;  %v159_v57 = vld [vmem:[%s875_s4 + $0x3c] sm:$0xf]  ;;  %316 = vst.msk [vmem:[%s880_s9 + $0x2c] sm:$0xf] %vm304_vm0, %v299_v49  ;;  %v285_v62 = vld [vmem:[%s879_s8 + $0x34] sm:$0xf] }
  0x33   :  { %v237_v58 = vmax.bf16 %v221_v46, %v205_v51  ;;  %v191_v0 = vld [vmem:[%s876_s5 + $0x3c] sm:$0xf]  ;;  %v254_v2 = vld [vmem:[%s878_s7 + $0x38] sm:$0xf] }
  0x34   :  { %v143_v60 = vmax.bf16 %v127_v48, %v111_v53  ;;  %v300_v61 = vmax.bf16 %v284_v50, %v268_v54  ;;  %v206_v63 = vmax.bf16 %v190_v52, %v174_v56  ;;  %v223_v5 = vld [vmem:[%s877_s6 + $0x3c] sm:$0xf]  ;;  %v286_v7 = vld [vmem:[%s879_s8 + $0x38] sm:$0xf] }
  0x35   :  { %v269_v1 = vmax.bf16 %v253_v55, %v237_v58  ;;  %v255_v10 = vld [vmem:[%s878_s7 + $0x3c] sm:$0xf] }
  0x36   :  { %v175_v3 = vmax.bf16 %v159_v57, %v143_v60  ;;  %317 = vst.msk [vmem:[%s880_s9 + $0x30] sm:$0xf] %vm304_vm0, %v300_v61  ;;  %v238_v4 = vmax.bf16 %v222_v59, %v206_v63  ;;  %v287_v13 = vld [vmem:[%s879_s8 + $0x3c] sm:$0xf] }
  0x37   :  { %v301_v6 = vmax.bf16 %v285_v62, %v269_v1 }
  0x38   :  { %v207_v8 = vmax.bf16 %v191_v0, %v175_v3  ;;  %v270_v9 = vmax.bf16 %v254_v2, %v238_v4 }
  0x39   :  { %318 = vst.msk [vmem:[%s880_s9 + $0x34] sm:$0xf] %vm304_vm0, %v301_v6 }
  0x3a   :  { %v239_v11 = vmax.bf16 %v223_v5, %v207_v8  ;;  %v302_v12 = vmax.bf16 %v286_v7, %v270_v9 }
  0x3c   :  { %v271_v14 = vmax.bf16 %v255_v10, %v239_v11  ;;  %319 = vst.msk [vmem:[%s880_s9 + $0x38] sm:$0xf] %vm304_vm0, %v302_v12 }
  0x3e   :  { %v303_v15 = vmax.bf16 %v287_v13, %v271_v14 }
  0x40   :  { %320 = vst.msk [vmem:[%s880_s9 + $0x3c] sm:$0xf] %vm304_vm0, %v303_v15 }

// kernel: densenet_forward.13
= control target key start
LH: loop header
LB: loop body
LE: loop exit
PB: predicated region body
PF: predicated region fallthrough
CT: control target
= control target key end

     0   :  { %s1635_s15 = smov 0   ;;  %s1637_s16 = smov 0   ;;  %s1844_s0 = inlined_call_operand.vmem [shape: bf16[512,147], index: 0, kind: input, shape index: {}]   ;;  %s1845_s1 = inlined_call_operand.vmem [shape: bf16[147,128], index: 1, kind: input, shape index: {}]   ;;  %s1846_s2 = inlined_call_operand.vmem [shape: f32[1,128], index: 2, kind: input, shape index: {}]   ;;  %s1847_s3 = inlined_call_operand.vmem [shape: f32[1,128], index: 3, kind: input, shape index: {}]   ;;  %s1848_s4 = inlined_call_operand.vmem [shape: bf16[512,128], index: 4, kind: output, shape index: {}]  }
   0x1   :  { %s1639_s17 = smov 0  }
   0x2 LB: > { %s26_s18 = sadd.s32 1, %s1602_s16  ;;  %p1252_p0 = scmp.ge.s32.totalorder %s1606_s17, 1  ;;  %s1606_s17 = sphi %s1639_s17, %s14_s17   ;;  %s1602_s16 = sphi %s1637_s16, %s1850_s16   ;;  %s1598_s15 = sphi %s1635_s15, %s1849_s15  }
   0x3   : > { %p28_p1 = scmp.ge.s32.totalorder %s26_s18, 2  ;;  %p194_p2 = scmp.lt.s32.totalorder %s1606_s17, 3 }
   0x5   : > { %s1852_s18 = smov (%p28_p1, %s26_s18), 0  ;;  %p195_p3 = pnand %p1252_p0, %p194_p2 }
   0x6   : > { %v1526_v0 = vld [vmem:[%s1845_s1] sm:$0xff] (!%p195_p3)   ;;  %v1608_v1 = vmov (!%p195_p3), 0   ;;  %v1527_v2 = vld [vmem:[%s1845_s1 + $0x8] sm:$0xff] (!%p195_p3)   ;;  %v1528_v3 = vld [vmem:[%s1845_s1 + $0x10] sm:$0xff] (!%p195_p3)   ;;  %s1253_s25 = sshll.u32 (!%p195_p3), %s1598_s15, 5  ;;  %vm575_vm0 = vcmask (!%p195_p3), 154624  }
   0x7   : > { %198 = sbr.rel (%p195_p3) target bundleno = 327 (0x147), region = 36  ;;  %631 = vmatprep.subr.bf16.mxu0 (!%p195_p3), %v1608_v1  ;;  %1480 = vmatprep.subr.bf16.mxu1 (!%p195_p3), %v1608_v1  ;;  %p232_p4 = scmp.lt.s32.totalorder (!%p195_p3), %s1253_s25, 63  ;;  %v1529_v4 = vld [vmem:[%s1845_s1 + $0x18] sm:$0xff] (!%p195_p3)   ;;  %v1530_v5 = vld [vmem:[%s1845_s1 + $0x20] sm:$0xff] (!%p195_p3)   ;;  %v1531_v8 = vld [vmem:[%s1845_s1 + $0x28] sm:$0xff] (!%p195_p3)   ;;  %vm624_vm1 = vcmask (!%p195_p3), 1040384  }
   0x8   : > { %632 = vmatpush1.bf16.msra.mxu0 (!%p195_p3), %v1526_v0  ;;  %1490 = vmatpush1.bf16.msra.mxu1 (!%p195_p3), %v1526_v0  ;;  %v1532_v9 = vld [vmem:[%s1845_s1 + $0x30] sm:$0xff] (!%p195_p3)   ;;  %v1533_v10 = vld [vmem:[%s1845_s1 + $0x38] sm:$0xff] (!%p195_p3)   ;;  %vm625_vm2 = vcmask (!%p195_p3), 1041408   ;;  %v1609_v11 = vmov (!%p195_p3), 65535   ;;  %v1534_v13 = vld [vmem:[%s1845_s1 + $0x40] sm:$0xff] (!%p195_p3)  }
   0x9   : > { %633 = vmatprep.subr.bf16.mxu0 (!%p195_p3), %v1608_v1  ;;  %1481 = vmatprep.subr.bf16.mxu1 (!%p195_p3), %v1608_v1  ;;  %v626_v12 = vsel (!%p195_p3), %vm624_vm1, 4294967295, %v1609_v11  ;;  %v1535_v14 = vld [vmem:[%s1845_s1 + $0x48] ss:$0 sps:$4 sm:$0x33] (!%p195_p3)   ;;  %v1742_v47 = vld [vmem:[%s1846_s2] ss:$0 sm:$0xff] (!%p195_p3) }
   0xa   : > { %v627_v15 = vsel (!%p195_p3), %vm625_vm2, %v626_v12, 0  ;;  %v1747_v49 = vld [vmem:[%s1847_s3] ss:$0 sm:$0xff] (!%p195_p3) }
   0xb   : > { %v629_v16 = vand.u32 (!%p195_p3), %v1535_v14, %v627_v15 }
   0xc   : > { %634 = vmatpush1.bf16.msra.mxu0 (!%p195_p3), %v1527_v2  ;;  %1491 = vmatpush1.bf16.msra.mxu1 (!%p195_p3), %v1527_v2 }
   0xd   : > { %635 = vmatprep.subr.bf16.mxu0 (!%p195_p3), %v1608_v1  ;;  %1482 = vmatprep.subr.bf16.mxu1 (!%p195_p3), %v1608_v1 }
   0xe   : > { %s1854_s25 = smov (!%p232_p4, %s1253_s25), 63 }
   0xf   : > { %s1352_s28 = sshll.u32 %s1854_s25, 3  ;;  %s1257_s26 = sshll.u32 %s1854_s25, 2 }
  0x10   : > { %636 = vmatpush1.bf16.msra.mxu0 %v1528_v3  ;;  %1492 = vmatpush1.bf16.msra.mxu1 %v1528_v3  ;;  %s1671_s5 = scalar_lea.vmem %s1844_s0, %s1352_s28  ;;  %s1761_s29 = scalar_lea.vmem %s1848_s4, %s1257_s26 }
  0x11   : > { %637 = vmatprep.subr.bf16.mxu0 %v1608_v1  ;;  %1483 = vmatprep.subr.bf16.mxu1 %v1608_v1  ;;  %v1538_v6 = vld [vmem:[%s1671_s5 + $0x4] ss:$8 sps:$4 sm:$0xff]   ;;  %v1536_v17 = vld [vmem:[%s1671_s5] ss:$8 sps:$4 sm:$0xff]   ;;  %v1542_v19 = vld [vmem:[%s1671_s5 + $0x14] ss:$8 sps:$4 sm:$0xff]  }
  0x12   : > { %v1541_v7 = vld [vmem:[%s1671_s5 + $0x84] ss:$8 sps:$4 sm:$0xff]   ;;  %1300 = vmatprep.mubr.msk.bf16.mxu0 %vm575_vm0, %v1538_v6  ;;  %v1539_v18 = vld [vmem:[%s1671_s5 + $0x80] ss:$8 sps:$4 sm:$0xff]   ;;  %v1544_v20 = vld [vmem:[%s1671_s5 + $0x94] ss:$8 sps:$4 sm:$0xff]  }
  0x13   : > { %1308 = vmatprep.mubr.msk.bf16.mxu1 %vm575_vm0, %v1541_v7  ;;  %v1546_v21 = vld [vmem:[%s1671_s5 + $0x10] ss:$8 sps:$4 sm:$0xff]   ;;  %v1548_v23 = vld [vmem:[%s1671_s5 + $0x24] ss:$8 sps:$4 sm:$0xff]   ;;  %v1552_v25 = vld [vmem:[%s1671_s5 + $0x20] ss:$8 sps:$4 sm:$0xff]  }
  0x14   : > { %638 = vmatpush1.bf16.msra.mxu0 %v1529_v4  ;;  %1493 = vmatpush1.bf16.msra.mxu1 %v1529_v4  ;;  %v1547_v22 = vld [vmem:[%s1671_s5 + $0x90] ss:$8 sps:$4 sm:$0xff]   ;;  %v1550_v24 = vld [vmem:[%s1671_s5 + $0xa4] ss:$8 sps:$4 sm:$0xff]   ;;  %v1553_v26 = vld [vmem:[%s1671_s5 + $0xa0] ss:$8 sps:$4 sm:$0xff]  }
  0x15   : > { %639 = vmatprep.subr.bf16.mxu0 %v1608_v1  ;;  %1484 = vmatprep.subr.bf16.mxu1 %v1608_v1  ;;  %v1554_v27 = vld [vmem:[%s1671_s5 + $0x34] ss:$8 sps:$4 sm:$0xff]   ;;  %v1558_v29 = vld [vmem:[%s1671_s5 + $0x30] ss:$8 sps:$4 sm:$0xff]   ;;  %v1560_v31 = vld [vmem:[%s1671_s5 + $0x44] ss:$8 sps:$4 sm:$0xff]  }
  0x16   : > { %v1556_v28 = vld [vmem:[%s1671_s5 + $0xb4] ss:$8 sps:$4 sm:$0xff]   ;;  %v1559_v30 = vld [vmem:[%s1671_s5 + $0xb0] ss:$8 sps:$4 sm:$0xff]   ;;  %v1562_v32 = vld [vmem:[%s1671_s5 + $0xc4] ss:$8 sps:$4 sm:$0xff]  }
  0x17   : > { %v1564_v33 = vld [vmem:[%s1671_s5 + $0x40] ss:$8 sps:$4 sm:$0xff]   ;;  %v1566_v35 = vld [vmem:[%s1671_s5 + $0x54] ss:$8 sps:$4 sm:$0xff]   ;;  %v1570_v37 = vld [vmem:[%s1671_s5 + $0x50] ss:$8 sps:$4 sm:$0xff]  }
  0x18   : > { %640 = vmatpush1.bf16.msra.mxu0 %v1530_v5  ;;  %1494 = vmatpush1.bf16.msra.mxu1 %v1530_v5  ;;  %v1565_v34 = vld [vmem:[%s1671_s5 + $0xc0] ss:$8 sps:$4 sm:$0xff]   ;;  %v1568_v36 = vld [vmem:[%s1671_s5 + $0xd4] ss:$8 sps:$4 sm:$0xff]   ;;  %v1571_v38 = vld [vmem:[%s1671_s5 + $0xd0] ss:$8 sps:$4 sm:$0xff]  }
  0x19   : > { %641 = vmatprep.subr.bf16.mxu0 %v1608_v1  ;;  %1485 = vmatprep.subr.bf16.mxu1 %v1608_v1  ;;  %v1572_v39 = vld [vmem:[%s1671_s5 + $0x64] ss:$8 sps:$4 sm:$0xff]   ;;  %v1576_v41 = vld [vmem:[%s1671_s5 + $0x60] ss:$8 sps:$4 sm:$0xff]   ;;  %v1578_v43 = vld [vmem:[%s1671_s5 + $0x74] ss:$8 sps:$4 sm:$0xff]  }
  0x1a   : > { %v1574_v40 = vld [vmem:[%s1671_s5 + $0xe4] ss:$8 sps:$4 sm:$0xff]   ;;  %v1577_v42 = vld [vmem:[%s1671_s5 + $0xe0] ss:$8 sps:$4 sm:$0xff]   ;;  %v1580_v44 = vld [vmem:[%s1671_s5 + $0xf4] ss:$8 sps:$4 sm:$0xff]  }
  0x1b   : > { %v1582_v45 = vld [vmem:[%s1671_s5 + $0x70] ss:$8 sps:$4 sm:$0xff]  }
  0x1c   : > { %642 = vmatpush1.bf16.msra.mxu0 %v1531_v8  ;;  %1495 = vmatpush1.bf16.msra.mxu1 %v1531_v8  ;;  %v1583_v46 = vld [vmem:[%s1671_s5 + $0xf0] ss:$8 sps:$4 sm:$0xff]  }
  0x1d   : > { %643 = vmatprep.subr.bf16.mxu0 %v1608_v1  ;;  %1486 = vmatprep.subr.bf16.mxu1 %v1608_v1 }
  0x20   : > { %644 = vmatpush1.bf16.msra.mxu0 %v1532_v9  ;;  %1496 = vmatpush1.bf16.msra.mxu1 %v1532_v9 }
  0x21   : > { %645 = vmatprep.subr.bf16.mxu0 %v1608_v1  ;;  %1487 = vmatprep.subr.bf16.mxu1 %v1608_v1 }
  0x24   : > { %646 = vmatpush1.bf16.msra.mxu0 %v1533_v10  ;;  %1497 = vmatpush1.bf16.msra.mxu1 %v1533_v10 }
  0x25   : > { %647 = vmatprep.subr.bf16.mxu0 %v1608_v1  ;;  %1488 = vmatprep.subr.bf16.mxu1 %v1608_v1 }
  0x28   : > { %648 = vmatpush1.bf16.msra.mxu0 %v1534_v13  ;;  %1498 = vmatpush1.bf16.msra.mxu1 %v1534_v13 }
  0x29   : > { %649 = vmatprep.subr.bf16.mxu0 %v1608_v1  ;;  %1489 = vmatprep.subr.bf16.mxu1 %v1608_v1 }
  0x2c   : > { %650 = vmatpush1.bf16.msra.mxu0 %v629_v16  ;;  %1499 = vmatpush1.bf16.msra.mxu1 %v629_v16 }
  0x2f   : > { %664 = vmatmul.mubr.bf16.vlgmr.msra.gmra.mrb[0].mxu0 %v1536_v17  ;;  %728 = vmatmul.mubr.bf16.vlgmr.msra.gmra.mrb[0].mxu1 %v1539_v18 }
  0x30   : > { %1301 = vmatprep.mubr.msk.bf16.mxu0 %vm575_vm0, %v1542_v19  ;;  %1309 = vmatprep.mubr.msk.bf16.mxu1 %vm575_vm0, %v1544_v20 }
  0x37   : > { %672 = vmatmul.mubr.bf16.gmra.mrb[4].mxu0 %v1546_v21  ;;  %736 = vmatmul.mubr.bf16.gmra.mrb[4].mxu1 %v1547_v22 }
  0x38   : > { %1302 = vmatprep.mubr.msk.bf16.mxu0 %vm575_vm0, %v1548_v23  ;;  %1310 = vmatprep.mubr.msk.bf16.mxu1 %vm575_vm0, %v1550_v24 }
  0x3f   : > { %680 = vmatmul.mubr.bf16.gmra.mrb[8].mxu0 %v1552_v25  ;;  %744 = vmatmul.mubr.bf16.gmra.mrb[8].mxu1 %v1553_v26 }
  0x40   : > { %1303 = vmatprep.mubr.msk.bf16.mxu0 %vm575_vm0, %v1554_v27  ;;  %1311 = vmatprep.mubr.msk.bf16.mxu1 %vm575_vm0, %v1556_v28 }
  0x47   : > { %688 = vmatmul.mubr.bf16.gmra.mrb[12].mxu0 %v1558_v29  ;;  %752 = vmatmul.mubr.bf16.gmra.mrb[12].mxu1 %v1559_v30 }
  0x48   : > { %1304 = vmatprep.mubr.msk.bf16.mxu0 %vm575_vm0, %v1560_v31  ;;  %1312 = vmatprep.mubr.msk.bf16.mxu1 %vm575_vm0, %v1562_v32 }
  0x4f   : > { %696 = vmatmul.mubr.bf16.gmra.mrb[16].mxu0 %v1564_v33  ;;  %760 = vmatmul.mubr.bf16.gmra.mrb[16].mxu1 %v1565_v34 }
  0x50   : > { %1305 = vmatprep.mubr.msk.bf16.mxu0 %vm575_vm0, %v1566_v35  ;;  %1313 = vmatprep.mubr.msk.bf16.mxu1 %vm575_vm0, %v1568_v36 }
  0x57   : > { %704 = vmatmul.mubr.bf16.gmra.mrb[20].mxu0 %v1570_v37  ;;  %768 = vmatmul.mubr.bf16.gmra.mrb[20].mxu1 %v1571_v38 }
  0x58   : > { %1306 = vmatprep.mubr.msk.bf16.mxu0 %vm575_vm0, %v1572_v39  ;;  %1314 = vmatprep.mubr.msk.bf16.mxu1 %vm575_vm0, %v1574_v40 }
  0x5f   : > { %712 = vmatmul.mubr.bf16.gmra.mrb[24].mxu0 %v1576_v41  ;;  %776 = vmatmul.mubr.bf16.gmra.mrb[24].mxu1 %v1577_v42 }
  0x60   : > { %1307 = vmatprep.mubr.msk.bf16.mxu0 %vm575_vm0, %v1578_v43  ;;  %1315 = vmatprep.mubr.msk.bf16.mxu1 %vm575_vm0, %v1580_v44 }
  0x67   : > { %720 = vmatmul.mubr.bf16.gmra.mrb[28].mxu0 %v1582_v45  ;;  %784 = vmatmul.mubr.bf16.gmra.mrb[28].mxu1 %v1583_v46 }
 0x102   : > { %v665_v48 = vpop.f32.mrb[0].mxu0  ;;  %v729_v50 = vpop.f32.mrb[0].mxu1 }
 0x103   : > { %v898_v51 = vmul.f32 %v1742_v47, %v665_v48  ;;  %v914_v52 = vmul.f32 %v1742_v47, %v729_v50  ;;  %v667_v53 = vpop.f32.mrb[1].mxu0  ;;  %v731_v54 = vpop.f32.mrb[1].mxu1 }
 0x104   : > { %v668_v55 = vpop.f32.mrb[2].mxu0  ;;  %v732_v56 = vpop.f32.mrb[2].mxu1 }
 0x105   : > { %v937_v57 = vadd.f32 %v1747_v49, %v898_v51  ;;  %v953_v58 = vadd.f32 %v1747_v49, %v914_v52  ;;  %v899_v59 = vmul.f32 %v1742_v47, %v668_v55  ;;  %v915_v60 = vmul.f32 %v1742_v47, %v732_v56  ;;  %v670_v61 = vpop.f32.mrb[3].mxu0  ;;  %v734_v62 = vpop.f32.mrb[3].mxu1 }
 0x107   : > { %v938_v63 = vadd.f32 %v1747_v49, %v899_v59  ;;  %v954_v0 = vadd.f32 %v1747_v49, %v915_v60  ;;  %v969_v1 = vmax.f32 %v937_v57, 0.0  ;;  %v985_v2 = vmax.f32 %v953_v58, 0.0 }
 0x109   : > { %v970_v3 = vmax.f32 %v938_v63, 0.0  ;;  %v986_v4 = vmax.f32 %v954_v0, 0.0 }
 0x10a   : > { %v673_v5 = vpop.f32.mrb[4].mxu0  ;;  %v737_v6 = vpop.f32.mrb[4].mxu1 }
 0x10b   : > { %v1388_v7 = vpack.c.bf16 %v970_v3, %v969_v1  ;;  %v1428_v8 = vpack.c.bf16 %v986_v4, %v985_v2  ;;  %v900_v9 = vmul.f32 %v1742_v47, %v673_v5  ;;  %v916_v10 = vmul.f32 %v1742_v47, %v737_v6  ;;  %v675_v11 = vpop.f32.mrb[5].mxu0  ;;  %v739_v12 = vpop.f32.mrb[5].mxu1 }
 0x10c   : > { %v676_v13 = vpop.f32.mrb[6].mxu0  ;;  %v740_v14 = vpop.f32.mrb[6].mxu1 }
 0x10d   : > { %1389 = vst [vmem:[%s1761_s29] sm:$0xff] %v1388_v7   ;;  %1472 = vst [vmem:[%s1761_s29 + $0x40] sm:$0xff] %v1428_v8   ;;  %v939_v15 = vadd.f32 %v1747_v49, %v900_v9  ;;  %v955_v16 = vadd.f32 %v1747_v49, %v916_v10  ;;  %v901_v17 = vmul.f32 %v1742_v47, %v676_v13  ;;  %v678_v19 = vpop.f32.mrb[7].mxu0  ;;  %v742_v20 = vpop.f32.mrb[7].mxu1 }
 0x10e   : > { %v917_v18 = vmul.f32 %v1742_v47, %v740_v14 }
 0x10f   : > { %v940_v21 = vadd.f32 %v1747_v49, %v901_v17  ;;  %v971_v23 = vmax.f32 %v939_v15, 0.0  ;;  %v987_v24 = vmax.f32 %v955_v16, 0.0 }
 0x110   : > { %v956_v22 = vadd.f32 %v1747_v49, %v917_v18 }
 0x111   : > { %v972_v25 = vmax.f32 %v940_v21, 0.0 }
 0x112   : > { %v988_v26 = vmax.f32 %v956_v22, 0.0  ;;  %v681_v27 = vpop.f32.mrb[8].mxu0  ;;  %v745_v28 = vpop.f32.mrb[8].mxu1 }
 0x113   : > { %v1393_v29 = vpack.c.bf16 %v972_v25, %v971_v23  ;;  %v902_v31 = vmul.f32 %v1742_v47, %v681_v27  ;;  %v918_v32 = vmul.f32 %v1742_v47, %v745_v28  ;;  %v683_v33 = vpop.f32.mrb[9].mxu0  ;;  %v747_v34 = vpop.f32.mrb[9].mxu1 }
 0x114   : > { %v1433_v30 = vpack.c.bf16 %v988_v26, %v987_v24  ;;  %v684_v35 = vpop.f32.mrb[10].mxu0  ;;  %v748_v36 = vpop.f32.mrb[10].mxu1 }
 0x115   : > { %1465 = vst [vmem:[%s1761_s29 + $0x8] sm:$0xff] %v1393_v29   ;;  %v941_v37 = vadd.f32 %v1747_v49, %v902_v31  ;;  %v957_v38 = vadd.f32 %v1747_v49, %v918_v32  ;;  %v903_v39 = vmul.f32 %v1742_v47, %v684_v35  ;;  %v919_v40 = vmul.f32 %v1742_v47, %v748_v36  ;;  %v686_v41 = vpop.f32.mrb[11].mxu0  ;;  %v750_v42 = vpop.f32.mrb[11].mxu1 }
 0x116   : > { %1473 = vst [vmem:[%s1761_s29 + $0x48] sm:$0xff] %v1433_v30  }
 0x117   : > { %v942_v43 = vadd.f32 %v1747_v49, %v903_v39  ;;  %v958_v44 = vadd.f32 %v1747_v49, %v919_v40  ;;  %v973_v45 = vmax.f32 %v941_v37, 0.0  ;;  %v989_v46 = vmax.f32 %v957_v38, 0.0 }
 0x119   : > { %v974_v48 = vmax.f32 %v942_v43, 0.0  ;;  %v990_v50 = vmax.f32 %v958_v44, 0.0 }
 0x11a   : > { %v689_v51 = vpop.f32.mrb[12].mxu0  ;;  %v753_v52 = vpop.f32.mrb[12].mxu1 }
 0x11b   : > { %v1398_v53 = vpack.c.bf16 %v974_v48, %v973_v45  ;;  %v1438_v54 = vpack.c.bf16 %v990_v50, %v989_v46  ;;  %v904_v55 = vmul.f32 %v1742_v47, %v689_v51  ;;  %v920_v56 = vmul.f32 %v1742_v47, %v753_v52  ;;  %v691_v57 = vpop.f32.mrb[13].mxu0  ;;  %v755_v58 = vpop.f32.mrb[13].mxu1 }
 0x11c   : > { %v692_v59 = vpop.f32.mrb[14].mxu0  ;;  %v756_v60 = vpop.f32.mrb[14].mxu1 }
 0x11d   : > { %1466 = vst [vmem:[%s1761_s29 + $0x10] sm:$0xff] %v1398_v53   ;;  %1474 = vst [vmem:[%s1761_s29 + $0x50] sm:$0xff] %v1438_v54   ;;  %v943_v61 = vadd.f32 %v1747_v49, %v904_v55  ;;  %v959_v62 = vadd.f32 %v1747_v49, %v920_v56  ;;  %v905_v63 = vmul.f32 %v1742_v47, %v692_v59  ;;  %v694_v1 = vpop.f32.mrb[15].mxu0  ;;  %v758_v2 = vpop.f32.mrb[15].mxu1 }
 0x11e   : > { %v921_v0 = vmul.f32 %v1742_v47, %v756_v60 }
 0x11f   : > { %v944_v3 = vadd.f32 %v1747_v49, %v905_v63  ;;  %v975_v5 = vmax.f32 %v943_v61, 0.0  ;;  %v991_v6 = vmax.f32 %v959_v62, 0.0 }
 0x120   : > { %v960_v4 = vadd.f32 %v1747_v49, %v921_v0 }
 0x121   : > { %v976_v7 = vmax.f32 %v944_v3, 0.0 }
 0x122   : > { %v992_v8 = vmax.f32 %v960_v4, 0.0  ;;  %v697_v9 = vpop.f32.mrb[16].mxu0  ;;  %v761_v10 = vpop.f32.mrb[16].mxu1 }
 0x123   : > { %v1403_v11 = vpack.c.bf16 %v976_v7, %v975_v5  ;;  %v906_v13 = vmul.f32 %v1742_v47, %v697_v9  ;;  %v922_v14 = vmul.f32 %v1742_v47, %v761_v10  ;;  %v699_v15 = vpop.f32.mrb[17].mxu0  ;;  %v763_v16 = vpop.f32.mrb[17].mxu1 }
 0x124   : > { %v1443_v12 = vpack.c.bf16 %v992_v8, %v991_v6  ;;  %v700_v17 = vpop.f32.mrb[18].mxu0  ;;  %v764_v18 = vpop.f32.mrb[18].mxu1 }
 0x125   : > { %1467 = vst [vmem:[%s1761_s29 + $0x18] sm:$0xff] %v1403_v11   ;;  %v945_v19 = vadd.f32 %v1747_v49, %v906_v13  ;;  %v961_v20 = vadd.f32 %v1747_v49, %v922_v14  ;;  %v907_v21 = vmul.f32 %v1742_v47, %v700_v17  ;;  %v923_v22 = vmul.f32 %v1742_v47, %v764_v18  ;;  %v702_v23 = vpop.f32.mrb[19].mxu0  ;;  %v766_v24 = vpop.f32.mrb[19].mxu1 }
 0x126   : > { %1475 = vst [vmem:[%s1761_s29 + $0x58] sm:$0xff] %v1443_v12  }
 0x127   : > { %v946_v25 = vadd.f32 %v1747_v49, %v907_v21  ;;  %v962_v26 = vadd.f32 %v1747_v49, %v923_v22  ;;  %v977_v27 = vmax.f32 %v945_v19, 0.0  ;;  %v993_v28 = vmax.f32 %v961_v20, 0.0 }
 0x129   : > { %v978_v29 = vmax.f32 %v946_v25, 0.0  ;;  %v994_v30 = vmax.f32 %v962_v26, 0.0 }
 0x12a   : > { %v705_v31 = vpop.f32.mrb[20].mxu0  ;;  %v769_v32 = vpop.f32.mrb[20].mxu1 }
 0x12b   : > { %v1408_v33 = vpack.c.bf16 %v978_v29, %v977_v27  ;;  %v1448_v34 = vpack.c.bf16 %v994_v30, %v993_v28  ;;  %v908_v35 = vmul.f32 %v1742_v47, %v705_v31  ;;  %v924_v36 = vmul.f32 %v1742_v47, %v769_v32  ;;  %v707_v37 = vpop.f32.mrb[21].mxu0  ;;  %v771_v38 = vpop.f32.mrb[21].mxu1 }
 0x12c   : > { %v708_v39 = vpop.f32.mrb[22].mxu0  ;;  %v772_v40 = vpop.f32.mrb[22].mxu1 }
 0x12d   : > { %1468 = vst [vmem:[%s1761_s29 + $0x20] sm:$0xff] %v1408_v33   ;;  %1476 = vst [vmem:[%s1761_s29 + $0x60] sm:$0xff] %v1448_v34   ;;  %v947_v41 = vadd.f32 %v1747_v49, %v908_v35  ;;  %v963_v42 = vadd.f32 %v1747_v49, %v924_v36  ;;  %v909_v43 = vmul.f32 %v1742_v47, %v708_v39  ;;  %v710_v45 = vpop.f32.mrb[23].mxu0  ;;  %v774_v46 = vpop.f32.mrb[23].mxu1 }
 0x12e   : > { %v925_v44 = vmul.f32 %v1742_v47, %v772_v40 }
 0x12f   : > { %v948_v48 = vadd.f32 %v1747_v49, %v909_v43  ;;  %v979_v51 = vmax.f32 %v947_v41, 0.0  ;;  %v995_v52 = vmax.f32 %v963_v42, 0.0 }
 0x130   : > { %v964_v50 = vadd.f32 %v1747_v49, %v925_v44 }
 0x131   : > { %v980_v53 = vmax.f32 %v948_v48, 0.0 }
 0x132   : > { %v996_v54 = vmax.f32 %v964_v50, 0.0  ;;  %v713_v55 = vpop.f32.mrb[24].mxu0  ;;  %v777_v56 = vpop.f32.mrb[24].mxu1 }
 0x133   : > { %v1413_v57 = vpack.c.bf16 %v980_v53, %v979_v51  ;;  %v910_v59 = vmul.f32 %v1742_v47, %v713_v55  ;;  %v926_v60 = vmul.f32 %v1742_v47, %v777_v56  ;;  %v715_v61 = vpop.f32.mrb[25].mxu0  ;;  %v779_v62 = vpop.f32.mrb[25].mxu1 }
 0x134   : > { %v1453_v58 = vpack.c.bf16 %v996_v54, %v995_v52  ;;  %v716_v63 = vpop.f32.mrb[26].mxu0  ;;  %v780_v0 = vpop.f32.mrb[26].mxu1 }
 0x135   : > { %1469 = vst [vmem:[%s1761_s29 + $0x28] sm:$0xff] %v1413_v57   ;;  %v949_v1 = vadd.f32 %v1747_v49, %v910_v59  ;;  %v965_v2 = vadd.f32 %v1747_v49, %v926_v60  ;;  %v911_v3 = vmul.f32 %v1742_v47, %v716_v63  ;;  %v927_v4 = vmul.f32 %v1742_v47, %v780_v0  ;;  %v718_v5 = vpop.f32.mrb[27].mxu0  ;;  %v782_v6 = vpop.f32.mrb[27].mxu1 }
 0x136   : > { %1477 = vst [vmem:[%s1761_s29 + $0x68] sm:$0xff] %v1453_v58  }
 0x137   : > { %v950_v7 = vadd.f32 %v1747_v49, %v911_v3  ;;  %v966_v8 = vadd.f32 %v1747_v49, %v927_v4  ;;  %v981_v9 = vmax.f32 %v949_v1, 0.0  ;;  %v997_v10 = vmax.f32 %v965_v2, 0.0 }
 0x139   : > { %v982_v11 = vmax.f32 %v950_v7, 0.0  ;;  %v998_v12 = vmax.f32 %v966_v8, 0.0 }
 0x13a   : > { %v721_v13 = vpop.f32.mrb[28].mxu0  ;;  %v785_v14 = vpop.f32.mrb[28].mxu1 }
 0x13b   : > { %v1418_v15 = vpack.c.bf16 %v982_v11, %v981_v9  ;;  %v1458_v16 = vpack.c.bf16 %v998_v12, %v997_v10  ;;  %v912_v17 = vmul.f32 %v1742_v47, %v721_v13  ;;  %v928_v18 = vmul.f32 %v1742_v47, %v785_v14  ;;  %v723_v19 = vpop.f32.mrb[29].mxu0  ;;  %v787_v20 = vpop.f32.mrb[29].mxu1 }
 0x13c   : > { %v724_v21 = vpop.f32.mrb[30].mxu0  ;;  %v788_v22 = vpop.f32.mrb[30].mxu1 }
 0x13d   : > { %1470 = vst [vmem:[%s1761_s29 + $0x30] sm:$0xff] %v1418_v15   ;;  %1478 = vst [vmem:[%s1761_s29 + $0x70] sm:$0xff] %v1458_v16   ;;  %v951_v23 = vadd.f32 %v1747_v49, %v912_v17  ;;  %v967_v24 = vadd.f32 %v1747_v49, %v928_v18  ;;  %v913_v25 = vmul.f32 %v1742_v47, %v724_v21  ;;  %v726_v27 = vpop.f32.mrb[31].mxu0  ;;  %v790_v28 = vpop.f32.mrb[31].mxu1 }
 0x13e   : > { %v929_v26 = vmul.f32 %v1742_v47, %v788_v22 }
 0x13f   : > { %v952_v29 = vadd.f32 %v1747_v49, %v913_v25  ;;  %v983_v31 = vmax.f32 %v951_v23, 0.0  ;;  %v999_v32 = vmax.f32 %v967_v24, 0.0 }
 0x140   : > { %v968_v30 = vadd.f32 %v1747_v49, %v929_v26 }
 0x141   : > { %v984_v33 = vmax.f32 %v952_v29, 0.0 }
 0x142   : > { %v1000_v34 = vmax.f32 %v968_v30, 0.0 }
 0x143   : > { %v1423_v35 = vpack.c.bf16 %v984_v33, %v983_v31 }
 0x144   : > { %v1463_v36 = vpack.c.bf16 %v1000_v34, %v999_v32 }
 0x145   : > { %1471 = vst [vmem:[%s1761_s29 + $0x38] sm:$0xff] %v1423_v35  }
 0x146   : > { %1479 = vst [vmem:[%s1761_s29 + $0x78] sm:$0xff] %v1463_v36  }
 0x147 PF: > { %s14_s17 = sadd.s32 1, %s1606_s17   ;;  %s1849_s15 = smov %s1602_s16 }
 0x148   : > { %p11_p5 = scmp.ge.s32.totalorder %s14_s17, 4   ;;  %s1850_s16 = smov %s1852_s18 }
 0x14a   :  { %13 = sbr.rel (!%p11_p5) target bundleno = 2 (0x2), region = 77 }

// kernel: densenet_forward.17
= control target key start
LH: loop header
LB: loop body
LE: loop exit
PB: predicated region body
PF: predicated region fallthrough
CT: control target
= control target key end

     0   :  { %vm199_vm0 = vcmask 1043456   ;;  %vm174_vm1 = vcmask 195584   ;;  %s851_s1 = inlined_call_operand.vmem [shape: bf16[24,128], index: 1, kind: input, shape index: {}]   ;;  %s852_s0 = inlined_call_operand.vmem [shape: bf16[128,24], index: 0, kind: input, shape index: {}]   ;;  %s853_s2 = inlined_call_operand.vmem [shape: f32[1,24], index: 2, kind: input, shape index: {}]   ;;  %s854_s3 = inlined_call_operand.vmem [shape: f32[1,24], index: 3, kind: input, shape index: {}]   ;;  %s855_s4 = inlined_call_operand.vmem [shape: f32[1,128], index: 4, kind: input, shape index: {}]   ;;  %s856_s5 = inlined_call_operand.vmem [shape: f32[1,128], index: 5, kind: input, shape index: {}]   ;;  %s857_s6 = inlined_call_operand.vmem [shape: bf16[128,128], index: 6, kind: output, shape index: {}]  }
   0x1   :  { %v665_v0 = vld [vmem:[%s851_s1] sm:$0xff]   ;;  %v666_v1 = vld [vmem:[%s851_s1 + $0x8] ss:$0 sps:$4 sm:$0xff]   ;;  %v616_v17 = vld [vmem:[%s852_s0 + $0x10] sm:$0xff]  }
   0x2   :  { %v544_v2 = vld [vmem:[%s852_s0] sm:$0xff]   ;;  %639 = vmatprep.subr.bf16.mxu0 %v665_v0  ;;  %659 = vmatprep.subr.bf16.mxu1 %v665_v0  ;;  %v201_v7 = vsel %vm199_vm0, %v666_v1, 0  ;;  %v615_v11 = vld [vmem:[%s852_s0 + $0x8] sm:$0xff]   ;;  %v553_v29 = vunpack.c.l.bf16 %v616_v17  ;;  %v620_v38 = vld [vmem:[%s852_s0 + $0x30] sm:$0xff]   ;;  %v554_v42 = vunpack.c.h.bf16 %v616_v17 }
   0x3   :  { %v545_v3 = vunpack.c.l.bf16 %v544_v2  ;;  %v546_v4 = vunpack.c.h.bf16 %v544_v2  ;;  %v714_v5 = vld [vmem:[%s853_s2] ss:$0 sm:$0xff]  ;;  %640 = vmatpush3.bf16.msra.mxu0 %v665_v0  ;;  %661 = vmatpush3.bf16.msra.mxu1 %v665_v0  ;;  %v619_v12 = vld [vmem:[%s852_s0 + $0x28] sm:$0xff]   ;;  %v549_v15 = vunpack.c.l.bf16 %v615_v11  ;;  %v550_v16 = vunpack.c.h.bf16 %v615_v11  ;;  %v617_v43 = vld [vmem:[%s852_s0 + $0x18] sm:$0xff]  }
   0x4   :  { %v618_v6 = vld [vmem:[%s852_s0 + $0x20] sm:$0xff]   ;;  %663 = vmatprep.subr.msk.bf16.mxu0 %vm199_vm0, %v666_v1  ;;  %664 = vmatprep.subr.msk.bf16.mxu1 %vm199_vm0, %v666_v1  ;;  %v565_v20 = vunpack.c.l.bf16 %v619_v12  ;;  %v566_v21 = vunpack.c.h.bf16 %v619_v12  ;;  %v87_v47 = vmul.f32 %v553_v29, %v714_v5  ;;  %v621_v48 = vld [vmem:[%s852_s0 + $0x38] sm:$0xff]   ;;  %v88_v50 = vmul.f32 %v554_v42, %v714_v5 }
   0x5   :  { %v723_v8 = vld [vmem:[%s854_s3] ss:$0 sm:$0xff]  ;;  %v561_v9 = vunpack.c.l.bf16 %v618_v6  ;;  %v562_v10 = vunpack.c.h.bf16 %v618_v6  ;;  %v83_v13 = vmul.f32 %v545_v3, %v714_v5  ;;  %v84_v14 = vmul.f32 %v546_v4, %v714_v5 }
   0x6   :  { %v85_v24 = vmul.f32 %v549_v15, %v714_v5  ;;  %v86_v25 = vmul.f32 %v550_v16, %v714_v5  ;;  %v93_v28 = vmul.f32 %v565_v20, %v714_v5  ;;  %v94_v36 = vmul.f32 %v566_v21, %v714_v5 }
   0x7   :  { %v91_v18 = vmul.f32 %v561_v9, %v714_v5  ;;  %v92_v19 = vmul.f32 %v562_v10, %v714_v5  ;;  %v106_v22 = vadd.f32 %v723_v8, %v83_v13  ;;  %v107_v23 = vadd.f32 %v723_v8, %v84_v14  ;;  %642 = vmatpush3.bf16.msra.mxu0 %v201_v7 }
   0x8   :  { %662 = vmatpush3.bf16.msra.mxu1 %v201_v7  ;;  %v108_v32 = vadd.f32 %v723_v8, %v85_v24  ;;  %v109_v33 = vadd.f32 %v723_v8, %v86_v25  ;;  %v116_v37 = vadd.f32 %v723_v8, %v93_v28  ;;  %v117_v45 = vadd.f32 %v723_v8, %v94_v36 }
   0x9   :  { %v114_v26 = vadd.f32 %v723_v8, %v91_v18  ;;  %v115_v27 = vadd.f32 %v723_v8, %v92_v19  ;;  %v122_v30 = vmax.f32 %v106_v22, 0.0  ;;  %v123_v31 = vmax.f32 %v107_v23, 0.0 }
   0xa   :  { %v124_v40 = vmax.f32 %v108_v32, 0.0  ;;  %v125_v41 = vmax.f32 %v109_v33, 0.0  ;;  %v132_v46 = vmax.f32 %v116_v37, 0.0  ;;  %v569_v51 = vunpack.c.l.bf16 %v620_v38 }
   0xb   :  { %v130_v34 = vmax.f32 %v114_v26, 0.0  ;;  %v131_v35 = vmax.f32 %v115_v27, 0.0  ;;  %v138_v39 = vpack.c.bf16 %v123_v31, %v122_v30  ;;  %v570_v52 = vunpack.c.h.bf16 %v620_v38 }
   0xc   :  { %v139_v49 = vpack.c.bf16 %v125_v41, %v124_v40  ;;  %v133_v53 = vmax.f32 %v117_v45, 0.0  ;;  %v110_v54 = vadd.f32 %v723_v8, %v87_v47  ;;  %v557_v55 = vunpack.c.l.bf16 %v617_v43 }
   0xd   :  { %v142_v44 = vpack.c.bf16 %v131_v35, %v130_v34  ;;  %643 = vmatprep.mubr.msk.bf16.mxu0 %vm174_vm1, %v138_v39  ;;  %v558_v56 = vunpack.c.h.bf16 %v617_v43  ;;  %v111_v57 = vadd.f32 %v723_v8, %v88_v50  ;;  %v95_v58 = vmul.f32 %v569_v51, %v714_v5 }
   0xe   :  { %644 = vmatmul.mubr.msk.bf16.vlgmr.msra.gmra.mrb[0].mxu0 %vm174_vm1, %v139_v49  ;;  %v96_v59 = vmul.f32 %v570_v52, %v714_v5  ;;  %v573_v60 = vunpack.c.l.bf16 %v621_v48  ;;  %v143_v61 = vpack.c.bf16 %v133_v53, %v132_v46  ;;  %v126_v62 = vmax.f32 %v110_v54, 0.0 }
   0xf   :  { %651 = vmatprep.mubr.msk.bf16.mxu1 %vm174_vm1, %v142_v44  ;;  %v89_v63 = vmul.f32 %v557_v55, %v714_v5  ;;  %v90_v0 = vmul.f32 %v558_v56, %v714_v5  ;;  %v127_v1 = vmax.f32 %v111_v57, 0.0  ;;  %v118_v2 = vadd.f32 %v723_v8, %v95_v58 }
  0x10   :  { %v119_v3 = vadd.f32 %v723_v8, %v96_v59  ;;  %v574_v4 = vunpack.c.h.bf16 %v621_v48  ;;  %652 = vmatmul.mubr.msk.bf16.vlgmr.msra.gmra.mrb[0].mxu1 %vm174_vm1, %v143_v61  ;;  %v97_v9 = vmul.f32 %v573_v60, %v714_v5 }
  0x11   :  { %v112_v6 = vadd.f32 %v723_v8, %v89_v63  ;;  %v113_v7 = vadd.f32 %v723_v8, %v90_v0  ;;  %v140_v10 = vpack.c.bf16 %v127_v1, %v126_v62  ;;  %v134_v11 = vmax.f32 %v118_v2, 0.0 }
  0x12   :  { %v135_v12 = vmax.f32 %v119_v3, 0.0  ;;  %v98_v13 = vmul.f32 %v574_v4, %v714_v5  ;;  %v120_v16 = vadd.f32 %v723_v8, %v97_v9  ;;  %v788_v5 = vld [vmem:[%s855_s4] ss:$0 sm:$0xff] }
  0x13   :  { %v128_v14 = vmax.f32 %v112_v6, 0.0  ;;  %v129_v15 = vmax.f32 %v113_v7, 0.0  ;;  %647 = vmatprep.mubr.msk.bf16.mxu0 %vm174_vm1, %v140_v10 }
  0x14   :  { %v144_v17 = vpack.c.bf16 %v135_v12, %v134_v11  ;;  %v121_v18 = vadd.f32 %v723_v8, %v98_v13  ;;  %v136_v20 = vmax.f32 %v120_v16, 0.0  ;;  %v793_v8 = vld [vmem:[%s856_s5] ss:$0 sm:$0xff] }
  0x15   :  { %v141_v19 = vpack.c.bf16 %v129_v15, %v128_v14 }
  0x16   :  { %655 = vmatprep.mubr.msk.bf16.mxu1 %vm174_vm1, %v144_v17  ;;  %v137_v21 = vmax.f32 %v121_v18, 0.0 }
  0x17   :  { %648 = vmatmul.mubr.msk.bf16.gmra.mrb[4].mxu0 %vm174_vm1, %v141_v19 }
  0x18   :  { %v145_v22 = vpack.c.bf16 %v137_v21, %v136_v20 }
  0x1a   :  { %656 = vmatmul.mubr.msk.bf16.gmra.mrb[4].mxu1 %vm174_vm1, %v145_v22 }
  0xe1   :  { %v645_v23 = vpop.f32.mrb[0].mxu0 }
  0xe2   :  { %v360_v24 = vmul.f32 %v645_v23, %v788_v5  ;;  %v237_v25 = vpop.f32.mrb[1].mxu0 }
  0xe3   :  { %v358_v26 = vmul.f32 %v788_v5, %v237_v25  ;;  %v646_v27 = vpop.f32.mrb[2].mxu0  ;;  %v653_v29 = vpop.f32.mrb[0].mxu1 }
  0xe4   :  { %v383_v28 = vadd.f32 %v793_v8, %v360_v24  ;;  %v361_v30 = vmul.f32 %v646_v27, %v788_v5  ;;  %v240_v31 = vpop.f32.mrb[3].mxu0  ;;  %v368_v32 = vmul.f32 %v653_v29, %v788_v5  ;;  %v269_v34 = vpop.f32.mrb[1].mxu1 }
  0xe5   :  { %v381_v33 = vadd.f32 %v793_v8, %v358_v26  ;;  %v359_v35 = vmul.f32 %v788_v5, %v240_v31  ;;  %v366_v36 = vmul.f32 %v788_v5, %v269_v34  ;;  %v654_v38 = vpop.f32.mrb[2].mxu1 }
  0xe6   :  { %v384_v37 = vadd.f32 %v793_v8, %v361_v30  ;;  %v391_v39 = vadd.f32 %v793_v8, %v368_v32  ;;  %v369_v40 = vmul.f32 %v654_v38, %v788_v5  ;;  %v272_v42 = vpop.f32.mrb[3].mxu1  ;;  %v399_v43 = vmax.f32 %v383_v28, 0.0 }
  0xe7   :  { %v382_v41 = vadd.f32 %v793_v8, %v359_v35  ;;  %v389_v44 = vadd.f32 %v793_v8, %v366_v36  ;;  %v367_v46 = vmul.f32 %v788_v5, %v272_v42  ;;  %v397_v47 = vmax.f32 %v381_v33, 0.0 }
  0xe8   :  { %v400_v45 = vmax.f32 %v384_v37, 0.0  ;;  %v392_v48 = vadd.f32 %v793_v8, %v369_v40  ;;  %v407_v53 = vmax.f32 %v391_v39, 0.0 }
  0xe9   :  { %v398_v49 = vmax.f32 %v382_v41, 0.0  ;;  %v390_v51 = vadd.f32 %v793_v8, %v367_v46  ;;  %v405_v58 = vmax.f32 %v389_v44, 0.0 }
  0xea   :  { %v583_v50 = vpack.c.bf16 %v400_v45, %v399_v43  ;;  %v649_v52 = vpop.f32.mrb[4].mxu0  ;;  %v408_v54 = vmax.f32 %v392_v48, 0.0 }
  0xeb   :  { %v578_v55 = vpack.c.bf16 %v398_v49, %v397_v47  ;;  %v364_v56 = vmul.f32 %v649_v52, %v788_v5  ;;  %v253_v57 = vpop.f32.mrb[5].mxu0  ;;  %v406_v59 = vmax.f32 %v390_v51, 0.0 }
  0xec   :  { %622 = vst [vmem:[%s857_s6 + $0x8] sm:$0xff] %v583_v50   ;;  %v362_v60 = vmul.f32 %v788_v5, %v253_v57  ;;  %v650_v61 = vpop.f32.mrb[6].mxu0  ;;  %v603_v62 = vpack.c.bf16 %v408_v54, %v407_v53 }
  0xed   :  { %579 = vst [vmem:[%s857_s6] sm:$0xff] %v578_v55   ;;  %v387_v63 = vadd.f32 %v793_v8, %v364_v56  ;;  %v657_v0 = vpop.f32.mrb[4].mxu1  ;;  %v365_v1 = vmul.f32 %v650_v61, %v788_v5  ;;  %v256_v2 = vpop.f32.mrb[7].mxu0  ;;  %v598_v3 = vpack.c.bf16 %v406_v59, %v405_v58 }
  0xee   :  { %v372_v4 = vmul.f32 %v657_v0, %v788_v5  ;;  %v385_v6 = vadd.f32 %v793_v8, %v362_v60  ;;  %v285_v7 = vpop.f32.mrb[5].mxu1  ;;  %v363_v9 = vmul.f32 %v788_v5, %v256_v2  ;;  %626 = vst [vmem:[%s857_s6 + $0x28] sm:$0xff] %v603_v62  }
  0xef   :  { %v370_v10 = vmul.f32 %v788_v5, %v285_v7  ;;  %v388_v11 = vadd.f32 %v793_v8, %v365_v1  ;;  %v658_v12 = vpop.f32.mrb[6].mxu1  ;;  %625 = vst [vmem:[%s857_s6 + $0x20] sm:$0xff] %v598_v3   ;;  %v403_v17 = vmax.f32 %v387_v63, 0.0 }
  0xf0   :  { %v395_v13 = vadd.f32 %v793_v8, %v372_v4  ;;  %v373_v14 = vmul.f32 %v658_v12, %v788_v5  ;;  %v386_v15 = vadd.f32 %v793_v8, %v363_v9  ;;  %v288_v16 = vpop.f32.mrb[7].mxu1  ;;  %v401_v21 = vmax.f32 %v385_v6, 0.0 }
  0xf1   :  { %v393_v18 = vadd.f32 %v793_v8, %v370_v10  ;;  %v404_v19 = vmax.f32 %v388_v11, 0.0  ;;  %v371_v20 = vmul.f32 %v788_v5, %v288_v16 }
  0xf2   :  { %v396_v22 = vadd.f32 %v793_v8, %v373_v14  ;;  %v402_v23 = vmax.f32 %v386_v15, 0.0  ;;  %v411_v26 = vmax.f32 %v395_v13, 0.0 }
  0xf3   :  { %v593_v24 = vpack.c.bf16 %v404_v19, %v403_v17  ;;  %v394_v25 = vadd.f32 %v793_v8, %v371_v20  ;;  %v409_v29 = vmax.f32 %v393_v18, 0.0 }
  0xf4   :  { %v412_v27 = vmax.f32 %v396_v22, 0.0  ;;  %v588_v28 = vpack.c.bf16 %v402_v23, %v401_v21 }
  0xf5   :  { %624 = vst [vmem:[%s857_s6 + $0x18] sm:$0xff] %v593_v24   ;;  %v410_v30 = vmax.f32 %v394_v25, 0.0 }
  0xf6   :  { %v613_v31 = vpack.c.bf16 %v412_v27, %v411_v26  ;;  %623 = vst [vmem:[%s857_s6 + $0x10] sm:$0xff] %v588_v28  }
  0xf7   :  { %v608_v5 = vpack.c.bf16 %v410_v30, %v409_v29 }
  0xf8   :  { %628 = vst [vmem:[%s857_s6 + $0x38] sm:$0xff] %v613_v31  }
  0xf9   :  { %627 = vst [vmem:[%s857_s6 + $0x30] sm:$0xff] %v608_v5  }

// kernel: densenet_forward.19
= control target key start
LH: loop header
LB: loop body
LE: loop exit
PB: predicated region body
PF: predicated region fallthrough
CT: control target
= control target key end

     0   :  { %vm172_vm0 = vcmask 261120   ;;  %s724_s1 = inlined_call_operand.vmem [shape: bf16[32,128], index: 1, kind: input, shape index: {}]   ;;  %s725_s0 = inlined_call_operand.vmem [shape: bf16[128,32], index: 0, kind: input, shape index: {}]   ;;  %s726_s2 = inlined_call_operand.vmem [shape: f32[1,32], index: 2, kind: input, shape index: {}]   ;;  %s727_s3 = inlined_call_operand.vmem [shape: f32[1,32], index: 3, kind: input, shape index: {}]   ;;  %s728_s4 = inlined_call_operand.vmem [shape: bf16[128,128], index: 4, kind: output, shape index: {}]  }
   0x1   :  { %v593_v0 = vld [vmem:[%s724_s1] sm:$0xff]   ;;  %v594_v1 = vld [vmem:[%s724_s1 + $0x8] sm:$0xff]   ;;  %v546_v14 = vld [vmem:[%s725_s0 + $0x10] sm:$0xff]  }
   0x2   :  { %569 = vmatprep.subr.bf16.mxu0 %v593_v0  ;;  %589 = vmatprep.subr.bf16.mxu1 %v593_v0  ;;  %v474_v2 = vld [vmem:[%s725_s0] sm:$0xff]   ;;  %v545_v7 = vld [vmem:[%s725_s0 + $0x8] sm:$0xff]   ;;  %v483_v26 = vunpack.c.l.bf16 %v546_v14  ;;  %v550_v35 = vld [vmem:[%s725_s0 + $0x30] sm:$0xff]   ;;  %v484_v44 = vunpack.c.h.bf16 %v546_v14 }
   0x3   :  { %v632_v3 = vld [vmem:[%s726_s2] ss:$0 sm:$0xff]  ;;  %570 = vmatpush3.bf16.msra.mxu0 %v593_v0  ;;  %591 = vmatpush3.bf16.msra.mxu1 %v593_v0  ;;  %v475_v4 = vunpack.c.l.bf16 %v474_v2  ;;  %v476_v5 = vunpack.c.h.bf16 %v474_v2  ;;  %v549_v8 = vld [vmem:[%s725_s0 + $0x28] sm:$0xff]   ;;  %v479_v12 = vunpack.c.l.bf16 %v545_v7  ;;  %v480_v13 = vunpack.c.h.bf16 %v545_v7  ;;  %v547_v40 = vld [vmem:[%s725_s0 + $0x18] sm:$0xff]  }
   0x4   :  { %v548_v6 = vld [vmem:[%s725_s0 + $0x20] sm:$0xff]   ;;  %571 = vmatprep.subr.bf16.mxu0 %v594_v1  ;;  %590 = vmatprep.subr.bf16.mxu1 %v594_v1  ;;  %v495_v17 = vunpack.c.l.bf16 %v549_v8  ;;  %v496_v18 = vunpack.c.h.bf16 %v549_v8  ;;  %v551_v45 = vld [vmem:[%s725_s0 + $0x38] sm:$0xff]   ;;  %v81_v48 = vmul.f32 %v483_v26, %v632_v3  ;;  %v499_v49 = vunpack.c.l.bf16 %v550_v35 }
   0x5   :  { %v646_v9 = vld [vmem:[%s727_s3] ss:$0 sm:$0xff]  ;;  %v491_v10 = vunpack.c.l.bf16 %v548_v6  ;;  %v492_v11 = vunpack.c.h.bf16 %v548_v6  ;;  %v77_v15 = vmul.f32 %v475_v4, %v632_v3  ;;  %v78_v16 = vmul.f32 %v476_v5, %v632_v3 }
   0x6   :  { %v79_v21 = vmul.f32 %v479_v12, %v632_v3  ;;  %v80_v22 = vmul.f32 %v480_v13, %v632_v3  ;;  %v87_v25 = vmul.f32 %v495_v17, %v632_v3  ;;  %v88_v33 = vmul.f32 %v496_v18, %v632_v3 }
   0x7   :  { %v85_v19 = vmul.f32 %v491_v10, %v632_v3  ;;  %v86_v20 = vmul.f32 %v492_v11, %v632_v3  ;;  %572 = vmatpush3.bf16.msra.mxu0 %v594_v1  ;;  %592 = vmatpush3.bf16.msra.mxu1 %v594_v1  ;;  %v100_v23 = vadd.f32 %v646_v9, %v77_v15  ;;  %v500_v52 = vunpack.c.h.bf16 %v550_v35 }
   0x8   :  { %v101_v24 = vadd.f32 %v646_v9, %v78_v16  ;;  %v102_v29 = vadd.f32 %v646_v9, %v79_v21  ;;  %v103_v30 = vadd.f32 %v646_v9, %v80_v22  ;;  %v110_v34 = vadd.f32 %v646_v9, %v87_v25 }
   0x9   :  { %v108_v27 = vadd.f32 %v646_v9, %v85_v19  ;;  %v109_v28 = vadd.f32 %v646_v9, %v86_v20  ;;  %v116_v31 = vmax.f32 %v100_v23, 0.0  ;;  %v111_v42 = vadd.f32 %v646_v9, %v88_v33 }
   0xa   :  { %v117_v32 = vmax.f32 %v101_v24, 0.0  ;;  %v118_v38 = vmax.f32 %v102_v29, 0.0  ;;  %v119_v39 = vmax.f32 %v103_v30, 0.0  ;;  %v126_v43 = vmax.f32 %v110_v34, 0.0 }
   0xb   :  { %v124_v36 = vmax.f32 %v108_v27, 0.0  ;;  %v125_v37 = vmax.f32 %v109_v28, 0.0  ;;  %v127_v50 = vmax.f32 %v111_v42, 0.0  ;;  %v82_v51 = vmul.f32 %v484_v44, %v632_v3 }
   0xc   :  { %v132_v41 = vpack.c.bf16 %v117_v32, %v116_v31  ;;  %v133_v47 = vpack.c.bf16 %v119_v39, %v118_v38  ;;  %v487_v53 = vunpack.c.l.bf16 %v547_v40  ;;  %v104_v54 = vadd.f32 %v646_v9, %v81_v48 }
   0xd   :  { %v136_v46 = vpack.c.bf16 %v125_v37, %v124_v36  ;;  %v89_v55 = vmul.f32 %v499_v49, %v632_v3  ;;  %v488_v56 = vunpack.c.h.bf16 %v547_v40  ;;  %v503_v57 = vunpack.c.l.bf16 %v551_v45 }
   0xe   :  { %573 = vmatprep.mubr.msk.bf16.mxu0 %vm172_vm0, %v132_v41  ;;  %v137_v58 = vpack.c.bf16 %v127_v50, %v126_v43  ;;  %v105_v59 = vadd.f32 %v646_v9, %v82_v51  ;;  %v90_v60 = vmul.f32 %v500_v52, %v632_v3  ;;  %v83_v61 = vmul.f32 %v487_v53, %v632_v3 }
   0xf   :  { %581 = vmatprep.mubr.msk.bf16.mxu1 %vm172_vm0, %v136_v46  ;;  %574 = vmatmul.mubr.msk.bf16.vlgmr.msra.gmra.mrb[0].mxu0 %vm172_vm0, %v133_v47  ;;  %v120_v62 = vmax.f32 %v104_v54, 0.0  ;;  %v112_v63 = vadd.f32 %v646_v9, %v89_v55  ;;  %v84_v0 = vmul.f32 %v488_v56, %v632_v3  ;;  %v504_v1 = vunpack.c.h.bf16 %v551_v45 }
  0x10   :  { %582 = vmatmul.mubr.msk.bf16.vlgmr.msra.gmra.mrb[0].mxu1 %vm172_vm0, %v137_v58  ;;  %v121_v2 = vmax.f32 %v105_v59, 0.0  ;;  %v113_v4 = vadd.f32 %v646_v9, %v90_v60  ;;  %v106_v5 = vadd.f32 %v646_v9, %v83_v61  ;;  %v91_v6 = vmul.f32 %v503_v57, %v632_v3 }
  0x11   :  { %v128_v7 = vmax.f32 %v112_v63, 0.0  ;;  %v107_v8 = vadd.f32 %v646_v9, %v84_v0  ;;  %v92_v10 = vmul.f32 %v504_v1, %v632_v3 }
  0x12   :  { %v134_v11 = vpack.c.bf16 %v121_v2, %v120_v62  ;;  %v129_v12 = vmax.f32 %v113_v4, 0.0  ;;  %v122_v13 = vmax.f32 %v106_v5, 0.0  ;;  %v114_v14 = vadd.f32 %v646_v9, %v91_v6 }
  0x13   :  { %v123_v15 = vmax.f32 %v107_v8, 0.0  ;;  %v115_v16 = vadd.f32 %v646_v9, %v92_v10 }
  0x14   :  { %577 = vmatprep.mubr.msk.bf16.mxu0 %vm172_vm0, %v134_v11  ;;  %v138_v17 = vpack.c.bf16 %v129_v12, %v128_v7  ;;  %v130_v18 = vmax.f32 %v114_v14, 0.0 }
  0x15   :  { %v135_v19 = vpack.c.bf16 %v123_v15, %v122_v13  ;;  %v131_v20 = vmax.f32 %v115_v16, 0.0 }
  0x16   :  { %585 = vmatprep.mubr.msk.bf16.mxu1 %vm172_vm0, %v138_v17 }
  0x17   :  { %578 = vmatmul.mubr.msk.bf16.gmra.mrb[4].mxu0 %vm172_vm0, %v135_v19  ;;  %v139_v21 = vpack.c.bf16 %v131_v20, %v130_v18 }
  0x19   :  { %586 = vmatmul.mubr.msk.bf16.gmra.mrb[4].mxu1 %vm172_vm0, %v139_v21 }
  0xe2   :  { %v575_v3 = vpop.f32.mrb[0].mxu0 }
  0xe3   :  { %v231_v22 = vpop.f32.mrb[1].mxu0  ;;  %v583_v24 = vpop.f32.mrb[0].mxu1 }
  0xe4   :  { %v576_v23 = vpop.f32.mrb[2].mxu0  ;;  %v263_v9 = vpop.f32.mrb[1].mxu1 }
  0xe5   :  { %v513_v25 = vpack.c.bf16 %v576_v23, %v575_v3  ;;  %v234_v26 = vpop.f32.mrb[3].mxu0  ;;  %v584_v28 = vpop.f32.mrb[2].mxu1 }
  0xe6   :  { %v508_v27 = vpack.c.bf16 %v234_v26, %v231_v22  ;;  %v533_v29 = vpack.c.bf16 %v584_v28, %v583_v24  ;;  %v266_v30 = vpop.f32.mrb[3].mxu1 }
  0xe7   :  { %552 = vst [vmem:[%s728_s4 + $0x8] sm:$0xff] %v513_v25   ;;  %v528_v31 = vpack.c.bf16 %v266_v30, %v263_v9 }
  0xe8   :  { %509 = vst [vmem:[%s728_s4] sm:$0xff] %v508_v27   ;;  %556 = vst [vmem:[%s728_s4 + $0x28] sm:$0xff] %v533_v29  }
  0xe9   :  { %555 = vst [vmem:[%s728_s4 + $0x20] sm:$0xff] %v528_v31  }
  0xea   :  { %v579_v32 = vpop.f32.mrb[4].mxu0 }
  0xeb   :  { %v247_v33 = vpop.f32.mrb[5].mxu0 }
  0xec   :  { %v587_v34 = vpop.f32.mrb[4].mxu1  ;;  %v580_v35 = vpop.f32.mrb[6].mxu0 }
  0xed   :  { %v279_v36 = vpop.f32.mrb[5].mxu1  ;;  %v523_v37 = vpack.c.bf16 %v580_v35, %v579_v32  ;;  %v250_v38 = vpop.f32.mrb[7].mxu0 }
  0xee   :  { %v588_v39 = vpop.f32.mrb[6].mxu1  ;;  %v518_v40 = vpack.c.bf16 %v250_v38, %v247_v33 }
  0xef   :  { %554 = vst [vmem:[%s728_s4 + $0x18] sm:$0xff] %v523_v37   ;;  %v543_v41 = vpack.c.bf16 %v588_v39, %v587_v34  ;;  %v282_v42 = vpop.f32.mrb[7].mxu1 }
  0xf0   :  { %553 = vst [vmem:[%s728_s4 + $0x10] sm:$0xff] %v518_v40   ;;  %v538_v43 = vpack.c.bf16 %v282_v42, %v279_v36 }
  0xf1   :  { %558 = vst [vmem:[%s728_s4 + $0x38] sm:$0xff] %v543_v41  }
  0xf2   :  { %557 = vst [vmem:[%s728_s4 + $0x30] sm:$0xff] %v538_v43  }

// kernel: densenet_forward.20
= control target key start
LH: loop header
LB: loop body
LE: loop exit
PB: predicated region body
PF: predicated region fallthrough
CT: control target
= control target key end

     0   :  { %vm81_vm0 = vcmask 125952   ;;  %s195_s0 = inlined_call_operand.vmem [shape: bf16[32,16], index: 0, kind: input, shape index: {}]   ;;  %s196_s1 = inlined_call_operand.vmem [shape: bf16[32,16], index: 1, kind: input, shape index: {}]   ;;  %s197_s2 = inlined_call_operand.vmem [shape: bf16[32,16], index: 2, kind: input, shape index: {}]   ;;  %s198_s3 = inlined_call_operand.vmem [shape: bf16[32,16], index: 3, kind: input, shape index: {}]   ;;  %s199_s4 = inlined_call_operand.vmem [shape: bf16[32,16], index: 4, kind: output, shape index: {}]  }
   0x1   :  { %v99_v0 = vld [vmem:[%s195_s0] sm:$0xff]   ;;  %v130_v8 = vld [vmem:[%s195_s0 + $0x8] sm:$0xff]  }
   0x2   :  { %v107_v1 = vld [vmem:[%s196_s1] sm:$0xff]   ;;  %v100_v3 = vunpack.c.l.bf16 %v99_v0  ;;  %v101_v7 = vunpack.c.h.bf16 %v99_v0  ;;  %v131_v9 = vld [vmem:[%s196_s1 + $0x8] sm:$0xff]   ;;  %v104_v16 = vunpack.c.l.bf16 %v130_v8  ;;  %v105_v21 = vunpack.c.h.bf16 %v130_v8 }
   0x3   :  { %v115_v2 = vld [vmem:[%s197_s2] sm:$0xff]   ;;  %v108_v4 = vunpack.c.l.bf16 %v107_v1  ;;  %v109_v11 = vunpack.c.h.bf16 %v107_v1  ;;  %v132_v13 = vld [vmem:[%s197_s2 + $0x8] sm:$0xff]   ;;  %v112_v17 = vunpack.c.l.bf16 %v131_v9  ;;  %v113_v22 = vunpack.c.h.bf16 %v131_v9 }
   0x4   :  { %v116_v5 = vunpack.c.l.bf16 %v115_v2  ;;  %v123_v6 = vld [vmem:[%s198_s3] sm:$0xff]   ;;  %v117_v12 = vunpack.c.h.bf16 %v115_v2  ;;  %v133_v14 = vld [vmem:[%s198_s3 + $0x8] sm:$0xff]   ;;  %v120_v18 = vunpack.c.l.bf16 %v132_v13  ;;  %v121_v26 = vunpack.c.h.bf16 %v132_v13 }
   0x5   :  { %v124_v10 = vunpack.c.l.bf16 %v123_v6  ;;  %v33_v15 = vadd.f32 %v108_v4, %v100_v3  ;;  %v34_v19 = vadd.f32 %v109_v11, %v101_v7  ;;  %v125_v20 = vunpack.c.h.bf16 %v123_v6 }
   0x6   :  { %v35_v24 = vadd.f32 %v112_v17, %v104_v16  ;;  %v128_v25 = vunpack.c.l.bf16 %v133_v14  ;;  %v36_v28 = vadd.f32 %v113_v22, %v105_v21  ;;  %v129_v29 = vunpack.c.h.bf16 %v133_v14 }
   0x7   :  { %v45_v23 = vadd.f32 %v116_v5, %v33_v15  ;;  %v46_v27 = vadd.f32 %v117_v12, %v34_v19 }
   0x8   :  { %v47_v31 = vadd.f32 %v120_v18, %v35_v24  ;;  %v48_v33 = vadd.f32 %v121_v26, %v36_v28 }
   0x9   :  { %v57_v30 = vadd.f32 %v124_v10, %v45_v23  ;;  %v58_v32 = vadd.f32 %v125_v20, %v46_v27 }
   0xa   :  { %v59_v35 = vadd.f32 %v128_v25, %v47_v31  ;;  %v60_v37 = vadd.f32 %v129_v29, %v48_v33 }
   0xb   :  { %v61_v34 = vmul.f32 0.25, %v57_v30  ;;  %v62_v36 = vmul.f32 0.25, %v58_v32 }
   0xc   :  { %v63_v39 = vmul.f32 0.25, %v59_v35  ;;  %v64_v41 = vmul.f32 0.25, %v60_v37 }
   0xd   :  { %v94_v38 = vpack.c.bf16 %v61_v34, %v61_v34  ;;  %v95_v40 = vpack.c.bf16 %v62_v36, %v62_v36 }
   0xe   :  { %v96_v42 = vpack.c.bf16 %v63_v39, %v63_v39  ;;  %v97_v43 = vpack.c.bf16 %v64_v41, %v64_v41 }
   0xf   :  { %82 = vst.msk [vmem:[%s199_s4] sm:$0xf] %vm81_vm0, %v94_v38  ;;  %83 = vst.msk [vmem:[%s199_s4 + $0x4] sm:$0xf] %vm81_vm0, %v95_v40 }
  0x10   :  { %84 = vst.msk [vmem:[%s199_s4 + $0x8] sm:$0xf] %vm81_vm0, %v96_v42  ;;  %85 = vst.msk [vmem:[%s199_s4 + $0xc] sm:$0xf] %vm81_vm0, %v97_v43 }

// kernel: densenet_forward.21
= control target key start
LH: loop header
LB: loop body
LE: loop exit
PB: predicated region body
PF: predicated region fallthrough
CT: control target
= control target key end

     0   :  { %vm80_vm0 = vcmask 130048   ;;  %s308_s1 = inlined_call_operand.vmem [shape: bf16[16,128], index: 1, kind: input, shape index: {}]   ;;  %s309_s0 = inlined_call_operand.vmem [shape: bf16[32,16], index: 0, kind: input, shape index: {}]   ;;  %s310_s2 = inlined_call_operand.vmem [shape: f32[1,16], index: 2, kind: input, shape index: {}]   ;;  %s311_s3 = inlined_call_operand.vmem [shape: f32[1,16], index: 3, kind: input, shape index: {}]   ;;  %s312_s4 = inlined_call_operand.vmem [shape: f32[1,128], index: 4, kind: input, shape index: {}]   ;;  %s313_s5 = inlined_call_operand.vmem [shape: f32[1,128], index: 5, kind: input, shape index: {}]   ;;  %s314_s6 = inlined_call_operand.vmem [shape: bf16[32,128], index: 6, kind: output, shape index: {}]  }
   0x1   :  { %v245_v0 = vld [vmem:[%s308_s1] sm:$0xff]   ;;  %v234_v2 = vld [vmem:[%s309_s0 + $0x8] sm:$0xff]  }
   0x2   :  { %v217_v1 = vld [vmem:[%s309_s0] sm:$0xff]   ;;  %239 = vmatprep.subr.bf16.mxu0 %v245_v0  ;;  %v222_v6 = vunpack.c.l.bf16 %v234_v2  ;;  %v223_v7 = vunpack.c.h.bf16 %v234_v2 }
   0x3   :  { %v201_v3 = vld [vmem:[%s310_s2] ss:$0 sm:$0xff]  ;;  %v218_v4 = vunpack.c.l.bf16 %v217_v1  ;;  %v219_v5 = vunpack.c.h.bf16 %v217_v1  ;;  %240 = vmatpush3.bf16.msra.mxu0 %v245_v0 }
   0x4   :  { %v202_v8 = vld [vmem:[%s311_s3] ss:$0 sm:$0xff]  ;;  %v49_v11 = vmul.f32 %v222_v6, %v201_v3  ;;  %v50_v12 = vmul.f32 %v223_v7, %v201_v3 }
   0x5   :  { %v47_v9 = vmul.f32 %v218_v4, %v201_v3  ;;  %v48_v10 = vmul.f32 %v219_v5, %v201_v3  ;;  %v206_v23 = vld [vmem:[%s312_s4] ss:$0 sm:$0xff] }
   0x6   :  { %v60_v15 = vadd.f32 %v202_v8, %v49_v11  ;;  %v61_v16 = vadd.f32 %v202_v8, %v50_v12  ;;  %v207_v25 = vld [vmem:[%s313_s5] ss:$0 sm:$0xff] }
   0x7   :  { %v58_v13 = vadd.f32 %v202_v8, %v47_v9  ;;  %v59_v14 = vadd.f32 %v202_v8, %v48_v10 }
   0x8   :  { %v64_v19 = vmax.f32 %v60_v15, 0.0  ;;  %v65_v20 = vmax.f32 %v61_v16, 0.0 }
   0x9   :  { %v62_v17 = vmax.f32 %v58_v13, 0.0  ;;  %v63_v18 = vmax.f32 %v59_v14, 0.0 }
   0xa   :  { %v67_v22 = vpack.c.bf16 %v65_v20, %v64_v19 }
   0xb   :  { %v66_v21 = vpack.c.bf16 %v63_v18, %v62_v17 }
   0xd   :  { %241 = vmatprep.mubr.msk.bf16.mxu0 %vm80_vm0, %v66_v21 }
   0xe   :  { %242 = vmatmul.mubr.msk.bf16.vlgmr.msra.gmra.mrb[0].mxu0 %vm80_vm0, %v67_v22 }
  0xe1   :  { %v243_v24 = vpop.f32.mrb[0].mxu0 }
  0xe2   :  { %v160_v26 = vmul.f32 %v243_v24, %v206_v23  ;;  %v121_v27 = vpop.f32.mrb[1].mxu0 }
  0xe3   :  { %v158_v28 = vmul.f32 %v206_v23, %v121_v27  ;;  %v244_v29 = vpop.f32.mrb[2].mxu0 }
  0xe4   :  { %v171_v30 = vadd.f32 %v207_v25, %v160_v26  ;;  %v161_v31 = vmul.f32 %v244_v29, %v206_v23  ;;  %v124_v32 = vpop.f32.mrb[3].mxu0 }
  0xe5   :  { %v169_v33 = vadd.f32 %v207_v25, %v158_v28  ;;  %v159_v34 = vmul.f32 %v206_v23, %v124_v32 }
  0xe6   :  { %v172_v35 = vadd.f32 %v207_v25, %v161_v31  ;;  %v175_v37 = vmax.f32 %v171_v30, 0.0 }
  0xe7   :  { %v170_v36 = vadd.f32 %v207_v25, %v159_v34  ;;  %v173_v39 = vmax.f32 %v169_v33, 0.0 }
  0xe8   :  { %v176_v38 = vmax.f32 %v172_v35, 0.0 }
  0xe9   :  { %v174_v40 = vmax.f32 %v170_v36, 0.0 }
  0xea   :  { %v232_v41 = vpack.c.bf16 %v176_v38, %v175_v37 }
  0xeb   :  { %v227_v42 = vpack.c.bf16 %v174_v40, %v173_v39 }
  0xec   :  { %235 = vst [vmem:[%s314_s6 + $0x8] sm:$0xff] %v232_v41  }
  0xed   :  { %228 = vst [vmem:[%s314_s6] sm:$0xff] %v227_v42  }

// kernel: densenet_forward.22
= control target key start
LH: loop header
LB: loop body
LE: loop exit
PB: predicated region body
PF: predicated region fallthrough
CT: control target
= control target key end

     0   :  { %s2177_s9 = smov 0   ;;  %s2463_s0 = inlined_call_operand.vmem [shape: bf16[2,42,128], index: 0, kind: input, shape index: {}]   ;;  %s2464_s1 = inlined_call_operand.vmem [shape: bf16[9,128,128], index: 1, kind: input, shape index: {}]   ;;  %s2465_s2 = inlined_call_operand.vmem [shape: bf16[2,24,128], index: 2, kind: output, shape index: {}]  }
   0x1 LB: > { %s1515_s10 = sadd.s32 4294967295, %s2160_s9   ;;  %p1519_p0 = scmp.ge.s32.totalorder %s2160_s9, 1  ;;  %s2160_s9 = sphi %s2177_s9, %s12_s9  }
   0x2   : > { %p112_p1 = scmp.lt.s32.totalorder %s2160_s9, 3 }
   0x4   : > { %p113_p2 = pnand %p1519_p0, %p112_p1 }
   0x5   : > { %v2064_v0 = vld [vmem:[%s2464_s1] sm:$0xff] (!%p113_p2)   ;;  %v2066_v2 = vld [vmem:[%s2464_s1 + $0x8] sm:$0xff] (!%p113_p2)   ;;  %p134_p3 = scmp.lt.s32.totalorder (!%p113_p2), %s1515_s10, 1  ;;  %v2068_v4 = vld [vmem:[%s2464_s1 + $0x10] sm:$0xff] (!%p113_p2)   ;;  %vm742_vm0 = vsmask.f32 (!%p113_p2), 4352 }
   0x6   : > { %116 = sbr.rel (%p113_p2) target bundleno = 387 (0x183), region = 28  ;;  %v2065_v1 = vld [vmem:[%s2464_s1 + $0x100] sm:$0xff] (!%p113_p2)   ;;  %1843 = vmatprep.subr.bf16.mxu1 (!%p113_p2), %v2064_v0  ;;  %v2067_v3 = vld [vmem:[%s2464_s1 + $0x108] sm:$0xff] (!%p113_p2)   ;;  %v2069_v5 = vld [vmem:[%s2464_s1 + $0x110] sm:$0xff] (!%p113_p2)   ;;  %vm304_vm1 = vsmask.f32 (!%p113_p2), 7424 }
   0x7   : > { %1923 = vmatprep.subr.bf16.mxu0 (!%p113_p2), %v2065_v1  ;;  %1844 = vmatpush3.bf16.msra.mxu1 (!%p113_p2), %v2064_v0  ;;  %v2070_v6 = vld [vmem:[%s2464_s1 + $0x18] sm:$0xff] (!%p113_p2)   ;;  %v2072_v8 = vld [vmem:[%s2464_s1 + $0x20] sm:$0xff] (!%p113_p2)   ;;  %v2074_v10 = vld [vmem:[%s2464_s1 + $0x28] sm:$0xff] (!%p113_p2)   ;;  %vm458_vm2 = vcmask (!%p113_p2), 1046528   ;;  %vm1033_vm3 = vcmask (!%p113_p2), 1045504   ;;  %vm600_vm4 = vcmask (!%p113_p2), 1044480  }
   0x8   : > { %1924 = vmatpush3.bf16.msra.mxu0 (!%p113_p2), %v2065_v1  ;;  %1845 = vmatprep.subr.bf16.mxu1 (!%p113_p2), %v2066_v2  ;;  %v2071_v7 = vld [vmem:[%s2464_s1 + $0x118] sm:$0xff] (!%p113_p2)   ;;  %v2073_v9 = vld [vmem:[%s2464_s1 + $0x120] sm:$0xff] (!%p113_p2)   ;;  %v2075_v12 = vld [vmem:[%s2464_s1 + $0x128] sm:$0xff] (!%p113_p2)   ;;  %vm1175_vm5 = vsmask.f32 (!%p113_p2), 5376 }
   0x9   : > { %1925 = vmatprep.subr.bf16.mxu0 (!%p113_p2), %v2067_v3  ;;  %v2076_v15 = vld [vmem:[%s2464_s1 + $0x30] sm:$0xff] (!%p113_p2)   ;;  %v2078_v21 = vld [vmem:[%s2464_s1 + $0x38] sm:$0xff] (!%p113_p2)   ;;  %v2081_v30 = vld [vmem:[%s2464_s1 + $0x40] sm:$0xff] (!%p113_p2)  }
   0xa   : > { %v2077_v16 = vld [vmem:[%s2464_s1 + $0x130] sm:$0xff] (!%p113_p2)   ;;  %v2079_v26 = vld [vmem:[%s2464_s1 + $0x138] sm:$0xff] (!%p113_p2)   ;;  %v2084_v31 = vld [vmem:[%s2464_s1 + $0x140] sm:$0xff] (!%p113_p2)  }
   0xb   : > { %1846 = vmatpush3.bf16.msra.mxu1 (!%p113_p2), %v2066_v2  ;;  %v2086_v33 = vld [vmem:[%s2464_s1 + $0x48] sm:$0xff] (!%p113_p2)   ;;  %v2088_v35 = vld [vmem:[%s2464_s1 + $0x50] sm:$0xff] (!%p113_p2)   ;;  %v2090_v39 = vld [vmem:[%s2464_s1 + $0x58] sm:$0xff] (!%p113_p2)  }
   0xc   : > { %1926 = vmatpush3.bf16.msra.mxu0 (!%p113_p2), %v2067_v3  ;;  %1847 = vmatprep.subr.bf16.mxu1 (!%p113_p2), %v2068_v4  ;;  %v2087_v34 = vld [vmem:[%s2464_s1 + $0x148] sm:$0xff] (!%p113_p2)   ;;  %v2089_v36 = vld [vmem:[%s2464_s1 + $0x150] sm:$0xff] (!%p113_p2)   ;;  %v2091_v40 = vld [vmem:[%s2464_s1 + $0x158] sm:$0xff] (!%p113_p2)  }
   0xd   : > { %s2467_s10 = smov (!%p134_p3, %s1515_s10), 1  ;;  %1927 = vmatprep.subr.bf16.mxu0 %v2069_v5  ;;  %v2092_v45 = vld [vmem:[%s2464_s1 + $0x60] sm:$0xff]   ;;  %v2094_v51 = vld [vmem:[%s2464_s1 + $0x68] sm:$0xff]   ;;  %v2096_v53 = vld [vmem:[%s2464_s1 + $0x70] sm:$0xff]  }
   0xe   : > { %s2054_s27 = smul.u32 24, %s2467_s10  ;;  %v2093_v49 = vld [vmem:[%s2464_s1 + $0x160] sm:$0xff]   ;;  %v2095_v52 = vld [vmem:[%s2464_s1 + $0x168] sm:$0xff]   ;;  %v2097_v54 = vld [vmem:[%s2464_s1 + $0x170] sm:$0xff]  }
   0xf   : > { %1848 = vmatpush3.bf16.msra.mxu1 %v2068_v4  ;;  %v2098_v55 = vld [vmem:[%s2464_s1 + $0x78] sm:$0xff]   ;;  %v2102_v58 = vld [vmem:[%s2464_s1 + $0x80] sm:$0xff]   ;;  %v2106_v4 = vld [vmem:[%s2464_s1 + $0x88] sm:$0xff]   ;;  %s2055_s4 = smul.u32 12, %s2467_s10 }
  0x10   : > { %1928 = vmatpush3.bf16.msra.mxu0 %v2069_v5  ;;  %1849 = vmatprep.subr.bf16.mxu1 %v2070_v6  ;;  %s2224_s8 = scalar_lea.vmem %s2463_s0, %s2054_s27  ;;  %v2099_v56 = vld [vmem:[%s2464_s1 + $0x178] sm:$0xff]   ;;  %v2104_v61 = vld [vmem:[%s2464_s1 + $0x180] sm:$0xff]   ;;  %v2107_v5 = vld [vmem:[%s2464_s1 + $0x188] sm:$0xff]  }
  0x11   : > { %1929 = vmatprep.subr.bf16.mxu0 %v2071_v7  ;;  %v2080_v11 = vld [vmem:[%s2224_s8] sm:$0xff]   ;;  %v2083_v14 = vld [vmem:[%s2224_s8 + $0x8] sm:$0xff]   ;;  %s143_s7 = scalar_lea.vmem %s2465_s2, %s2055_s4 }
  0x12   : > { %1859 = vmatprep.mubr.bf16.mxu1 %v2080_v11  ;;  %v2082_v13 = vld [vmem:[%s2224_s8] sm:$0xf8]   ;;  %v752_v19 = vshrl.u32 %v2083_v14, 16  ;;  %v755_v20 = vshll.u32 %v2083_v14, 16  ;;  %v2085_v32 = vld [vmem:[%s2224_s8 + $0x8] ss:$0 sps:$4 sm:$0xff]  }
  0x13   : > { %1850 = vmatpush3.bf16.msra.mxu1 %v2070_v6  ;;  %v744_v17 = vshrl.u32 %v2082_v13, 16  ;;  %v747_v18 = vshll.u32 %v2082_v13, 16  ;;  %v2100_v37 = vld [vmem:[%s2224_s8] sm:$0xff]   ;;  %v2101_v38 = vld [vmem:[%s2224_s8 + $0x8] sm:$0x1f]   ;;  %v2109_v11 = vld [vmem:[%s2464_s1 + $0x190] sm:$0xff]  }
  0x14   : > { %1930 = vmatpush3.bf16.msra.mxu0 %v2071_v7  ;;  %1851 = vmatprep.subr.bf16.mxu1 %v2072_v8  ;;  %v754_v24 = vrot.slane %v752_v19, 3  ;;  %v757_v25 = vrot.slane %v755_v20, 4  ;;  %v306_v41 = vshrl.u32 %v2100_v37, 16  ;;  %v308_v42 = vshll.u32 %v2100_v37, 16  ;;  %v2103_v44 = vld [vmem:[%s2224_s8 + $0x4] sm:$0xff]   ;;  %v2111_v13 = vld [vmem:[%s2464_s1 + $0x198] sm:$0xff]  }
  0x15   : > { %1931 = vmatprep.subr.bf16.mxu0 %v2073_v9  ;;  %v746_v22 = vrot.slane %v744_v17, 3  ;;  %v749_v23 = vrot.slane %v747_v18, 4  ;;  %v313_v43 = vshll.u32 %v2101_v38, 16  ;;  %v317_v57 = vshrl.u32 %v2101_v38, 16  ;;  %v2120_v59 = vld [vmem:[%s2224_s8] sm:$0xfe]  }
  0x16   : > { %v758_v28 = vor.u32 %v757_v25, %v754_v24  ;;  %v310_v46 = vrot.slane %v308_v42, 1  ;;  %v2301_v60 = vld [vmem:[%s2224_s8 + $0x8] sm:$0x1f]   ;;  %v459_v63 = vrot.slane %v2120_v59, 1  ;;  %v2112_v14 = vld [vmem:[%s2464_s1 + $0xa0] sm:$0xff]   ;;  %v2116_v20 = vld [vmem:[%s2464_s1 + $0xb0] sm:$0xff]  }
  0x17   : > { %1852 = vmatpush3.bf16.msra.mxu1 %v2072_v8  ;;  %v750_v27 = vor.u32 %v749_v23, %v746_v22  ;;  %v315_v47 = vrot.slane %v313_v43, 1  ;;  %v2105_v62 = vld [vmem:[%s2224_s8 + $0xc] ss:$0 sps:$4 sm:$0xff]   ;;  %v460_v0 = vrot.slane %v2301_v60, 1  ;;  %v2123_v2 = vld [vmem:[%s2224_s8 + $0x4] sm:$0xfc]  }
  0x18   : > { %1932 = vmatpush3.bf16.msra.mxu0 %v2073_v9  ;;  %1853 = vmatprep.subr.bf16.mxu1 %v2074_v10  ;;  %v311_v48 = vor.u32 %v310_v46, %v306_v41  ;;  %v2310_v3 = vld [vmem:[%s2224_s8 + $0xc] sm:$0x3f]   ;;  %v1034_v6 = vrot.slane %v2123_v2, 2  ;;  %v2142_v18 = vld [vmem:[%s2224_s8 + $0x4] sm:$0xfc]   ;;  %v2118_v24 = vld [vmem:[%s2464_s1 + $0xb8] sm:$0xff]  }
  0x19   : > { %1933 = vmatprep.subr.bf16.mxu0 %v2075_v12  ;;  %v759_v29 = vsel %vm742_vm0, %v750_v27, %v758_v28  ;;  %v319_v1 = vor.u32 %v317_v57, %v315_v47  ;;  %v1035_v7 = vrot.slane %v2310_v3, 2  ;;  %v461_v8 = vsel %vm458_vm2, %v459_v63, %v460_v0  ;;  %v2115_v17 = vld [vmem:[%s2464_s1 + $0x1a8] sm:$0xff]   ;;  %v2119_v27 = vld [vmem:[%s2464_s1 + $0x1b8] sm:$0xff]   ;;  %v2146_v63 = vld [vmem:[%s2464_s1 + $0x210] sm:$0xff]  }
  0x1a   : > { %1939 = vmatprep.mubr.bf16.mxu0 %v759_v29  ;;  %v316_v50 = vsel %vm304_vm1, %v311_v48, %v315_v47  ;;  %v2143_v19 = vld [vmem:[%s2224_s8 + $0xc] sm:$0x7f]   ;;  %v1177_v22 = vshrl.u32 %v2142_v18, 16  ;;  %v1180_v23 = vshll.u32 %v2142_v18, 16  ;;  %v2130_v46 = vld [vmem:[%s2464_s1 + $0xd8] sm:$0xff]   ;;  %v2132_v48 = vld [vmem:[%s2464_s1 + $0xe0] sm:$0xff]  }
  0x1b   : > { %1854 = vmatpush3.bf16.msra.mxu1 %v2074_v10  ;;  %v1036_v9 = vsel %vm1033_vm3, %v1034_v6, %v1035_v7  ;;  %v2108_v10 = vld [vmem:[%s2464_s1 + $0x90] sm:$0xff]   ;;  %v1185_v25 = vshrl.u32 %v2143_v19, 16  ;;  %v2365_v29 = vld [vmem:[%s2224_s8 + $0x8] sm:$0x7f]   ;;  %v2131_v47 = vld [vmem:[%s2464_s1 + $0x1d8] sm:$0xff]  }
  0x1c   : > { %1934 = vmatpush3.bf16.msra.mxu0 %v2075_v12  ;;  %1855 = vmatprep.subr.bf16.mxu1 %v2076_v15  ;;  %v2110_v12 = vld [vmem:[%s2464_s1 + $0x98] sm:$0xff]   ;;  %v602_v37 = vrot.slane %v2365_v29, 3  ;;  %v2127_v41 = vld [vmem:[%s2464_s1 + $0x1c8] sm:$0xff]   ;;  %v2150_v3 = vld [vmem:[%s2464_s1 + $0x230] sm:$0xff]  }
  0x1d   : > { %1935 = vmatprep.subr.bf16.mxu0 %v2077_v16  ;;  %v2153_v57 = vld [vmem:[%s2224_s8 + $0xc] sm:$0x7f]  }
  0x1e   : > { %v1332_v60 = vrot.slane %v2153_v57, 3  ;;  %v2149_v2 = vld [vmem:[%s2464_s1 + $0x228] sm:$0xff]  }
  0x1f   : > { %1856 = vmatpush3.bf16.msra.mxu1 %v2076_v15  ;;  %v2113_v15 = vld [vmem:[%s2464_s1 + $0x1a0] sm:$0xff]  }
  0x20   : > { %1936 = vmatpush3.bf16.msra.mxu0 %v2077_v16  ;;  %1857 = vmatprep.subr.bf16.mxu1 %v2078_v21  ;;  %v2114_v16 = vld [vmem:[%s2464_s1 + $0xa8] sm:$0xff]  }
  0x21   : > { %1937 = vmatprep.subr.bf16.mxu0 %v2079_v26 }
  0x23   : > { %1858 = vmatpush3.bf16.msra.mxu1 %v2078_v21  ;;  %v2117_v21 = vld [vmem:[%s2464_s1 + $0x1b0] sm:$0xff]  }
  0x24   : > { %1938 = vmatpush3.bf16.msra.mxu0 %v2079_v26  ;;  %1863 = vmatprep.subr.bf16.mxu1 %v2081_v30  ;;  %v1188_v26 = vshll.u32 %v2143_v19, 16 }
  0x25   : > { %1943 = vmatprep.subr.bf16.mxu0 %v2084_v31 }
  0x26   : > { %1860 = vmatmul.mubr.bf16.vlgmr.msra.gmra.mrb[0].mxu1 %v2085_v32  ;;  %v1187_v32 = vrot.slane %v1185_v25, 2 }
  0x27   : > { %1864 = vmatpush3.bf16.msra.mxu1 %v2081_v30  ;;  %1940 = vmatmul.mubr.bf16.vlgmr.msra.gmra.mrb[0].mxu0 %v758_v28  ;;  %v2140_v28 = vld [vmem:[%s2224_s8] sm:$0xf8]   ;;  %v1179_v30 = vrot.slane %v1177_v22, 2 }
  0x28   : > { %1944 = vmatpush3.bf16.msra.mxu0 %v2084_v31  ;;  %1865 = vmatprep.subr.bf16.mxu1 %v2086_v33  ;;  %v1182_v31 = vrot.slane %v1180_v23, 3 }
  0x29   : > { %1945 = vmatprep.subr.bf16.mxu0 %v2087_v34  ;;  %1959 = vmatprep.mubr.bf16.mxu0 %v2103_v44  ;;  %v2128_v44 = vld [vmem:[%s2464_s1 + $0xd0] sm:$0xff]  }
  0x2a   : > { %1879 = vmatprep.mubr.bf16.mxu1 %v316_v50  ;;  %v1183_v38 = vor.u32 %v1182_v31, %v1179_v30  ;;  %v2134_v50 = vld [vmem:[%s2464_s1 + $0xe8] sm:$0xff]  }
  0x2b   : > { %1866 = vmatpush3.bf16.msra.mxu1 %v2086_v33  ;;  %v1190_v33 = vrot.slane %v1188_v26, 3 }
  0x2c   : > { %1946 = vmatpush3.bf16.msra.mxu0 %v2087_v34  ;;  %1867 = vmatprep.subr.bf16.mxu1 %v2088_v35  ;;  %v2122_v34 = vld [vmem:[%s2464_s1 + $0xc0] sm:$0xff]  }
  0x2d   : > { %1947 = vmatprep.subr.bf16.mxu0 %v2089_v36 }
  0x2f   : > { %1868 = vmatpush3.bf16.msra.mxu1 %v2088_v35  ;;  %v2125_v35 = vld [vmem:[%s2464_s1 + $0x1c0] sm:$0xff]  }
  0x30   : > { %1948 = vmatpush3.bf16.msra.mxu0 %v2089_v36  ;;  %1869 = vmatprep.subr.bf16.mxu1 %v2090_v39  ;;  %v601_v36 = vrot.slane %v2140_v28, 3 }
  0x31   : > { %1949 = vmatprep.subr.bf16.mxu0 %v2091_v40 }
  0x32   : > { %v603_v42 = vsel %vm600_vm4, %v601_v36, %v602_v37 }
  0x33   : > { %1870 = vmatpush3.bf16.msra.mxu1 %v2090_v39  ;;  %v2374_v39 = vor.u32 %v1190_v33, %v1187_v32 }
  0x34   : > { %1950 = vmatpush3.bf16.msra.mxu0 %v2091_v40  ;;  %1871 = vmatprep.subr.bf16.mxu1 %v2092_v45  ;;  %v2126_v40 = vld [vmem:[%s2464_s1 + $0xc8] sm:$0xff]  }
  0x35   : > { %1951 = vmatprep.subr.bf16.mxu0 %v2093_v49  ;;  %v1192_v43 = vsel %vm1175_vm5, %v1183_v38, %v2374_v39 }
  0x37   : > { %1872 = vmatpush3.bf16.msra.mxu1 %v2092_v45  ;;  %v2129_v45 = vld [vmem:[%s2464_s1 + $0x1d0] sm:$0xff]  }
  0x38   : > { %1952 = vmatpush3.bf16.msra.mxu0 %v2093_v49  ;;  %1873 = vmatprep.subr.bf16.mxu1 %v2094_v51  ;;  %v2133_v49 = vld [vmem:[%s2464_s1 + $0x1e0] sm:$0xff]  }
  0x39   : > { %1953 = vmatprep.subr.bf16.mxu0 %v2095_v52 }
  0x3b   : > { %1874 = vmatpush3.bf16.msra.mxu1 %v2094_v51  ;;  %v2135_v51 = vld [vmem:[%s2464_s1 + $0x1e8] sm:$0xff]  }
  0x3c   : > { %1954 = vmatpush3.bf16.msra.mxu0 %v2095_v52  ;;  %1875 = vmatprep.subr.bf16.mxu1 %v2096_v53  ;;  %v2136_v52 = vld [vmem:[%s2464_s1 + $0xf0] sm:$0xff]  }
  0x3d   : > { %1955 = vmatprep.subr.bf16.mxu0 %v2097_v54 }
  0x3f   : > { %1876 = vmatpush3.bf16.msra.mxu1 %v2096_v53  ;;  %v2137_v53 = vld [vmem:[%s2464_s1 + $0x1f0] sm:$0xff]  }
  0x40   : > { %1956 = vmatpush3.bf16.msra.mxu0 %v2097_v54  ;;  %1877 = vmatprep.subr.bf16.mxu1 %v2098_v55  ;;  %v2138_v54 = vld [vmem:[%s2464_s1 + $0xf8] sm:$0xff]  }
  0x41   : > { %1957 = vmatprep.subr.bf16.mxu0 %v2099_v56 }
  0x43   : > { %1878 = vmatpush3.bf16.msra.mxu1 %v2098_v55  ;;  %v2139_v55 = vld [vmem:[%s2464_s1 + $0x1f8] sm:$0xff]  }
  0x44   : > { %1958 = vmatpush3.bf16.msra.mxu0 %v2099_v56  ;;  %1883 = vmatprep.subr.bf16.mxu1 %v2102_v58  ;;  %v2152_v56 = vld [vmem:[%s2224_s8 + $0x4] sm:$0xf8]  }
  0x45   : > { %1963 = vmatprep.subr.bf16.mxu0 %v2104_v61  ;;  %v1331_v59 = vrot.slane %v2152_v56, 3 }
  0x46   : > { %1880 = vmatmul.mubr.bf16.vlgmr.msra.gmra.mrb[0].mxu1 %v319_v1  ;;  %v2148_v1 = vld [vmem:[%s2464_s1 + $0x220] sm:$0xff]  }
  0x47   : > { %1884 = vmatpush3.bf16.msra.mxu1 %v2102_v58  ;;  %1960 = vmatmul.mubr.bf16.vlgmr.msra.gmra.mrb[0].mxu0 %v2105_v62  ;;  %v2144_v58 = vld [vmem:[%s2464_s1 + $0x200] sm:$0xff]   ;;  %v1333_v62 = vsel %vm600_vm4, %v1331_v59, %v1332_v60 }
  0x48   : > { %1964 = vmatpush3.bf16.msra.mxu0 %v2104_v61  ;;  %1885 = vmatprep.subr.bf16.mxu1 %v2106_v4  ;;  %v2145_v61 = vld [vmem:[%s2464_s1 + $0x208] sm:$0xff]  }
  0x49   : > { %1965 = vmatprep.subr.bf16.mxu0 %v2107_v5  ;;  %1899 = vmatprep.mubr.bf16.mxu1 %v461_v8 }
  0x4a   : > { %1979 = vmatprep.mubr.bf16.mxu0 %v1036_v9 }
  0x4b   : > { %1886 = vmatpush3.bf16.msra.mxu1 %v2106_v4  ;;  %v2151_v4 = vld [vmem:[%s2464_s1 + $0x238] sm:$0xff]  }
  0x4c   : > { %1966 = vmatpush3.bf16.msra.mxu0 %v2107_v5  ;;  %1887 = vmatprep.subr.bf16.mxu1 %v2108_v10 }
  0x4d   : > { %1967 = vmatprep.subr.bf16.mxu0 %v2109_v11 }
  0x4f   : > { %1888 = vmatpush3.bf16.msra.mxu1 %v2108_v10 }
  0x50   : > { %1968 = vmatpush3.bf16.msra.mxu0 %v2109_v11  ;;  %1889 = vmatprep.subr.bf16.mxu1 %v2110_v12 }
  0x51   : > { %1969 = vmatprep.subr.bf16.mxu0 %v2111_v13 }
  0x53   : > { %1890 = vmatpush3.bf16.msra.mxu1 %v2110_v12 }
  0x54   : > { %1970 = vmatpush3.bf16.msra.mxu0 %v2111_v13  ;;  %1891 = vmatprep.subr.bf16.mxu1 %v2112_v14 }
  0x55   : > { %1971 = vmatprep.subr.bf16.mxu0 %v2113_v15 }
  0x57   : > { %1892 = vmatpush3.bf16.msra.mxu1 %v2112_v14 }
  0x58   : > { %1972 = vmatpush3.bf16.msra.mxu0 %v2113_v15  ;;  %1893 = vmatprep.subr.bf16.mxu1 %v2114_v16 }
  0x59   : > { %1973 = vmatprep.subr.bf16.mxu0 %v2115_v17 }
  0x5b   : > { %1894 = vmatpush3.bf16.msra.mxu1 %v2114_v16 }
  0x5c   : > { %1974 = vmatpush3.bf16.msra.mxu0 %v2115_v17  ;;  %1895 = vmatprep.subr.bf16.mxu1 %v2116_v20 }
  0x5d   : > { %1975 = vmatprep.subr.bf16.mxu0 %v2117_v21 }
  0x5f   : > { %1896 = vmatpush3.bf16.msra.mxu1 %v2116_v20 }
  0x60   : > { %1976 = vmatpush3.bf16.msra.mxu0 %v2117_v21  ;;  %1897 = vmatprep.subr.bf16.mxu1 %v2118_v24 }
  0x61   : > { %1977 = vmatprep.subr.bf16.mxu0 %v2119_v27 }
  0x63   : > { %1898 = vmatpush3.bf16.msra.mxu1 %v2118_v24 }
  0x64   : > { %1978 = vmatpush3.bf16.msra.mxu0 %v2119_v27  ;;  %1903 = vmatprep.subr.bf16.mxu1 %v2122_v34 }
  0x65   : > { %1983 = vmatprep.subr.bf16.mxu0 %v2125_v35 }
  0x66   : > { %1900 = vmatmul.mubr.bf16.vlgmr.msra.gmra.mrb[0].mxu1 %v460_v0  ;;  %v2147_v0 = vld [vmem:[%s2464_s1 + $0x218] sm:$0xff]  }
  0x67   : > { %1904 = vmatpush3.bf16.msra.mxu1 %v2122_v34  ;;  %1980 = vmatmul.mubr.bf16.vlgmr.msra.gmra.mrb[0].mxu0 %v1035_v7 }
  0x68   : > { %1984 = vmatpush3.bf16.msra.mxu0 %v2125_v35  ;;  %1905 = vmatprep.subr.bf16.mxu1 %v2126_v40 }
  0x69   : > { %1985 = vmatprep.subr.bf16.mxu0 %v2127_v41  ;;  %1919 = vmatprep.mubr.bf16.mxu1 %v603_v42 }
  0x6a   : > { %1999 = vmatprep.mubr.bf16.mxu0 %v1192_v43 }
  0x6b   : > { %1906 = vmatpush3.bf16.msra.mxu1 %v2126_v40 }
  0x6c   : > { %1986 = vmatpush3.bf16.msra.mxu0 %v2127_v41  ;;  %1907 = vmatprep.subr.bf16.mxu1 %v2128_v44 }
  0x6d   : > { %1987 = vmatprep.subr.bf16.mxu0 %v2129_v45 }
  0x6f   : > { %1908 = vmatpush3.bf16.msra.mxu1 %v2128_v44 }
  0x70   : > { %1988 = vmatpush3.bf16.msra.mxu0 %v2129_v45  ;;  %1909 = vmatprep.subr.bf16.mxu1 %v2130_v46 }
  0x71   : > { %1989 = vmatprep.subr.bf16.mxu0 %v2131_v47 }
  0x73   : > { %1910 = vmatpush3.bf16.msra.mxu1 %v2130_v46 }
  0x74   : > { %1990 = vmatpush3.bf16.msra.mxu0 %v2131_v47  ;;  %1911 = vmatprep.subr.bf16.mxu1 %v2132_v48 }
  0x75   : > { %1991 = vmatprep.subr.bf16.mxu0 %v2133_v49 }
  0x77   : > { %1912 = vmatpush3.bf16.msra.mxu1 %v2132_v48 }
  0x78   : > { %1992 = vmatpush3.bf16.msra.mxu0 %v2133_v49  ;;  %1913 = vmatprep.subr.bf16.mxu1 %v2134_v50 }
  0x79   : > { %1993 = vmatprep.subr.bf16.mxu0 %v2135_v51 }
  0x7b   : > { %1914 = vmatpush3.bf16.msra.mxu1 %v2134_v50 }
  0x7c   : > { %1994 = vmatpush3.bf16.msra.mxu0 %v2135_v51  ;;  %1915 = vmatprep.subr.bf16.mxu1 %v2136_v52 }
  0x7d   : > { %1995 = vmatprep.subr.bf16.mxu0 %v2137_v53 }
  0x7f   : > { %1916 = vmatpush3.bf16.msra.mxu1 %v2136_v52 }
  0x80   : > { %1996 = vmatpush3.bf16.msra.mxu0 %v2137_v53  ;;  %1917 = vmatprep.subr.bf16.mxu1 %v2138_v54 }
  0x81   : > { %1997 = vmatprep.subr.bf16.mxu0 %v2139_v55 }
  0x83   : > { %1918 = vmatpush3.bf16.msra.mxu1 %v2138_v54 }
  0x84   : > { %1998 = vmatpush3.bf16.msra.mxu0 %v2139_v55 }
  0x85   : > { %2003 = vmatprep.subr.bf16.mxu0 %v2144_v58 }
  0x86   : > { %1920 = vmatmul.mubr.bf16.vlgmr.msra.gmra.mrb[0].mxu1 %v602_v37 }
  0x87   : > { %2000 = vmatmul.mubr.bf16.vlgmr.msra.gmra.mrb[0].mxu0 %v2374_v39 }
  0x88   : > { %2004 = vmatpush3.bf16.msra.mxu0 %v2144_v58  ;;  %2019 = vmatprep.mubr.bf16.mxu0 %v1333_v62 }
  0x89   : > { %2005 = vmatprep.subr.bf16.mxu0 %v2145_v61 }
  0x8c   : > { %2006 = vmatpush3.bf16.msra.mxu0 %v2145_v61 }
  0x8d   : > { %2007 = vmatprep.subr.bf16.mxu0 %v2146_v63 }
  0x90   : > { %2008 = vmatpush3.bf16.msra.mxu0 %v2146_v63 }
  0x91   : > { %2009 = vmatprep.subr.bf16.mxu0 %v2147_v0 }
  0x94   : > { %2010 = vmatpush3.bf16.msra.mxu0 %v2147_v0 }
  0x95   : > { %2011 = vmatprep.subr.bf16.mxu0 %v2148_v1 }
  0x98   : > { %2012 = vmatpush3.bf16.msra.mxu0 %v2148_v1 }
  0x99   : > { %2013 = vmatprep.subr.bf16.mxu0 %v2149_v2 }
  0x9c   : > { %2014 = vmatpush3.bf16.msra.mxu0 %v2149_v2 }
  0x9d   : > { %2015 = vmatprep.subr.bf16.mxu0 %v2150_v3 }
  0xa0   : > { %2016 = vmatpush3.bf16.msra.mxu0 %v2150_v3 }
  0xa1   : > { %2017 = vmatprep.subr.bf16.mxu0 %v2151_v4 }
  0xa4   : > { %2018 = vmatpush3.bf16.msra.mxu0 %v2151_v4 }
  0xa7   : > { %2020 = vmatmul.mubr.bf16.vlgmr.msra.gmra.mrb[0].mxu0 %v1332_v60 }
 0x159   : > { %v1921_v5 = vpop.f32.mrb[0].mxu1 }
 0x15a   : > { %v688_v6 = vpop.f32.mrb[1].mxu1 }
 0x15b   : > { %v1922_v7 = vpop.f32.mrb[2].mxu1 }
 0x15c   : > { %v691_v8 = vpop.f32.mrb[3].mxu1 }
 0x17a   : > { %v2021_v9 = vpop.f32.mrb[0].mxu0 }
 0x17b   : > { %v2023_v10 = vadd.f32 %v2021_v9, %v1921_v5  ;;  %v1418_v11 = vpop.f32.mrb[1].mxu0 }
 0x17c   : > { %v2024_v12 = vadd.f32 %v1418_v11, %v688_v6  ;;  %v2022_v13 = vpop.f32.mrb[2].mxu0 }
 0x17d   : > { %v1747_v14 = vpack.c.bf16 %v2023_v10, %v2023_v10  ;;  %v1421_v15 = vpop.f32.mrb[3].mxu0 }
 0x17e   : > { %v2025_v16 = vadd.f32 %v1421_v15, %v691_v8 }
 0x17f   : > { %1459 = vst [vmem:[%s143_s7 + $0x8] sm:$0xf] %v1747_v14 }
 0x180   : > { %v1751_v17 = vpack.c.bf16 %v2025_v16, %v2024_v12 }
 0x182   : > { %1752 = vst [vmem:[%s143_s7] sm:$0xff] %v1751_v17  }
 0x183 PF: > { %s12_s9 = sadd.s32 1, %s2160_s9  }
 0x184   : > { %p9_p4 = scmp.ge.s32.totalorder %s12_s9, 4  }
 0x186   :  { %11 = sbr.rel (!%p9_p4) target bundleno = 1 (0x1), region = 66 }

// kernel: densenet_forward.23
= control target key start
LH: loop header
LB: loop body
LE: loop exit
PB: predicated region body
PF: predicated region fallthrough
CT: control target
= control target key end

     0   :  { %vm91_vm0 = vcmask 1043456   ;;  %vm84_vm1 = vcmask 195584   ;;  %s325_s1 = inlined_call_operand.vmem [shape: bf16[24,128], index: 1, kind: input, shape index: {}]   ;;  %s326_s0 = inlined_call_operand.vmem [shape: bf16[32,24], index: 0, kind: input, shape index: {}]   ;;  %s327_s2 = inlined_call_operand.vmem [shape: f32[1,24], index: 2, kind: input, shape index: {}]   ;;  %s328_s3 = inlined_call_operand.vmem [shape: f32[1,24], index: 3, kind: input, shape index: {}]   ;;  %s329_s4 = inlined_call_operand.vmem [shape: f32[1,128], index: 4, kind: input, shape index: {}]   ;;  %s330_s5 = inlined_call_operand.vmem [shape: f32[1,128], index: 5, kind: input, shape index: {}]   ;;  %s331_s6 = inlined_call_operand.vmem [shape: bf16[32,128], index: 6, kind: output, shape index: {}]  }
   0x1   :  { %v258_v0 = vld [vmem:[%s325_s1] sm:$0xff]   ;;  %v259_v1 = vld [vmem:[%s325_s1 + $0x8] ss:$0 sps:$4 sm:$0xff]  }
   0x2   :  { %v226_v2 = vld [vmem:[%s326_s0] sm:$0xff]   ;;  %v243_v5 = vld [vmem:[%s326_s0 + $0x8] sm:$0xff]   ;;  %249 = vmatprep.subr.bf16.mxu0 %v258_v0  ;;  %v93_v12 = vsel %vm91_vm0, %v259_v1, 0 }
   0x3   :  { %v227_v3 = vunpack.c.l.bf16 %v226_v2  ;;  %v228_v4 = vunpack.c.h.bf16 %v226_v2  ;;  %v209_v6 = vld [vmem:[%s327_s2] ss:$0 sm:$0xff]  ;;  %v231_v7 = vunpack.c.l.bf16 %v243_v5  ;;  %v232_v8 = vunpack.c.h.bf16 %v243_v5  ;;  %250 = vmatpush3.bf16.msra.mxu0 %v258_v0 }
   0x4   :  { %v210_v9 = vld [vmem:[%s328_s3] ss:$0 sm:$0xff]  ;;  %257 = vmatprep.subr.msk.bf16.mxu0 %vm91_vm0, %v259_v1 }
   0x5   :  { %v47_v10 = vmul.f32 %v227_v3, %v209_v6  ;;  %v48_v11 = vmul.f32 %v228_v4, %v209_v6  ;;  %v49_v13 = vmul.f32 %v231_v7, %v209_v6  ;;  %v50_v14 = vmul.f32 %v232_v8, %v209_v6  ;;  %v215_v25 = vld [vmem:[%s329_s4] ss:$0 sm:$0xff] }
   0x6   :  { %v216_v27 = vld [vmem:[%s330_s5] ss:$0 sm:$0xff] }
   0x7   :  { %v58_v15 = vadd.f32 %v210_v9, %v47_v10  ;;  %v59_v16 = vadd.f32 %v210_v9, %v48_v11  ;;  %v60_v17 = vadd.f32 %v210_v9, %v49_v13  ;;  %v61_v18 = vadd.f32 %v210_v9, %v50_v14  ;;  %252 = vmatpush3.bf16.msra.mxu0 %v93_v12 }
   0x9   :  { %v62_v19 = vmax.f32 %v58_v15, 0.0  ;;  %v63_v20 = vmax.f32 %v59_v16, 0.0  ;;  %v64_v21 = vmax.f32 %v60_v17, 0.0  ;;  %v65_v22 = vmax.f32 %v61_v18, 0.0 }
   0xb   :  { %v66_v23 = vpack.c.bf16 %v63_v20, %v62_v19  ;;  %v67_v24 = vpack.c.bf16 %v65_v22, %v64_v21 }
   0xd   :  { %253 = vmatprep.mubr.msk.bf16.mxu0 %vm84_vm1, %v66_v23 }
   0xe   :  { %254 = vmatmul.mubr.msk.bf16.vlgmr.msra.gmra.mrb[0].mxu0 %vm84_vm1, %v67_v24 }
  0xe1   :  { %v255_v26 = vpop.f32.mrb[0].mxu0 }
  0xe2   :  { %v168_v28 = vmul.f32 %v255_v26, %v215_v25  ;;  %v129_v29 = vpop.f32.mrb[1].mxu0 }
  0xe3   :  { %v166_v30 = vmul.f32 %v215_v25, %v129_v29  ;;  %v256_v31 = vpop.f32.mrb[2].mxu0 }
  0xe4   :  { %v179_v32 = vadd.f32 %v216_v27, %v168_v28  ;;  %v169_v33 = vmul.f32 %v256_v31, %v215_v25  ;;  %v132_v34 = vpop.f32.mrb[3].mxu0 }
  0xe5   :  { %v177_v35 = vadd.f32 %v216_v27, %v166_v30  ;;  %v167_v36 = vmul.f32 %v215_v25, %v132_v34 }
  0xe6   :  { %v180_v37 = vadd.f32 %v216_v27, %v169_v33  ;;  %v183_v39 = vmax.f32 %v179_v32, 0.0 }
  0xe7   :  { %v178_v38 = vadd.f32 %v216_v27, %v167_v36  ;;  %v181_v41 = vmax.f32 %v177_v35, 0.0 }
  0xe8   :  { %v184_v40 = vmax.f32 %v180_v37, 0.0 }
  0xe9   :  { %v182_v42 = vmax.f32 %v178_v38, 0.0 }
  0xea   :  { %v241_v43 = vpack.c.bf16 %v184_v40, %v183_v39 }
  0xeb   :  { %v236_v44 = vpack.c.bf16 %v182_v42, %v181_v41 }
  0xec   :  { %244 = vst [vmem:[%s331_s6 + $0x8] sm:$0xff] %v241_v43  }
  0xed   :  { %237 = vst [vmem:[%s331_s6] sm:$0xff] %v236_v44  }

// kernel: densenet_forward.16
= control target key start
LH: loop header
LB: loop body
LE: loop exit
PB: predicated region body
PF: predicated region fallthrough
CT: control target
= control target key end

     0   :  { %s3430_s9 = smov 0   ;;  %s3932_s0 = inlined_call_operand.vmem [shape: bf16[2,110,128], index: 0, kind: input, shape index: {}]   ;;  %s3933_s1 = inlined_call_operand.vmem [shape: bf16[9,128,128], index: 1, kind: input, shape index: {}]   ;;  %s3934_s2 = inlined_call_operand.vmem [shape: bf16[2,80,128], index: 2, kind: output, shape index: {}]  }
   0x1 LB: > { %s2354_s10 = sadd.s32 4294967295, %s3411_s9   ;;  %p2358_p0 = scmp.ge.s32.totalorder %s3411_s9, 1  ;;  %s3411_s9 = sphi %s3430_s9, %s12_s9  }
   0x2   : > { %p112_p1 = scmp.lt.s32.totalorder %s3411_s9, 3 }
   0x4   : > { %p113_p2 = pnand %p2358_p0, %p112_p1 }
   0x5   : > { %v3280_v0 = vld [vmem:[%s3933_s1] sm:$0xff] (!%p113_p2)   ;;  %v3413_v1 = vmov (!%p113_p2), 0.0   ;;  %v3282_v3 = vld [vmem:[%s3933_s1 + $0x8] sm:$0xff] (!%p113_p2)   ;;  %vm3414_vm0 = vmmov (!%p113_p2), 0   ;;  %p134_p3 = scmp.lt.s32.totalorder (!%p113_p2), %s2354_s10, 1  ;;  %v3284_v5 = vld [vmem:[%s3933_s1 + $0x10] sm:$0xff] (!%p113_p2)  }
   0x6   : > { %116 = sbr.rel (%p113_p2) target bundleno = 434 (0x1b2), region = 28  ;;  %2782 = vmatprep.subr.bf16.mxu1 (!%p113_p2), %v3413_v1  ;;  %2926 = vmatprep.subr.bf16.mxu0 (!%p113_p2), %v3413_v1  ;;  %v3281_v2 = vld [vmem:[%s3933_s1 + $0x100] sm:$0xff] (!%p113_p2)   ;;  %v3283_v4 = vld [vmem:[%s3933_s1 + $0x108] sm:$0xff] (!%p113_p2)   ;;  %v3285_v6 = vld [vmem:[%s3933_s1 + $0x110] sm:$0xff] (!%p113_p2)   ;;  %vm1092_vm1 = vsmask.f32 (!%p113_p2), 6400 }
   0x7   : > { %2783 = vmatpush3.bf16.msra.mxu1 (!%p113_p2), %v3280_v0  ;;  %2798 = vmatprep.mubr.msk.bf16.mxu1 (!%p113_p2), %vm3414_vm0, %v3413_v1  ;;  %v3286_v7 = vld [vmem:[%s3933_s1 + $0x18] sm:$0xff] (!%p113_p2)   ;;  %v3288_v9 = vld [vmem:[%s3933_s1 + $0x20] sm:$0xff] (!%p113_p2)   ;;  %v3290_v11 = vld [vmem:[%s3933_s1 + $0x28] sm:$0xff] (!%p113_p2)   ;;  %vm388_vm2 = vsmask.f32 (!%p113_p2), 7424  ;;  %vm1358_vm3 = vcmask (!%p113_p2), 1045504  }
   0x8   : > { %2927 = vmatpush3.bf16.msra.mxu0 (!%p113_p2), %v3281_v2  ;;  %2784 = vmatprep.subr.bf16.mxu1 (!%p113_p2), %v3413_v1  ;;  %v3287_v8 = vld [vmem:[%s3933_s1 + $0x118] sm:$0xff] (!%p113_p2)   ;;  %v3289_v10 = vld [vmem:[%s3933_s1 + $0x120] sm:$0xff] (!%p113_p2)   ;;  %v3291_v14 = vld [vmem:[%s3933_s1 + $0x128] sm:$0xff] (!%p113_p2)   ;;  %vm645_vm4 = vcmask (!%p113_p2), 1046528   ;;  %vm1805_vm5 = vsmask.f32 (!%p113_p2), 5376 }
   0x9   : > { %2928 = vmatprep.subr.bf16.mxu0 (!%p113_p2), %v3413_v1  ;;  %2942 = vmatprep.mubr.msk.bf16.mxu0 (!%p113_p2), %vm3414_vm0, %v3413_v1  ;;  %v3292_v19 = vld [vmem:[%s3933_s1 + $0x30] sm:$0xff] (!%p113_p2)   ;;  %v3294_v26 = vld [vmem:[%s3933_s1 + $0x38] sm:$0xff] (!%p113_p2)   ;;  %v3299_v33 = vld [vmem:[%s3933_s1 + $0x140] sm:$0xff] (!%p113_p2)   ;;  %vm2071_vm6 = vcmask (!%p113_p2), 1044480  }
   0xa   : > { %v3293_v20 = vld [vmem:[%s3933_s1 + $0x130] sm:$0xff] (!%p113_p2)   ;;  %v3295_v27 = vld [vmem:[%s3933_s1 + $0x138] sm:$0xff] (!%p113_p2)   ;;  %v3303_v38 = vld [vmem:[%s3933_s1 + $0x40] sm:$0xff] (!%p113_p2)  }
   0xb   : > { %2785 = vmatpush3.bf16.msra.mxu1 (!%p113_p2), %v3282_v3  ;;  %v3300_v39 = vld [vmem:[%s3933_s1 + $0x148] sm:$0xff] (!%p113_p2)   ;;  %v3304_v47 = vld [vmem:[%s3933_s1 + $0x150] sm:$0xff] (!%p113_p2)   ;;  %v3308_v55 = vld [vmem:[%s3933_s1 + $0x158] sm:$0xff] (!%p113_p2)  }
   0xc   : > { %2929 = vmatpush3.bf16.msra.mxu0 (!%p113_p2), %v3283_v4  ;;  %2786 = vmatprep.subr.bf16.mxu1 (!%p113_p2), %v3413_v1  ;;  %v3305_v43 = vld [vmem:[%s3933_s1 + $0x48] sm:$0xff] (!%p113_p2)   ;;  %v3309_v50 = vld [vmem:[%s3933_s1 + $0x50] sm:$0xff] (!%p113_p2)   ;;  %v3310_v56 = vld [vmem:[%s3933_s1 + $0x58] sm:$0xff] (!%p113_p2)  }
   0xd   : > { %s3936_s10 = smov (!%p134_p3, %s2354_s10), 1  ;;  %2930 = vmatprep.subr.bf16.mxu0 %v3413_v1  ;;  %v3311_v57 = vld [vmem:[%s3933_s1 + $0x160] sm:$0xff]   ;;  %v3315_v63 = vld [vmem:[%s3933_s1 + $0x168] sm:$0xff]  }
   0xe   : > { %s3268_s27 = smul.u32 56, %s3936_s10  ;;  %v3314_v62 = vld [vmem:[%s3933_s1 + $0x60] sm:$0xff]  }
   0xf   : > { %2787 = vmatpush3.bf16.msra.mxu1 %v3284_v5  ;;  %v3316_v5 = vld [vmem:[%s3933_s1 + $0x68] sm:$0xff]  }
  0x10   : > { %2931 = vmatpush3.bf16.msra.mxu0 %v3285_v6  ;;  %2788 = vmatprep.subr.bf16.mxu1 %v3413_v1  ;;  %s3487_s6 = scalar_lea.vmem %s3932_s0, %s3268_s27  ;;  %v3317_v6 = vld [vmem:[%s3933_s1 + $0x170] sm:$0xff]  }
  0x11   : > { %2932 = vmatprep.subr.bf16.mxu0 %v3413_v1  ;;  %v3297_v12 = vld [vmem:[%s3487_s6 + $0x4] sm:$0xfe]   ;;  %v3298_v13 = vld [vmem:[%s3487_s6 + $0xc] sm:$0xff]   ;;  %v3302_v25 = vld [vmem:[%s3487_s6 + $0x14] sm:$0xff]  }
  0x12   : > { %v1094_v15 = vshrl.u32 %v3297_v12, 16  ;;  %v1097_v16 = vshll.u32 %v3297_v12, 16  ;;  %v1102_v17 = vshrl.u32 %v3298_v13, 16  ;;  %v1105_v18 = vshll.u32 %v3298_v13, 16  ;;  %v3296_v32 = vld [vmem:[%s3487_s6] sm:$0xff]   ;;  %v3301_v44 = vld [vmem:[%s3487_s6 + $0x8] sm:$0xff]  }
  0x13   : > { %2789 = vmatpush3.bf16.msra.mxu1 %v3286_v7  ;;  %v1111_v28 = vshrl.u32 %v3302_v25, 16  ;;  %v1114_v29 = vshll.u32 %v3302_v25, 16  ;;  %v3307_v36 = vld [vmem:[%s3487_s6 + $0x1c] sm:$0xff]   ;;  %v3313_v45 = vld [vmem:[%s3487_s6 + $0x24] sm:$0xff]   ;;  %v3306_v53 = vld [vmem:[%s3487_s6 + $0x10] sm:$0xff]  }
  0x14   : > { %2933 = vmatpush3.bf16.msra.mxu0 %v3287_v8  ;;  %2790 = vmatprep.subr.bf16.mxu1 %v3413_v1  ;;  %v1096_v21 = vrot.slane %v1094_v15, 1  ;;  %v1099_v22 = vrot.slane %v1097_v16, 2  ;;  %v1104_v23 = vrot.slane %v1102_v17, 1  ;;  %v1107_v24 = vrot.slane %v1105_v18, 2  ;;  %v3312_v0 = vld [vmem:[%s3487_s6 + $0x18] sm:$0xff]   ;;  %v3323_v7 = vld [vmem:[%s3487_s6] sm:$0xff]  }
  0x15   : > { %2934 = vmatprep.subr.bf16.mxu0 %v3413_v1  ;;  %v1113_v34 = vrot.slane %v1111_v28, 1  ;;  %v1116_v35 = vrot.slane %v1114_v29, 2  ;;  %v1120_v41 = vshrl.u32 %v3307_v36, 16  ;;  %v1123_v42 = vshll.u32 %v3307_v36, 16  ;;  %v3324_v12 = vld [vmem:[%s3487_s6 + $0x8] sm:$0xff]   ;;  %v3321_v16 = vld [vmem:[%s3933_s1 + $0x178] sm:$0xff]  }
  0x16   : > { %v1100_v30 = vor.u32 %v1099_v22, %v1096_v21  ;;  %v1108_v31 = vor.u32 %v1107_v24, %v1104_v23  ;;  %v1129_v51 = vshrl.u32 %v3313_v45, 16  ;;  %v1132_v52 = vshll.u32 %v3313_v45, 16  ;;  %v3319_v60 = vld [vmem:[%s3487_s6 + $0x2c] ss:$0 sps:$4 sm:$0x33]   ;;  %v3322_v17 = vld [vmem:[%s3933_s1 + $0x78] sm:$0xff]  }
  0x17   : > { %2791 = vmatpush3.bf16.msra.mxu1 %v3288_v9  ;;  %v1117_v40 = vor.u32 %v1116_v35, %v1113_v34  ;;  %v1122_v48 = vrot.slane %v1120_v41, 1  ;;  %v1125_v49 = vrot.slane %v1123_v42, 2  ;;  %v1138_v3 = vshrl.u32 %v3319_v60, 16  ;;  %v3326_v23 = vld [vmem:[%s3487_s6 + $0xc] sm:$0xff]   ;;  %v3330_v34 = vld [vmem:[%s3487_s6 + $0x14] sm:$0xff]   ;;  %v3331_v35 = vld [vmem:[%s3933_s1 + $0x80] sm:$0xff]  }
  0x18   : > { %2935 = vmatpush3.bf16.msra.mxu0 %v3289_v10  ;;  %2792 = vmatprep.subr.bf16.mxu1 %v3413_v1  ;;  %v1109_v37 = vsel %vm1092_vm1, %v1100_v30, %v1108_v31  ;;  %v1131_v58 = vrot.slane %v1129_v51, 1  ;;  %v1134_v59 = vrot.slane %v1132_v52, 2  ;;  %v1141_v4 = vshll.u32 %v3319_v60, 16  ;;  %v3329_v24 = vld [vmem:[%s3487_s6 + $0x10] sm:$0xff]   ;;  %v3333_v41 = vld [vmem:[%s3933_s1 + $0x88] sm:$0xff]   ;;  %v3340_v51 = vld [vmem:[%s3487_s6 + $0x20] sm:$0xff]  }
  0x19   : > { %2936 = vmatprep.subr.bf16.mxu0 %v3413_v1  ;;  %v1118_v46 = vsel %vm1092_vm1, %v1108_v31, %v1117_v40  ;;  %v1126_v54 = vor.u32 %v1125_v49, %v1122_v48  ;;  %v1140_v9 = vrot.slane %v1138_v3, 1  ;;  %v392_v13 = vshll.u32 %v3323_v7, 16  ;;  %v3327_v31 = vld [vmem:[%s3933_s1 + $0x180] sm:$0xff]   ;;  %v3332_v42 = vld [vmem:[%s3933_s1 + $0x190] sm:$0xff]   ;;  %v3343_v3 = vld [vmem:[%s3933_s1 + $0x1a8] sm:$0xff]  }
  0x1a   : > { %v1135_v2 = vor.u32 %v1134_v59, %v1131_v58  ;;  %v1143_v10 = vrot.slane %v1141_v4, 2  ;;  %v390_v18 = vshrl.u32 %v3323_v7, 16  ;;  %v397_v21 = vshll.u32 %v3324_v12, 16  ;;  %v3337_v48 = vld [vmem:[%s3933_s1 + $0x90] sm:$0xff]   ;;  %v3341_v60 = vld [vmem:[%s3487_s6 + $0x24] sm:$0xff]  }
  0x1b   : > { %2793 = vmatpush3.bf16.msra.mxu1 %v3290_v11  ;;  %v1127_v61 = vsel %vm1092_vm1, %v1117_v40, %v1126_v54  ;;  %v3320_v11 = vld [vmem:[%s3933_s1 + $0x70] sm:$0xff]   ;;  %v1360_v28 = vrot.slane %v3326_v23, 2  ;;  %v405_v29 = vshll.u32 %v3329_v24, 16  ;;  %v1362_v40 = vrot.slane %v3330_v34, 2  ;;  %v3344_v4 = vld [vmem:[%s3933_s1 + $0xa8] sm:$0xff]  }
  0x1c   : > { %2937 = vmatpush3.bf16.msra.mxu0 %v3291_v14  ;;  %2794 = vmatprep.subr.bf16.mxu1 %v3413_v1  ;;  %v1136_v8 = vsel %vm1092_vm1, %v1126_v54, %v1135_v2  ;;  %v3318_v14 = vld [vmem:[%s3487_s6 + $0x20] sm:$0xff]   ;;  %v1144_v15 = vor.u32 %v1143_v10, %v1140_v9  ;;  %v3338_v54 = vld [vmem:[%s3933_s1 + $0x98] sm:$0xff]   ;;  %v421_v58 = vshll.u32 %v3340_v51, 16  ;;  %v425_v7 = vshrl.u32 %v3340_v51, 16  ;;  %v3345_v10 = vld [vmem:[%s3933_s1 + $0x1b0] sm:$0xff]  }
  0x1d   : > { %2938 = vmatprep.subr.bf16.mxu0 %v3413_v1  ;;  %v407_v36 = vrot.slane %v405_v29, 1  ;;  %v3357_v29 = vld [vmem:[%s3487_s6 + $0x10] sm:$0xff]   ;;  %v3356_v34 = vld [vmem:[%s3933_s1 + $0x1c8] sm:$0xff]  }
  0x1e   : > { %v1145_v22 = vsel %vm1092_vm1, %v1135_v2, %v1144_v15  ;;  %v1366_v2 = vrot.slane %v3341_v60, 2  ;;  %v3369_v51 = vld [vmem:[%s3487_s6 + $0x28] sm:$0xff]  }
  0x1f   : > { %2795 = vmatpush3.bf16.msra.mxu1 %v3292_v19  ;;  %v3325_v19 = vld [vmem:[%s3487_s6 + $0x4] sm:$0xfc]  }
  0x20   : > { %2939 = vmatpush3.bf16.msra.mxu0 %v3293_v20  ;;  %2796 = vmatprep.subr.bf16.mxu1 %v3413_v1  ;;  %v394_v20 = vrot.slane %v392_v13, 1 }
  0x21   : > { %2940 = vmatprep.subr.bf16.mxu0 %v3413_v1 }
  0x22   : > { %v395_v25 = vor.u32 %v394_v20, %v390_v18  ;;  %v3354_v18 = vld [vmem:[%s3487_s6 + $0x10] sm:$0xff]   ;;  %v3351_v20 = vld [vmem:[%s3487_s6] sm:$0xfe]  }
  0x23   : > { %2797 = vmatpush3.bf16.msra.mxu1 %v3294_v26  ;;  %v399_v26 = vrot.slane %v397_v21, 1  ;;  %v3353_v21 = vld [vmem:[%s3487_s6 + $0x8] sm:$0xfc]   ;;  %v646_v23 = vrot.slane %v3351_v20, 1 }
  0x24   : > { %2941 = vmatpush3.bf16.msra.mxu0 %v3295_v27  ;;  %2818 = vmatprep.subr.bf16.mxu1 %v3413_v1  ;;  %v1359_v27 = vrot.slane %v3325_v19, 2 }
  0x25   : > { %2962 = vmatprep.subr.bf16.mxu0 %v3413_v1  ;;  %v400_v30 = vsel %vm388_vm2, %v395_v25, %v399_v26  ;;  %v1582_v25 = vrot.slane %v3353_v21, 2 }
  0x26   : > { %2799 = vmatmul.mubr.bf16.vlgmr.msra.gmra.mrb[0].mxu1 %v3296_v32  ;;  %v401_v32 = vshrl.u32 %v3324_v12, 16 }
  0x27   : > { %2943 = vmatmul.mubr.bf16.vlgmr.msra.gmra.mrb[0].mxu0 %v1109_v37  ;;  %2802 = vmatprep.mubr.msk.bf16.mxu1 %vm3414_vm0, %v3413_v1  ;;  %v3334_v37 = vld [vmem:[%s3487_s6 + $0x18] sm:$0xff]  }
  0x28   : > { %2963 = vmatpush3.bf16.msra.mxu0 %v3299_v33  ;;  %2946 = vmatprep.mubr.msk.bf16.mxu0 %vm3414_vm0, %v3413_v1  ;;  %v1361_v33 = vsel %vm1358_vm3, %v1359_v27, %v1360_v28  ;;  %v3355_v27 = vld [vmem:[%s3933_s1 + $0x1c0] sm:$0xff]  }
  0x29   : > { %2964 = vmatprep.subr.bf16.mxu0 %v3413_v1  ;;  %2819 = vmatpush3.bf16.msra.mxu1 %v3303_v38  ;;  %v403_v38 = vor.u32 %v401_v32, %v399_v26  ;;  %v1583_v26 = vrot.slane %v3354_v18, 2  ;;  %v3359_v32 = vld [vmem:[%s3933_s1 + $0xc0] sm:$0xff]   ;;  %v3386_v18 = vld [vmem:[%s3487_s6 + $0x18] sm:$0xff]  }
  0x2a   : > { %2820 = vmatprep.subr.bf16.mxu1 %v3413_v1 }
  0x2b   : > { %v408_v45 = vsel %vm388_vm2, %v403_v38, %v407_v36  ;;  %v3360_v38 = vld [vmem:[%s3933_s1 + $0x1d0] sm:$0xff]  }
  0x2c   : > { %2965 = vmatpush3.bf16.msra.mxu0 %v3300_v39  ;;  %v3328_v39 = vld [vmem:[%s3933_s1 + $0x188] sm:$0xff]  }
  0x2d   : > { %2966 = vmatprep.subr.bf16.mxu0 %v3413_v1  ;;  %2821 = vmatpush3.bf16.msra.mxu1 %v3305_v43  ;;  %v409_v43 = vshrl.u32 %v3329_v24, 16 }
  0x2e   : > { %2803 = vmatmul.mubr.bf16.gmra.mrb[4].mxu1 %v3301_v44  ;;  %2822 = vmatprep.subr.bf16.mxu1 %v3413_v1  ;;  %v413_v44 = vshll.u32 %v3334_v37, 16 }
  0x2f   : > { %2947 = vmatmul.mubr.bf16.gmra.mrb[4].mxu0 %v1118_v46  ;;  %2806 = vmatprep.mubr.msk.bf16.mxu1 %vm3414_vm0, %v3413_v1  ;;  %v1363_v46 = vsel %vm1358_vm3, %v1360_v28, %v1362_v40  ;;  %v411_v49 = vor.u32 %v409_v43, %v407_v36  ;;  %v3361_v36 = vld [vmem:[%s3933_s1 + $0xc8] sm:$0xff]  }
  0x30   : > { %2967 = vmatpush3.bf16.msra.mxu0 %v3304_v47  ;;  %2950 = vmatprep.mubr.msk.bf16.mxu0 %vm3414_vm0, %v3413_v1  ;;  %v3335_v47 = vld [vmem:[%s3487_s6 + $0x1c] sm:$0xff]  }
  0x31   : > { %2968 = vmatprep.subr.bf16.mxu0 %v3413_v1  ;;  %2823 = vmatpush3.bf16.msra.mxu1 %v3309_v50  ;;  %v415_v50 = vrot.slane %v413_v44, 1  ;;  %v1364_v52 = vrot.slane %v3335_v47, 2  ;;  %v3367_v47 = vld [vmem:[%s3933_s1 + $0x1e0] sm:$0xff]  }
  0x32   : > { %2824 = vmatprep.subr.bf16.mxu1 %v3413_v1 }
  0x33   : > { %v1365_v59 = vsel %vm1358_vm3, %v1362_v40, %v1364_v52  ;;  %v1367_v9 = vsel %vm1358_vm3, %v1364_v52, %v1366_v2  ;;  %v3370_v52 = vld [vmem:[%s3933_s1 + $0xe0] sm:$0xff]  }
  0x34   : > { %2969 = vmatpush3.bf16.msra.mxu0 %v3308_v55  ;;  %v3339_v55 = vld [vmem:[%s3933_s1 + $0x1a0] sm:$0xff]  }
  0x35   : > { %2970 = vmatprep.subr.bf16.mxu0 %v3413_v1  ;;  %2825 = vmatpush3.bf16.msra.mxu1 %v3310_v56  ;;  %v416_v56 = vsel %vm388_vm2, %v411_v49, %v415_v50 }
  0x36   : > { %2807 = vmatmul.mubr.bf16.gmra.mrb[8].mxu1 %v3306_v53  ;;  %2826 = vmatprep.subr.bf16.mxu1 %v3413_v1  ;;  %v3336_v53 = vld [vmem:[%s3933_s1 + $0x198] sm:$0xff]  }
  0x37   : > { %2951 = vmatmul.mubr.bf16.gmra.mrb[8].mxu0 %v1127_v61  ;;  %2810 = vmatprep.mubr.msk.bf16.mxu1 %vm3414_vm0, %v3413_v1  ;;  %v3342_v61 = vld [vmem:[%s3933_s1 + $0xa0] sm:$0xff]  }
  0x38   : > { %2971 = vmatpush3.bf16.msra.mxu0 %v3311_v57  ;;  %2954 = vmatprep.mubr.msk.bf16.mxu0 %vm3414_vm0, %v3413_v1  ;;  %v417_v57 = vshrl.u32 %v3334_v37, 16 }
  0x39   : > { %2827 = vmatpush3.bf16.msra.mxu1 %v3314_v62  ;;  %2972 = vmatprep.subr.bf16.mxu0 %v3413_v1  ;;  %v3346_v62 = vld [vmem:[%s3487_s6 + $0x28] ss:$0 sps:$4 sm:$0x11]  }
  0x3a   : > { %2828 = vmatprep.subr.bf16.mxu1 %v3413_v1 }
  0x3c   : > { %2973 = vmatpush3.bf16.msra.mxu0 %v3315_v63  ;;  %v419_v63 = vor.u32 %v417_v57, %v415_v50 }
  0x3d   : > { %2829 = vmatpush3.bf16.msra.mxu1 %v3316_v5  ;;  %2974 = vmatprep.subr.bf16.mxu0 %v3413_v1  ;;  %v3347_v5 = vld [vmem:[%s3487_s6 + $0x2c] ss:$0 sps:$4 sm:$0x33]  }
  0x3e   : > { %2811 = vmatmul.mubr.bf16.gmra.mrb[12].mxu1 %v3312_v0  ;;  %2830 = vmatprep.subr.bf16.mxu1 %v3413_v1  ;;  %v423_v0 = vrot.slane %v421_v58, 1  ;;  %v1368_v15 = vrot.slane %v3347_v5, 2  ;;  %v3374_v58 = vld [vmem:[%s3487_s6 + $0x28] ss:$0 sps:$4 sm:$0x11]  }
  0x3f   : > { %2955 = vmatmul.mubr.bf16.gmra.mrb[12].mxu0 %v1136_v8  ;;  %2814 = vmatprep.mubr.msk.bf16.mxu1 %vm3414_vm0, %v3413_v1  ;;  %v429_v8 = vshll.u32 %v3346_v62, 16  ;;  %v3381_v62 = vld [vmem:[%s3487_s6 + $0x8] sm:$0xfc]  }
  0x40   : > { %2958 = vmatprep.mubr.msk.bf16.mxu0 %vm3414_vm0, %v3413_v1  ;;  %2975 = vmatpush3.bf16.msra.mxu0 %v3317_v6  ;;  %v424_v6 = vsel %vm388_vm2, %v419_v63, %v423_v0  ;;  %v427_v12 = vor.u32 %v425_v7, %v423_v0  ;;  %v3382_v63 = vld [vmem:[%s3487_s6 + $0x10] sm:$0xff]   ;;  %v1807_v5 = vshrl.u32 %v3381_v62, 16 }
  0x41   : > { %2831 = vmatpush3.bf16.msra.mxu1 %v3320_v11  ;;  %2976 = vmatprep.subr.bf16.mxu0 %v3413_v1  ;;  %v3348_v11 = vld [vmem:[%s3933_s1 + $0xb0] sm:$0xff]   ;;  %v431_v13 = vrot.slane %v429_v8, 1  ;;  %v1815_v7 = vshrl.u32 %v3382_v63, 16  ;;  %v1818_v8 = vshll.u32 %v3382_v63, 16 }
  0x42   : > { %2832 = vmatprep.subr.bf16.mxu1 %v3413_v1  ;;  %v3376_v0 = vld [vmem:[%s3933_s1 + $0xf0] sm:$0xff]  }
  0x43   : > { %v432_v19 = vsel %vm388_vm2, %v427_v12, %v431_v13  ;;  %v3379_v12 = vld [vmem:[%s3487_s6 + $0x4] sm:$0xfe]   ;;  %v3380_v13 = vld [vmem:[%s3487_s6 + $0xc] sm:$0xff]  }
  0x44   : > { %2977 = vmatpush3.bf16.msra.mxu0 %v3321_v16  ;;  %v3350_v16 = vld [vmem:[%s3933_s1 + $0xb8] sm:$0xff]   ;;  %v870_v20 = vrot.slane %v3380_v13, 1 }
  0x45   : > { %2833 = vmatpush3.bf16.msra.mxu1 %v3322_v17  ;;  %2998 = vmatprep.subr.bf16.mxu0 %v3413_v1  ;;  %v3352_v17 = vld [vmem:[%s3487_s6 + $0x8] sm:$0xff]  }
  0x46   : > { %2815 = vmatmul.mubr.bf16.gmra.mrb[16].mxu1 %v3318_v14  ;;  %2854 = vmatprep.subr.bf16.mxu1 %v3413_v1  ;;  %v3349_v14 = vld [vmem:[%s3933_s1 + $0x1b8] sm:$0xff]   ;;  %v647_v24 = vrot.slane %v3352_v17, 1  ;;  %v1820_v17 = vrot.slane %v1818_v8, 3  ;;  %v3401_v8 = vld [vmem:[%s3487_s6 + $0x20] sm:$0xff]  }
  0x47   : > { %2959 = vmatmul.mubr.bf16.gmra.mrb[16].mxu0 %v1145_v22  ;;  %2834 = vmatprep.mubr.msk.bf16.mxu1 %vm3414_vm0, %v3413_v1  ;;  %v1369_v22 = vsel %vm1358_vm3, %v1366_v2, %v1368_v15  ;;  %v655_v2 = vrot.slane %v3374_v58, 1  ;;  %v3394_v58 = vld [vmem:[%s3933_s1 + $0x228] sm:$0xff]   ;;  %v2077_v13 = vrot.slane %v3401_v8, 3 }
  0x48   : > { %2978 = vmatprep.mubr.msk.bf16.mxu0 %vm3414_vm0, %v3413_v1  ;;  %v648_v28 = vsel %vm645_vm4, %v646_v23, %v647_v24  ;;  %v1824_v23 = vshrl.u32 %v3386_v18, 16 }
  0x4e   : > { %2835 = vmatmul.mubr.bf16.vlgmr.msra.gmra.mrb[0].mxu1 %v400_v30  ;;  %v1584_v30 = vsel %vm1358_vm3, %v1582_v25, %v1583_v26 }
  0x4f   : > { %2979 = vmatmul.mubr.bf16.vlgmr.msra.gmra.mrb[0].mxu0 %v1361_v33  ;;  %2838 = vmatprep.mubr.msk.bf16.mxu1 %vm3414_vm0, %v3413_v1  ;;  %v649_v33 = vrot.slane %v3357_v29, 1  ;;  %v1826_v29 = vrot.slane %v1824_v23, 2 }
  0x50   : > { %2999 = vmatpush3.bf16.msra.mxu0 %v3327_v31  ;;  %2982 = vmatprep.mubr.msk.bf16.mxu0 %vm3414_vm0, %v3413_v1  ;;  %v3358_v31 = vld [vmem:[%s3487_s6 + $0x18] sm:$0xff]  }
  0x51   : > { %3000 = vmatprep.subr.bf16.mxu0 %v3413_v1  ;;  %2855 = vmatpush3.bf16.msra.mxu1 %v3331_v35  ;;  %v1585_v35 = vrot.slane %v3358_v31, 2  ;;  %v650_v37 = vsel %vm645_vm4, %v647_v24, %v649_v33  ;;  %v1827_v24 = vshll.u32 %v3386_v18, 16  ;;  %v3389_v31 = vld [vmem:[%s3487_s6 + $0x20] sm:$0xff]   ;;  %v3404_v18 = vld [vmem:[%s3487_s6 + $0x30] ss:$0 sps:$4 sm:$0x77]  }
  0x52   : > { %2856 = vmatprep.subr.bf16.mxu1 %v3413_v1 }
  0x53   : > { %v1586_v40 = vsel %vm1358_vm3, %v1583_v26, %v1585_v35  ;;  %v3385_v26 = vld [vmem:[%s3487_s6 + $0x14] sm:$0xff]  }
  0x54   : > { %3001 = vmatpush3.bf16.msra.mxu0 %v3328_v39  ;;  %v3362_v39 = vld [vmem:[%s3487_s6 + $0x18] sm:$0xff]  }
  0x55   : > { %3002 = vmatprep.subr.bf16.mxu0 %v3413_v1  ;;  %2857 = vmatpush3.bf16.msra.mxu1 %v3333_v41  ;;  %v3363_v41 = vld [vmem:[%s3487_s6 + $0x20] sm:$0xff]   ;;  %v651_v43 = vrot.slane %v3362_v39, 1 }
  0x56   : > { %2839 = vmatmul.mubr.bf16.gmra.mrb[4].mxu1 %v408_v45  ;;  %2858 = vmatprep.subr.bf16.mxu1 %v3413_v1  ;;  %v1587_v44 = vrot.slane %v3363_v41, 2  ;;  %v3364_v45 = vld [vmem:[%s3933_s1 + $0x1d8] sm:$0xff]  }
  0x57   : > { %2983 = vmatmul.mubr.bf16.gmra.mrb[4].mxu0 %v1363_v46  ;;  %2842 = vmatprep.mubr.msk.bf16.mxu1 %vm3414_vm0, %v3413_v1  ;;  %v3366_v46 = vld [vmem:[%s3933_s1 + $0xd8] sm:$0xff]   ;;  %v652_v49 = vsel %vm645_vm4, %v649_v33, %v651_v43  ;;  %v3384_v33 = vld [vmem:[%s3933_s1 + $0x208] sm:$0xff]  }
  0x58   : > { %3003 = vmatpush3.bf16.msra.mxu0 %v3332_v42  ;;  %2986 = vmatprep.mubr.msk.bf16.mxu0 %vm3414_vm0, %v3413_v1  ;;  %v3365_v42 = vld [vmem:[%s3933_s1 + $0xd0] sm:$0xff]   ;;  %v1588_v50 = vsel %vm1358_vm3, %v1585_v35, %v1587_v44  ;;  %v1833_v35 = vshrl.u32 %v3389_v31, 16 }
  0x59   : > { %3004 = vmatprep.subr.bf16.mxu0 %v3413_v1  ;;  %2859 = vmatpush3.bf16.msra.mxu1 %v3337_v48  ;;  %v3368_v48 = vld [vmem:[%s3487_s6 + $0x20] sm:$0xff]  }
  0x5a   : > { %2860 = vmatprep.subr.bf16.mxu1 %v3413_v1  ;;  %v1835_v41 = vrot.slane %v1833_v35, 2 }
  0x5c   : > { %3005 = vmatpush3.bf16.msra.mxu0 %v3336_v53  ;;  %v653_v53 = vrot.slane %v3368_v48, 1 }
  0x5d   : > { %3006 = vmatprep.subr.bf16.mxu0 %v3413_v1  ;;  %2861 = vmatpush3.bf16.msra.mxu1 %v3338_v54  ;;  %v1589_v54 = vrot.slane %v3369_v51, 2 }
  0x5e   : > { %2843 = vmatmul.mubr.bf16.gmra.mrb[8].mxu1 %v416_v56  ;;  %2862 = vmatprep.subr.bf16.mxu1 %v3413_v1  ;;  %v3372_v56 = vld [vmem:[%s3933_s1 + $0xe8] sm:$0xff]   ;;  %v654_v57 = vsel %vm645_vm4, %v651_v43, %v653_v53 }
  0x5f   : > { %2987 = vmatmul.mubr.bf16.gmra.mrb[8].mxu0 %v1365_v59  ;;  %2846 = vmatprep.mubr.msk.bf16.mxu1 %vm3414_vm0, %v3413_v1  ;;  %v3375_v59 = vld [vmem:[%s3487_s6 + $0x30] ss:$0 sps:$4 sm:$0x33]   ;;  %v1590_v60 = vsel %vm1358_vm3, %v1587_v44, %v1589_v54  ;;  %v3393_v43 = vld [vmem:[%s3487_s6 + $0x28] sm:$0xff]  }
  0x60   : > { %3007 = vmatpush3.bf16.msra.mxu0 %v3339_v55  ;;  %2990 = vmatprep.mubr.msk.bf16.mxu0 %vm3414_vm0, %v3413_v1  ;;  %v3371_v55 = vld [vmem:[%s3933_s1 + $0x1e8] sm:$0xff]   ;;  %v1845_v48 = vshll.u32 %v3393_v43, 16 }
  0x61   : > { %2863 = vmatpush3.bf16.msra.mxu1 %v3342_v61  ;;  %3008 = vmatprep.subr.bf16.mxu0 %v3413_v1  ;;  %v3373_v61 = vld [vmem:[%s3933_s1 + $0x1f0] sm:$0xff]  }
  0x62   : > { %2864 = vmatprep.subr.bf16.mxu1 %v3413_v1 }
  0x64   : > { %3009 = vmatpush3.bf16.msra.mxu0 %v3343_v3  ;;  %v1591_v3 = vrot.slane %v3375_v59, 2 }
  0x65   : > { %2865 = vmatpush3.bf16.msra.mxu1 %v3344_v4  ;;  %3010 = vmatprep.subr.bf16.mxu0 %v3413_v1  ;;  %v3377_v4 = vld [vmem:[%s3933_s1 + $0x1f8] sm:$0xff]  }
  0x66   : > { %2847 = vmatmul.mubr.bf16.gmra.mrb[12].mxu1 %v424_v6  ;;  %2866 = vmatprep.subr.bf16.mxu1 %v3413_v1  ;;  %v1810_v6 = vshll.u32 %v3381_v62, 16  ;;  %v3396_v62 = vld [vmem:[%s3487_s6 + $0x2c] ss:$0 sps:$4 sm:$0x11]  }
  0x67   : > { %2991 = vmatmul.mubr.bf16.gmra.mrb[12].mxu0 %v1367_v9  ;;  %2850 = vmatprep.mubr.msk.bf16.mxu1 %vm3414_vm0, %v3413_v1  ;;  %v3378_v9 = vld [vmem:[%s3933_s1 + $0xf8] sm:$0xff]  }
  0x68   : > { %2994 = vmatprep.mubr.msk.bf16.mxu0 %vm3414_vm0, %v3413_v1  ;;  %3011 = vmatpush3.bf16.msra.mxu0 %v3345_v10  ;;  %v656_v10 = vsel %vm645_vm4, %v653_v53, %v655_v2  ;;  %v1812_v15 = vrot.slane %v1810_v6, 3  ;;  %v3398_v6 = vld [vmem:[%s3933_s1 + $0x238] sm:$0xff]  }
  0x69   : > { %2867 = vmatpush3.bf16.msra.mxu1 %v3348_v11  ;;  %3012 = vmatprep.subr.bf16.mxu0 %v3413_v1  ;;  %v1592_v11 = vsel %vm1358_vm3, %v1589_v54, %v1591_v3  ;;  %v1847_v54 = vrot.slane %v1845_v48, 3 }
  0x6a   : > { %2868 = vmatprep.subr.bf16.mxu1 %v3413_v1 }
  0x6c   : > { %3013 = vmatpush3.bf16.msra.mxu0 %v3349_v14  ;;  %v1809_v14 = vrot.slane %v1807_v5, 2 }
  0x6d   : > { %2869 = vmatpush3.bf16.msra.mxu1 %v3350_v16  ;;  %3034 = vmatprep.subr.bf16.mxu0 %v3413_v1  ;;  %v1817_v16 = vrot.slane %v1815_v7, 2 }
  0x6e   : > { %2851 = vmatmul.mubr.bf16.gmra.mrb[16].mxu1 %v432_v19  ;;  %2890 = vmatprep.subr.bf16.mxu1 %v3413_v1  ;;  %v869_v19 = vrot.slane %v3379_v12, 1  ;;  %v1813_v21 = vor.u32 %v1812_v15, %v1809_v14  ;;  %v3400_v12 = vld [vmem:[%s3487_s6 + $0x10] sm:$0xff]  }
  0x6f   : > { %2995 = vmatmul.mubr.bf16.gmra.mrb[16].mxu0 %v1369_v22  ;;  %2870 = vmatprep.mubr.msk.bf16.mxu1 %vm3414_vm0, %v3413_v1  ;;  %v1821_v22 = vor.u32 %v1820_v17, %v1817_v16  ;;  %v2073_v16 = vrot.slane %v3400_v12, 3 }
  0x70   : > { %3014 = vmatprep.mubr.msk.bf16.mxu0 %vm3414_vm0, %v3413_v1  ;;  %v871_v25 = vsel %vm645_vm4, %v869_v19, %v870_v20 }
  0x76   : > { %2871 = vmatmul.mubr.bf16.vlgmr.msra.gmra.mrb[0].mxu1 %v648_v28  ;;  %v3383_v28 = vld [vmem:[%s3933_s1 + $0x200] sm:$0xff]  }
  0x77   : > { %3015 = vmatmul.mubr.bf16.vlgmr.msra.gmra.mrb[0].mxu0 %v1584_v30  ;;  %2874 = vmatprep.mubr.msk.bf16.mxu1 %vm3414_vm0, %v3413_v1  ;;  %v1829_v30 = vrot.slane %v1827_v24, 3 }
  0x78   : > { %3035 = vmatpush3.bf16.msra.mxu0 %v3355_v27  ;;  %3018 = vmatprep.mubr.msk.bf16.mxu0 %vm3414_vm0, %v3413_v1  ;;  %v1822_v27 = vsel %vm1805_vm5, %v1813_v21, %v1821_v22  ;;  %v2081_v21 = vrot.slane %v3404_v18, 3 }
  0x79   : > { %3036 = vmatprep.subr.bf16.mxu0 %v3413_v1  ;;  %2891 = vmatpush3.bf16.msra.mxu1 %v3359_v32  ;;  %v872_v32 = vrot.slane %v3385_v26, 1 }
  0x7a   : > { %2892 = vmatprep.subr.bf16.mxu1 %v3413_v1 }
  0x7c   : > { %3037 = vmatpush3.bf16.msra.mxu0 %v3356_v34  ;;  %v1830_v34 = vor.u32 %v1829_v30, %v1826_v29 }
  0x7d   : > { %3038 = vmatprep.subr.bf16.mxu0 %v3413_v1  ;;  %2893 = vmatpush3.bf16.msra.mxu1 %v3361_v36  ;;  %v1836_v36 = vshll.u32 %v3389_v31, 16 }
  0x7e   : > { %2875 = vmatmul.mubr.bf16.gmra.mrb[4].mxu1 %v650_v37  ;;  %2894 = vmatprep.subr.bf16.mxu1 %v3413_v1  ;;  %v873_v37 = vsel %vm645_vm4, %v870_v20, %v872_v32  ;;  %v1831_v39 = vsel %vm1805_vm5, %v1821_v22, %v1830_v34  ;;  %v3403_v20 = vld [vmem:[%s3487_s6 + $0x18] sm:$0xff]  }
  0x7f   : > { %3019 = vmatmul.mubr.bf16.gmra.mrb[4].mxu0 %v1586_v40  ;;  %2878 = vmatprep.mubr.msk.bf16.mxu1 %vm3414_vm0, %v3413_v1  ;;  %v3387_v40 = vld [vmem:[%s3933_s1 + $0x210] sm:$0xff]   ;;  %v2075_v22 = vrot.slane %v3403_v20, 3 }
  0x80   : > { %3039 = vmatpush3.bf16.msra.mxu0 %v3360_v38  ;;  %3022 = vmatprep.mubr.msk.bf16.mxu0 %vm3414_vm0, %v3413_v1  ;;  %v3388_v38 = vld [vmem:[%s3487_s6 + $0x1c] sm:$0xff]  }
  0x81   : > { %3040 = vmatprep.subr.bf16.mxu0 %v3413_v1  ;;  %2895 = vmatpush3.bf16.msra.mxu1 %v3365_v42  ;;  %v1838_v42 = vrot.slane %v1836_v36, 3  ;;  %v874_v44 = vrot.slane %v3388_v38, 1  ;;  %v2076_v24 = vsel %vm2071_vm6, %v2073_v16, %v2075_v22 }
  0x82   : > { %2896 = vmatprep.subr.bf16.mxu1 %v3413_v1 }
  0x84   : > { %3041 = vmatpush3.bf16.msra.mxu0 %v3364_v45  ;;  %v1839_v45 = vor.u32 %v1838_v42, %v1835_v41 }
  0x85   : > { %3042 = vmatprep.subr.bf16.mxu0 %v3413_v1  ;;  %2897 = vmatpush3.bf16.msra.mxu1 %v3366_v46  ;;  %v3390_v46 = vld [vmem:[%s3933_s1 + $0x218] sm:$0xff]  }
  0x86   : > { %2879 = vmatmul.mubr.bf16.gmra.mrb[8].mxu1 %v652_v49  ;;  %2898 = vmatprep.subr.bf16.mxu1 %v3413_v1  ;;  %v875_v49 = vsel %vm645_vm4, %v872_v32, %v874_v44  ;;  %v1840_v51 = vsel %vm1805_vm5, %v1830_v34, %v1839_v45 }
  0x87   : > { %3023 = vmatmul.mubr.bf16.gmra.mrb[8].mxu0 %v1588_v50  ;;  %2882 = vmatprep.mubr.msk.bf16.mxu1 %vm3414_vm0, %v3413_v1  ;;  %v3392_v50 = vld [vmem:[%s3487_s6 + $0x24] sm:$0xff]  }
  0x88   : > { %3043 = vmatpush3.bf16.msra.mxu0 %v3367_v47  ;;  %3026 = vmatprep.mubr.msk.bf16.mxu0 %vm3414_vm0, %v3413_v1  ;;  %v1842_v47 = vshrl.u32 %v3393_v43, 16 }
  0x89   : > { %2899 = vmatpush3.bf16.msra.mxu1 %v3370_v52  ;;  %3044 = vmatprep.subr.bf16.mxu0 %v3413_v1  ;;  %v3391_v52 = vld [vmem:[%s3933_s1 + $0x220] sm:$0xff]  }
  0x8a   : > { %2900 = vmatprep.subr.bf16.mxu1 %v3413_v1  ;;  %v1844_v53 = vrot.slane %v1842_v47, 2 }
  0x8c   : > { %3045 = vmatpush3.bf16.msra.mxu0 %v3371_v55  ;;  %v3397_v55 = vld [vmem:[%s3487_s6 + $0x30] ss:$0 sps:$4 sm:$0x77]  }
  0x8d   : > { %2901 = vmatpush3.bf16.msra.mxu1 %v3372_v56  ;;  %3046 = vmatprep.subr.bf16.mxu0 %v3413_v1  ;;  %v876_v56 = vrot.slane %v3392_v50, 1  ;;  %v1851_v59 = vshrl.u32 %v3397_v55, 16 }
  0x8e   : > { %2883 = vmatmul.mubr.bf16.gmra.mrb[12].mxu1 %v654_v57  ;;  %2902 = vmatprep.subr.bf16.mxu1 %v3413_v1  ;;  %v1848_v57 = vor.u32 %v1847_v54, %v1844_v53 }
  0x8f   : > { %3027 = vmatmul.mubr.bf16.gmra.mrb[12].mxu0 %v1590_v60  ;;  %2886 = vmatprep.mubr.msk.bf16.mxu1 %vm3414_vm0, %v3413_v1  ;;  %v1854_v60 = vshll.u32 %v3397_v55, 16  ;;  %v1853_v2 = vrot.slane %v1851_v59, 2 }
  0x90   : > { %3030 = vmatprep.mubr.msk.bf16.mxu0 %vm3414_vm0, %v3413_v1  ;;  %3047 = vmatpush3.bf16.msra.mxu0 %v3373_v61  ;;  %v877_v61 = vsel %vm645_vm4, %v874_v44, %v876_v56  ;;  %v1849_v63 = vsel %vm1805_vm5, %v1839_v45, %v1848_v57 }
  0x91   : > { %2903 = vmatpush3.bf16.msra.mxu1 %v3376_v0  ;;  %3048 = vmatprep.subr.bf16.mxu0 %v3413_v1  ;;  %v3395_v0 = vld [vmem:[%s3933_s1 + $0x230] sm:$0xff]   ;;  %v1856_v3 = vrot.slane %v1854_v60, 3 }
  0x92   : > { %2904 = vmatprep.subr.bf16.mxu1 %v3413_v1 }
  0x93   : > { %v1857_v5 = vor.u32 %v1856_v3, %v1853_v2 }
  0x94   : > { %3049 = vmatpush3.bf16.msra.mxu0 %v3377_v4  ;;  %v878_v4 = vrot.slane %v3396_v62, 1 }
  0x95   : > { %2905 = vmatpush3.bf16.msra.mxu1 %v3378_v9  ;;  %3070 = vmatprep.subr.bf16.mxu0 %v3413_v1  ;;  %v3402_v9 = vld [vmem:[%s3487_s6 + $0x28] sm:$0xff]  }
  0x96   : > { %2887 = vmatmul.mubr.bf16.gmra.mrb[16].mxu1 %v656_v10  ;;  %3106 = vmatprep.subr.bf16.mxu1 %v3413_v1  ;;  %v879_v7 = vsel %vm645_vm4, %v876_v56, %v878_v4  ;;  %v1858_v10 = vsel %vm1805_vm5, %v1848_v57, %v1857_v5  ;;  %v2079_v14 = vrot.slane %v3402_v9, 3 }
  0x97   : > { %3031 = vmatmul.mubr.bf16.gmra.mrb[16].mxu0 %v1592_v11  ;;  %2906 = vmatprep.mubr.msk.bf16.mxu1 %vm3414_vm0, %v3413_v1  ;;  %v3399_v11 = vld [vmem:[%s3487_s6 + $0x8] sm:$0xf8]   ;;  %s3269_s6 = smul.u32 40, %s3936_s10 }
  0x98   : > { %3050 = vmatprep.mubr.msk.bf16.mxu0 %vm3414_vm0, %v3413_v1  ;;  %v2072_v15 = vrot.slane %v3399_v11, 3  ;;  %v2080_v17 = vsel %vm2071_vm6, %v2077_v13, %v2079_v14  ;;  %v2082_v23 = vsel %vm2071_vm6, %v2079_v14, %v2081_v21 }
  0x99   : > { %s143_s8 = scalar_lea.vmem %s3934_s2, %s3269_s6 }
  0x9a   : > { %v2074_v19 = vsel %vm2071_vm6, %v2072_v15, %v2073_v16 }
  0x9e   : > { %2907 = vmatmul.mubr.bf16.vlgmr.msra.gmra.mrb[0].mxu1 %v871_v25  ;;  %v2078_v25 = vsel %vm2071_vm6, %v2075_v22, %v2077_v13 }
  0x9f   : > { %3051 = vmatmul.mubr.bf16.vlgmr.msra.gmra.mrb[0].mxu0 %v1822_v27  ;;  %2910 = vmatprep.mubr.msk.bf16.mxu1 %vm3414_vm0, %v3413_v1 }
  0xa0   : > { %3071 = vmatpush3.bf16.msra.mxu0 %v3383_v28  ;;  %3054 = vmatprep.mubr.msk.bf16.mxu0 %vm3414_vm0, %v3413_v1 }
  0xa1   : > { %3072 = vmatprep.subr.bf16.mxu0 %v3413_v1  ;;  %3114 = vmatpush3.bf16.msra.mxu1 %v3383_v28 }
  0xa2   : > { %3107 = vmatprep.subr.bf16.mxu1 %v3413_v1 }
  0xa4   : > { %3073 = vmatpush3.bf16.msra.mxu0 %v3384_v33 }
  0xa5   : > { %3074 = vmatprep.subr.bf16.mxu0 %v3413_v1  ;;  %3115 = vmatpush3.bf16.msra.mxu1 %v3384_v33 }
  0xa6   : > { %2911 = vmatmul.mubr.bf16.gmra.mrb[4].mxu1 %v873_v37  ;;  %3108 = vmatprep.subr.bf16.mxu1 %v3413_v1 }
  0xa7   : > { %3055 = vmatmul.mubr.bf16.gmra.mrb[4].mxu0 %v1831_v39  ;;  %2914 = vmatprep.mubr.msk.bf16.mxu1 %vm3414_vm0, %v3413_v1 }
  0xa8   : > { %3075 = vmatpush3.bf16.msra.mxu0 %v3387_v40  ;;  %3058 = vmatprep.mubr.msk.bf16.mxu0 %vm3414_vm0, %v3413_v1 }
  0xa9   : > { %3076 = vmatprep.subr.bf16.mxu0 %v3413_v1  ;;  %3116 = vmatpush3.bf16.msra.mxu1 %v3387_v40 }
  0xaa   : > { %3109 = vmatprep.subr.bf16.mxu1 %v3413_v1 }
  0xac   : > { %3077 = vmatpush3.bf16.msra.mxu0 %v3390_v46 }
  0xad   : > { %3078 = vmatprep.subr.bf16.mxu0 %v3413_v1  ;;  %3117 = vmatpush3.bf16.msra.mxu1 %v3390_v46 }
  0xae   : > { %2915 = vmatmul.mubr.bf16.gmra.mrb[8].mxu1 %v875_v49  ;;  %3110 = vmatprep.subr.bf16.mxu1 %v3413_v1 }
  0xaf   : > { %3059 = vmatmul.mubr.bf16.gmra.mrb[8].mxu0 %v1840_v51  ;;  %2918 = vmatprep.mubr.msk.bf16.mxu1 %vm3414_vm0, %v3413_v1 }
  0xb0   : > { %3079 = vmatpush3.bf16.msra.mxu0 %v3391_v52  ;;  %3062 = vmatprep.mubr.msk.bf16.mxu0 %vm3414_vm0, %v3413_v1 }
  0xb1   : > { %3118 = vmatpush3.bf16.msra.mxu1 %v3391_v52  ;;  %3080 = vmatprep.subr.bf16.mxu0 %v3413_v1 }
  0xb2   : > { %3111 = vmatprep.subr.bf16.mxu1 %v3413_v1 }
  0xb4   : > { %3081 = vmatpush3.bf16.msra.mxu0 %v3394_v58 }
  0xb5   : > { %3119 = vmatpush3.bf16.msra.mxu1 %v3394_v58  ;;  %3082 = vmatprep.subr.bf16.mxu0 %v3413_v1 }
  0xb6   : > { %2919 = vmatmul.mubr.bf16.gmra.mrb[12].mxu1 %v877_v61  ;;  %3112 = vmatprep.subr.bf16.mxu1 %v3413_v1 }
  0xb7   : > { %3063 = vmatmul.mubr.bf16.gmra.mrb[12].mxu0 %v1849_v63  ;;  %2922 = vmatprep.mubr.msk.bf16.mxu1 %vm3414_vm0, %v3413_v1 }
  0xb8   : > { %3066 = vmatprep.mubr.msk.bf16.mxu0 %vm3414_vm0, %v3413_v1  ;;  %3083 = vmatpush3.bf16.msra.mxu0 %v3395_v0 }
  0xb9   : > { %3120 = vmatpush3.bf16.msra.mxu1 %v3395_v0  ;;  %3084 = vmatprep.subr.bf16.mxu0 %v3413_v1 }
  0xba   : > { %3113 = vmatprep.subr.bf16.mxu1 %v3413_v1 }
  0xbc   : > { %3085 = vmatpush3.bf16.msra.mxu0 %v3398_v6 }
  0xbd   : > { %3121 = vmatpush3.bf16.msra.mxu1 %v3398_v6 }
  0xbe   : > { %2923 = vmatmul.mubr.bf16.gmra.mrb[16].mxu1 %v879_v7 }
  0xbf   : > { %3067 = vmatmul.mubr.bf16.gmra.mrb[16].mxu0 %v1858_v10  ;;  %3098 = vmatprep.mubr.msk.bf16.mxu1 %vm3414_vm0, %v3413_v1 }
  0xc0   : > { %3086 = vmatprep.mubr.msk.bf16.mxu0 %vm3414_vm0, %v3413_v1 }
  0xc6   : > { %3099 = vmatmul.mubr.bf16.vlgmr.msra.gmra.mrb[20].mxu1 %v2080_v17 }
  0xc7   : > { %3087 = vmatmul.mubr.bf16.vlgmr.msra.gmra.mrb[0].mxu0 %v2074_v19  ;;  %3102 = vmatprep.mubr.msk.bf16.mxu1 %vm3414_vm0, %v3413_v1 }
  0xc8   : > { %3090 = vmatprep.mubr.msk.bf16.mxu0 %vm3414_vm0, %v3413_v1 }
  0xce   : > { %3103 = vmatmul.mubr.bf16.gmra.mrb[24].mxu1 %v2082_v23 }
  0xcf   : > { %3091 = vmatmul.mubr.bf16.gmra.mrb[4].mxu0 %v2076_v24 }
  0xd0   : > { %3094 = vmatprep.mubr.msk.bf16.mxu0 %vm3414_vm0, %v3413_v1 }
  0xd7   : > { %3095 = vmatmul.mubr.bf16.gmra.mrb[8].mxu0 %v2078_v25 }
 0x171   : > { %v967_v26 = vpop.f32.mrb[0].mxu1 }
 0x172   : > { %v2908_v27 = vpop.f32.mrb[1].mxu1 }
 0x173   : > { %v970_v28 = vpop.f32.mrb[2].mxu1 }
 0x174   : > { %v2909_v29 = vpop.f32.mrb[3].mxu1 }
 0x179   : > { %v975_v30 = vpop.f32.mrb[4].mxu1 }
 0x17a   : > { %v2912_v31 = vpop.f32.mrb[5].mxu1 }
 0x17b   : > { %v978_v32 = vpop.f32.mrb[6].mxu1 }
 0x17c   : > { %v2913_v33 = vpop.f32.mrb[7].mxu1 }
 0x181   : > { %v983_v34 = vpop.f32.mrb[8].mxu1 }
 0x182   : > { %v2916_v35 = vpop.f32.mrb[9].mxu1 }
 0x183   : > { %v986_v36 = vpop.f32.mrb[10].mxu1 }
 0x184   : > { %v2917_v37 = vpop.f32.mrb[11].mxu1 }
 0x189   : > { %v991_v38 = vpop.f32.mrb[12].mxu1 }
 0x18a   : > { %v1970_v39 = vpop.f32.mrb[12].mxu0  ;;  %v2920_v40 = vpop.f32.mrb[13].mxu1 }
 0x18b   : > { %v3128_v41 = vadd.f32 %v1970_v39, %v991_v38  ;;  %v3064_v1 = vpop.f32.mrb[13].mxu0  ;;  %v994_v42 = vpop.f32.mrb[14].mxu1 }
 0x18c   : > { %v1973_v43 = vpop.f32.mrb[14].mxu0  ;;  %v2921_v44 = vpop.f32.mrb[15].mxu1 }
 0x18d   : > { %v3130_v45 = vadd.f32 %v1973_v43, %v994_v42  ;;  %v3065_v46 = vpop.f32.mrb[15].mxu0 }
 0x191   : > { %v999_v47 = vpop.f32.mrb[16].mxu1 }
 0x192   : > { %v1978_v48 = vpop.f32.mrb[16].mxu0  ;;  %v2924_v49 = vpop.f32.mrb[17].mxu1 }
 0x193   : > { %v3132_v50 = vadd.f32 %v1978_v48, %v999_v47  ;;  %v3068_v51 = vpop.f32.mrb[17].mxu0  ;;  %v1002_v52 = vpop.f32.mrb[18].mxu1 }
 0x194   : > { %v1981_v53 = vpop.f32.mrb[18].mxu0  ;;  %v2925_v54 = vpop.f32.mrb[19].mxu1 }
 0x195   : > { %v3134_v55 = vadd.f32 %v1981_v53, %v1002_v52  ;;  %v3069_v56 = vpop.f32.mrb[19].mxu0 }
 0x199   : > { %v2194_v57 = vpop.f32.mrb[20].mxu1 }
 0x19a   : > { %v2170_v58 = vpop.f32.mrb[0].mxu0  ;;  %v3129_v59 = vadd.f32 %v3128_v41, %v2194_v57  ;;  %v3100_v60 = vpop.f32.mrb[21].mxu1 }
 0x19b   : > { %v3122_v61 = vadd.f32 %v2170_v58, %v967_v26  ;;  %v3088_v62 = vpop.f32.mrb[1].mxu0  ;;  %v2197_v63 = vpop.f32.mrb[22].mxu1 }
 0x19c   : > { %v2173_v0 = vpop.f32.mrb[2].mxu0  ;;  %v3131_v2 = vadd.f32 %v3130_v45, %v2197_v63  ;;  %v3101_v3 = vpop.f32.mrb[23].mxu1 }
 0x19d   : > { %v3123_v4 = vadd.f32 %v2173_v0, %v970_v28  ;;  %v3089_v5 = vpop.f32.mrb[3].mxu0 }
 0x19e   : > { %v2654_v6 = vpack.c.bf16 %v3131_v2, %v3129_v59 }
 0x19f   : > { %v2639_v7 = vpack.c.bf16 %v3123_v4, %v3122_v61 }
 0x1a0   : > { %2663 = vst [vmem:[%s143_s8 + $0x18] sm:$0xff] %v2654_v6  }
 0x1a1   : > { %2640 = vst [vmem:[%s143_s8] sm:$0xff] %v2639_v7   ;;  %v2202_v8 = vpop.f32.mrb[24].mxu1 }
 0x1a2   : > { %v2178_v9 = vpop.f32.mrb[4].mxu0  ;;  %v3133_v10 = vadd.f32 %v3132_v50, %v2202_v8  ;;  %v3104_v11 = vpop.f32.mrb[25].mxu1 }
 0x1a3   : > { %v3124_v12 = vadd.f32 %v2178_v9, %v975_v30  ;;  %v3092_v13 = vpop.f32.mrb[5].mxu0  ;;  %v2205_v14 = vpop.f32.mrb[26].mxu1 }
 0x1a4   : > { %v2181_v15 = vpop.f32.mrb[6].mxu0  ;;  %v3135_v16 = vadd.f32 %v3134_v55, %v2205_v14  ;;  %v3105_v17 = vpop.f32.mrb[27].mxu1 }
 0x1a5   : > { %v3125_v18 = vadd.f32 %v2181_v15, %v978_v32  ;;  %v3093_v19 = vpop.f32.mrb[7].mxu0 }
 0x1a6   : > { %v2659_v20 = vpack.c.bf16 %v3135_v16, %v3133_v10 }
 0x1a7   : > { %v2644_v21 = vpack.c.bf16 %v3125_v18, %v3124_v12 }
 0x1a8   : > { %2664 = vst [vmem:[%s143_s8 + $0x20] sm:$0xff] %v2659_v20  }
 0x1a9   : > { %2661 = vst [vmem:[%s143_s8 + $0x8] sm:$0xff] %v2644_v21  }
 0x1aa   : > { %v2186_v22 = vpop.f32.mrb[8].mxu0 }
 0x1ab   : > { %v3126_v23 = vadd.f32 %v2186_v22, %v983_v34  ;;  %v3096_v24 = vpop.f32.mrb[9].mxu0 }
 0x1ac   : > { %v2189_v25 = vpop.f32.mrb[10].mxu0 }
 0x1ad   : > { %v3127_v26 = vadd.f32 %v2189_v25, %v986_v36  ;;  %v3097_v27 = vpop.f32.mrb[11].mxu0 }
 0x1af   : > { %v2649_v28 = vpack.c.bf16 %v3127_v26, %v3126_v23 }
 0x1b1   : > { %2662 = vst [vmem:[%s143_s8 + $0x10] sm:$0xff] %v2649_v28  }
 0x1b2 PF: > { %s12_s9 = sadd.s32 1, %s3411_s9  }
 0x1b3   : > { %p9_p4 = scmp.ge.s32.totalorder %s12_s9, 4  }
 0x1b5   :  { %11 = sbr.rel (!%p9_p4) target bundleno = 1 (0x1), region = 66 }

// kernel: densenet_forward.25
= control target key start
LH: loop header
LB: loop body
LE: loop exit
PB: predicated region body
PF: predicated region fallthrough
CT: control target
= control target key end

     0   :  { %vm26_vm0 = vcmask 254976   ;;  %v223_v0 = vmov 0.0|0.0   ;;  %v224_v4 = vmov 0.0   ;;  %vm225_vm1 = vmmov 0   ;;  %s293_s3 = inlined_call_operand.vmem [shape: f32[32,1], index: 3, kind: input, shape index: {}]   ;;  %s294_s0 = inlined_call_operand.vmem [shape: bf16[2,16,32], index: 0, kind: input, shape index: {}]   ;;  %s295_s1 = inlined_call_operand.vmem [shape: f32[1,1,32], index: 1, kind: input, shape index: {}]   ;;  %s296_s4 = inlined_call_operand.<no memory space> [shape: f32[1,1], index: 4, kind: input, shape index: {}]   ;;  %s297_s2 = inlined_call_operand.vmem [shape: f32[1,1,32], index: 2, kind: input, shape index: {}]   ;;  %s298_s5 = inlined_call_operand.vmem [shape: f32[2,1], index: 5, kind: output, shape index: {}]  }
   0x1   :  { %214 = vmatprep.subr.bf16.mxu0 %v223_v0  ;;  %v95_v1 = vld [vmem:[%s293_s3] sm:$0xff]  ;;  %v96_v2 = vld [vmem:[%s293_s3 + $0x8] sm:$0xff]  ;;  %v97_v3 = vld [vmem:[%s293_s3 + $0x10] sm:$0xff]  ;;  %27 = vst.msk [vmem:[#allocation2] sm:$0x3] %vm26_vm0, %v224_v4  ;;  %v10_v5 = vstv %s296_s4  ;;  %211 = vmatprep.mubr.msk.f32.mxu0 %vm225_vm1, %v224_v4  ;;  %vm63_vm2 = vcmask 261120  }
   0x2   :  { %v215_v6 = vpack.c.bf16 %v96_v2, %v95_v1  ;;  %v98_v7 = vld [vmem:[%s293_s3 + $0x18] sm:$0xff]  ;;  %v190_v8 = vld [vmem:[%s294_s0] sm:$0xff]   ;;  %v197_v9 = vld [vmem:[%s294_s0 + $0x8] sm:$0xff]   ;;  %11 = vst [vmem:[#allocation3] sm:$0x1] %v10_v5  ;;  %vm84_vm3 = vcmask 1041409  }
   0x3   :  { %v191_v10 = vunpack.c.l.bf16 %v190_v8  ;;  %v192_v11 = vunpack.c.h.bf16 %v190_v8  ;;  %v195_v12 = vunpack.c.l.bf16 %v197_v9  ;;  %v185_v13 = vld [vmem:[%s295_s1] ss:$0 sm:$0xff]  ;;  %v218_v14 = vpack.c.bf16 %v98_v7, %v97_v3 }
   0x4   :  { %216 = vmatpush3.bf16.msra.mxu0 %v215_v6  ;;  %v196_v15 = vunpack.c.h.bf16 %v197_v9  ;;  %v186_v16 = vld [vmem:[%s297_s2] ss:$0 sm:$0xff]  ;;  %vm179_vm4 = vcmask 1024  }
   0x5   :  { %217 = vmatprep.subr.bf16.mxu0 %v223_v0  ;;  %v43_v17 = vmul.f32 %v191_v10, %v185_v13  ;;  %v44_v18 = vmul.f32 %v192_v11, %v185_v13  ;;  %v45_v19 = vmul.f32 %v195_v12, %v185_v13 }
   0x6   :  { %v46_v20 = vmul.f32 %v196_v15, %v185_v13 }
   0x7   :  { %v54_v21 = vadd.f32 %v186_v16, %v43_v17  ;;  %v55_v22 = vadd.f32 %v186_v16, %v44_v18  ;;  %v56_v23 = vadd.f32 %v186_v16, %v45_v19 }
   0x8   :  { %219 = vmatpush3.bf16.msra.mxu0 %v218_v14  ;;  %v57_v24 = vadd.f32 %v186_v16, %v46_v20  ;;  %v62_v46 = vld [vmem:[#allocation2] sm:$0x3] }
   0x9   :  { %v58_v25 = vmax.f32 %v54_v21, 0.0  ;;  %v59_v26 = vmax.f32 %v55_v22, 0.0  ;;  %v60_v27 = vmax.f32 %v56_v23, 0.0  ;;  %v187_v52 = vld [vmem:[#allocation3] ss:$0 sm:$0xff] }
   0xa   :  { %v61_v28 = vmax.f32 %v57_v24, 0.0 }
   0xb   :  { %v64_v29 = vsel %vm63_vm2, %v58_v25, 0.0  ;;  %v65_v30 = vsel %vm63_vm2, %v59_v26, 0.0  ;;  %v73_v31 = vsel %vm63_vm2, %v60_v27, 0.0 }
   0xc   :  { %v66_v32 = vadd.f32 %v65_v30, %v64_v29  ;;  %v74_v33 = vsel %vm63_vm2, %v61_v28, 0.0 }
   0xd   :  { %v75_v34 = vadd.f32 %v74_v33, %v73_v31 }
   0xe   :  { %v67_v35 = vrot.slane %v66_v32, 4 }
   0xf   :  { %v76_v36 = vrot.slane %v75_v34, 4 }
  0x10   :  { %v68_v37 = vadd.f32 %v67_v35, %v66_v32 }
  0x11   :  { %v77_v38 = vadd.f32 %v76_v36, %v75_v34 }
  0x12   :  { %v69_v39 = vrot.slane %v68_v37, 2 }
  0x13   :  { %v78_v40 = vrot.slane %v77_v38, 2 }
  0x14   :  { %v70_v41 = vadd.f32 %v69_v39, %v68_v37 }
  0x15   :  { %v79_v42 = vadd.f32 %v78_v40, %v77_v38 }
  0x16   :  { %v71_v43 = vrot.slane %v70_v41, 1 }
  0x17   :  { %v80_v44 = vrot.slane %v79_v42, 1 }
  0x18   :  { %v72_v45 = vadd.f32 %v71_v43, %v70_v41 }
  0x19   :  { %v81_v47 = vadd.f32 %v80_v44, %v79_v42 }
  0x1b   :  { %v85_v48 = vsel %vm84_vm3, %v81_v47, %v72_v45 }
  0x1c   :  { %v87_v49 = vadd.f32 %v85_v48, %v62_v46 }
  0x1e   :  { %89 = vst.msk [vmem:[#allocation2] sm:$0x3] %vm26_vm0, %v87_v49 }
  0x25   :  { %v93_v50 = vld [vmem:[#allocation2] sm:$0x3] }
  0x26   :  { %v94_v51 = vmul.f32 0.0625, %v93_v50 }
  0x28   :  { %212 = vmatmul.mubr.msk.f32.vlgmr.msra.gmra.mrb[0].mxu0 %vm63_vm2, %v94_v51 }
  0xfb   :  { %v175_v53 = vpop.f32.mrb[0].mxu0 }
  0xfc   :  { %v176_v54 = vadd.f32 %v187_v52, %v175_v53  ;;  %v213_v55 = vpop.f32.mrb[1].mxu0 }
  0xfe   :  { %180 = vst.msk [vmem:[%s298_s5] sm:$0x3] %vm179_vm4, %v176_v54 }

</bundles_post_ra>
